<compile_context>
chip_gen: v6e
topology: v6e:2x2x1
jax: 0.10.0
libtpu: 0.0.40
codegen_flags: <defaults>
</compile_context>

<pallas_src>
import jax
import jax.numpy as jnp
from jax.experimental import pallas as pl
from jax.experimental.pallas import tpu as pltpu

LATENT = 256
OUTPUT = 32 * 32 * 16  # 16384
TN = 8192              # output-column tile -> grid of 2 steps (1 per TC on v7x)


def decoder_kernel(x_ref, w1_ref, b1_ref, w2_ref, s2_ref, b2_ref, o_ref):
    # Hidden layer (tiny: B x 256 @ 256 x 256, f32). Recomputed per output tile
    # on purpose — see header comment.
    h = jnp.dot(x_ref[...], w1_ref[...], preferred_element_type=jnp.float32)
    h = jnp.tanh(h + b1_ref[...])
    # Second layer: int8 weight tile -> bf16 (exact), bf16 x bf16 MXU matmul,
    # f32 accumulate, then per-output-column dequant scale + bias on the VPU.
    w2 = w2_ref[...].astype(jnp.bfloat16)
    y = jnp.dot(h.astype(jnp.bfloat16), w2, preferred_element_type=jnp.float32)
    o_ref[...] = (y * s2_ref[...] + b2_ref[...]).astype(o_ref.dtype)


def decoder_forward(x, w1, b1, w2_q, w2_scale, b2, *, tn=TN):
    B = x.shape[0]
    assert OUTPUT % tn == 0
    n_tiles = OUTPUT // tn

    cost = pl.CostEstimate(
        # W1 matmul + tanh are recomputed per output tile; W2 matmul is done once.
        flops=n_tiles * 2 * B * LATENT * LATENT + 2 * B * LATENT * OUTPUT,
        transcendentals=n_tiles * B * LATENT,
        bytes_accessed=(
            x.size * x.dtype.itemsize
            + w1.size * w1.dtype.itemsize
            + b1.size * b1.dtype.itemsize
            + w2_q.size * w2_q.dtype.itemsize          # dominant: 4 MiB int8 stream
            + w2_scale.size * w2_scale.dtype.itemsize
            + b2.size * b2.dtype.itemsize
            + B * OUTPUT * 4
        ),
    )

    return pl.pallas_call(
        decoder_kernel,
        out_shape=jax.ShapeDtypeStruct((B, OUTPUT), jnp.float32),
        grid_spec=pltpu.PrefetchScalarGridSpec(
            num_scalar_prefetch=0,
            grid=(n_tiles,),
            in_specs=[
                pl.BlockSpec((B, LATENT), lambda j: (0, 0)),        # x (full, f32)
                pl.BlockSpec((LATENT, LATENT), lambda j: (0, 0)),   # W1 (full, f32)
                pl.BlockSpec((1, LATENT), lambda j: (0, 0)),        # b1 (full, f32)
                pl.BlockSpec((LATENT, tn), lambda j: (0, j)),       # W2 column tile (int8)
                pl.BlockSpec((1, tn), lambda j: (0, j)),            # per-column scale (f32)
                pl.BlockSpec((1, tn), lambda j: (0, j)),            # b2 column tile (f32)
            ],
            out_specs=pl.BlockSpec((B, tn), lambda j: (0, j)),
        ),
        compiler_params=pltpu.CompilerParams(
            dimension_semantics=("parallel",),
            vmem_limit_bytes=32 * 1024 * 1024,
        ),
        cost_estimate=cost,
    )(x, w1, b1, w2_q, w2_scale, b2)


def quantize_w2(w2_f32):
    """Per-output-column symmetric int8 quantization of (in, out) weights."""
    absmax = jnp.max(jnp.abs(w2_f32), axis=0, keepdims=True)        # (1, OUT)
    scale = jnp.where(absmax > 0, absmax / 127.0, 1.0).astype(jnp.float32)
    w_q = jnp.clip(jnp.round(w2_f32 / scale), -127, 127).astype(jnp.int8)
    return w_q, scale


def make_params(key):
    k1, k2, k3, k4 = jax.random.split(key, 4)
    # Deterministic synthetic init (uniform, roughly matching PyTorch fan-in scale).
    bound = 1.0 / (LATENT ** 0.5)
    w1 = jax.random.uniform(k1, (LATENT, LATENT), jnp.float32, -bound, bound)
    b1 = jax.random.uniform(k2, (1, LATENT), jnp.float32, -bound, bound)
    w2_f32 = jax.random.uniform(k3, (LATENT, OUTPUT), jnp.float32, -bound, bound)
    b2 = jax.random.uniform(k4, (1, OUTPUT), jnp.float32, -bound, bound)
    w2_q, w2_scale = quantize_w2(w2_f32)
    return w1, b1, w2_f32, w2_q, w2_scale, b2


def reference_forward_quant(x, w1, b1, w2_q, w2_scale, b2):
    # Same numerics as the kernel: f32 first layer + tanh, bf16 x bf16 second
    # matmul with f32 accumulation, per-column scale + f32 bias.
    h = jnp.tanh(x @ w1 + b1)
    y = jnp.dot(h.astype(jnp.bfloat16), w2_q.astype(jnp.bfloat16),
                preferred_element_type=jnp.float32)
    return y * w2_scale + b2


def reference_forward_f32(x, w1, b1, w2_f32, b2):
    # Full-precision reference of the original PyTorch module's forward.
    h = jnp.tanh(x @ w1 + b1)
    return h @ w2_f32 + b2


if __name__ == "__main__":
    key = jax.random.PRNGKey(0)
    kx, kp = jax.random.split(key)

    batch = 2
    x = jax.random.normal(kx, (batch, LATENT), jnp.float32)
    w1, b1, w2_f32, w2_q, w2_scale, b2 = make_params(kp)

    out = jax.block_until_ready(decoder_forward(x, w1, b1, w2_q, w2_scale, b2))

    assert out.shape == (batch, OUTPUT)
    assert out.dtype == jnp.float32

    # 1) Plumbing check: kernel vs a reference using identical quantized numerics.
    ref_q = reference_forward_quant(x, w1, b1, w2_q, w2_scale, b2)
    err_q = float(jnp.max(jnp.abs(out - ref_q)))
    assert jnp.allclose(out, ref_q, atol=5e-3, rtol=5e-3), f"plumbing max abs err {err_q}"

    # 2) Accuracy check: kernel vs the full-f32 decoder (bf16 activations +
    #    int8 per-column weight quantization => small absolute error budget).
    ref_f = reference_forward_f32(x, w1, b1, w2_f32, b2)
    err_f = float(jnp.max(jnp.abs(out - ref_f)))
    assert err_f < 5e-2, f"accuracy vs f32 reference: max abs err {err_f}"

    print("KERNEL_OK")
</pallas_src>

<mosaic_0001>
module attributes {stable_mosaic.version = 11 : i64} {
  func.func @decoder_kernel(%arg0: i32, %arg1: memref<2x256xf32, #tpu.memory_space<vmem>>, %arg2: memref<256x256xf32, #tpu.memory_space<vmem>>, %arg3: memref<1x256xf32, #tpu.memory_space<vmem>>, %arg4: memref<256x8192xi8, #tpu.memory_space<vmem>>, %arg5: memref<1x8192xf32, #tpu.memory_space<vmem>>, %arg6: memref<1x8192xf32, #tpu.memory_space<vmem>>, %arg7: memref<2x8192xf32, #tpu.memory_space<vmem>>) attributes {dimension_semantics = [#tpu.dimension_semantics<parallel>], iteration_bounds = array<i64: 2>, scalar_prefetch = 0 : i64, scratch_operands = 0 : i64, tpu.core_type = #tpu.core_type<tc>, window_params = [{pipeline_mode = #tpu.pipeline_mode<synchronous>, transform_indices = @transform_0, window_bounds = array<i64: 2, 256>}, {pipeline_mode = #tpu.pipeline_mode<synchronous>, transform_indices = @transform_1, window_bounds = array<i64: 256, 256>}, {pipeline_mode = #tpu.pipeline_mode<synchronous>, transform_indices = @transform_2, window_bounds = array<i64: 1, 256>}, {transform_indices = @transform_3, window_bounds = array<i64: 256, 8192>}, {transform_indices = @transform_4, window_bounds = array<i64: 1, 8192>}, {transform_indices = @transform_5, window_bounds = array<i64: 1, 8192>}, {transform_indices = @transform_6, window_bounds = array<i64: 2, 8192>}]} {
    %c0 = arith.constant 0 : index
    %c0_0 = arith.constant 0 : index
    %0 = vector.load %arg1[%c0, %c0_0] : memref<2x256xf32, #tpu.memory_space<vmem>>, vector<2x256xf32>
    %c0_1 = arith.constant 0 : index
    %c0_2 = arith.constant 0 : index
    %1 = vector.load %arg2[%c0_1, %c0_2] : memref<256x256xf32, #tpu.memory_space<vmem>>, vector<256x256xf32>
    %cst = arith.constant dense<0.000000e+00> : vector<2x256xf32>
    %2 = tpu.matmul %0, %1, %cst {dimension_numbers = #tpu.dot_dimension_numbers<[1], [0], [0], [1], [0, 0, 1, 1], [], []>} : vector<2x256xf32>, vector<256x256xf32>, vector<2x256xf32> -> vector<2x256xf32>
    %c0_3 = arith.constant 0 : index
    %c0_4 = arith.constant 0 : index
    %3 = vector.load %arg3[%c0_3, %c0_4] : memref<1x256xf32, #tpu.memory_space<vmem>>, vector<1x256xf32>
    %4 = vector.broadcast %3 : vector<1x256xf32> to vector<2x256xf32>
    %5 = arith.addf %2, %4 : vector<2x256xf32>
    %6 = math.tanh %5 : vector<2x256xf32>
    %c0_5 = arith.constant 0 : index
    %c0_6 = arith.constant 0 : index
    %7 = vector.load %arg4[%c0_5, %c0_6] : memref<256x8192xi8, #tpu.memory_space<vmem>>, vector<256x8192xi8>
    %8 = arith.sitofp %7 : vector<256x8192xi8> to vector<256x8192xbf16>
    %9 = arith.truncf %6 : vector<2x256xf32> to vector<2x256xbf16>
    %cst_7 = arith.constant dense<0.000000e+00> : vector<2x8192xf32>
    %10 = tpu.matmul %9, %8, %cst_7 {dimension_numbers = #tpu.dot_dimension_numbers<[1], [0], [0], [1], [0, 0, 1, 1], [], []>} : vector<2x256xbf16>, vector<256x8192xbf16>, vector<2x8192xf32> -> vector<2x8192xf32>
    %c0_8 = arith.constant 0 : index
    %c0_9 = arith.constant 0 : index
    %11 = vector.load %arg5[%c0_8, %c0_9] : memref<1x8192xf32, #tpu.memory_space<vmem>>, vector<1x8192xf32>
    %12 = vector.broadcast %11 : vector<1x8192xf32> to vector<2x8192xf32>
    %13 = arith.mulf %10, %12 : vector<2x8192xf32>
    %c0_10 = arith.constant 0 : index
    %c0_11 = arith.constant 0 : index
    %14 = vector.load %arg6[%c0_10, %c0_11] : memref<1x8192xf32, #tpu.memory_space<vmem>>, vector<1x8192xf32>
    %15 = vector.broadcast %14 : vector<1x8192xf32> to vector<2x8192xf32>
    %16 = arith.addf %13, %15 : vector<2x8192xf32>
    %c0_12 = arith.constant 0 : index
    %c0_13 = arith.constant 0 : index
    %17 = vector.load %arg7[%c0_12, %c0_13] : memref<2x8192xf32, #tpu.memory_space<vmem>>, vector<2x8192xf32>
    tpu.vector_store %arg7[%c0_12, %c0_13], %16 {strides = array<i32>} : memref<2x8192xf32, #tpu.memory_space<vmem>>, vector<2x8192xf32>,
    return
  }
  func.func @transform_0(%arg0: i32) -> (i32, i32) {
    %c0_i32 = arith.constant 0 : i32
    %c0_i32_0 = arith.constant 0 : i32
    %c0_i32_1 = arith.constant 0 : i32
    return %c0_i32, %c0_i32_0 : i32, i32
  }
  func.func @transform_1(%arg0: i32) -> (i32, i32) {
    %c0_i32 = arith.constant 0 : i32
    %c0_i32_0 = arith.constant 0 : i32
    %c0_i32_1 = arith.constant 0 : i32
    return %c0_i32, %c0_i32_0 : i32, i32
  }
  func.func @transform_2(%arg0: i32) -> (i32, i32) {
    %c0_i32 = arith.constant 0 : i32
    %c0_i32_0 = arith.constant 0 : i32
    %c0_i32_1 = arith.constant 0 : i32
    return %c0_i32, %c0_i32_0 : i32, i32
  }
  func.func @transform_3(%arg0: i32) -> (i32, i32) {
    %c0_i32 = arith.constant 0 : i32
    %c0_i32_0 = arith.constant 0 : i32
    return %c0_i32, %arg0 : i32, i32
  }
  func.func @transform_4(%arg0: i32) -> (i32, i32) {
    %c0_i32 = arith.constant 0 : i32
    %c0_i32_0 = arith.constant 0 : i32
    return %c0_i32, %arg0 : i32, i32
  }
  func.func @transform_5(%arg0: i32) -> (i32, i32) {
    %c0_i32 = arith.constant 0 : i32
    %c0_i32_0 = arith.constant 0 : i32
    return %c0_i32, %arg0 : i32, i32
  }
  func.func @transform_6(%arg0: i32) -> (i32, i32) {
    %c0_i32 = arith.constant 0 : i32
    %c0_i32_0 = arith.constant 0 : i32
    return %c0_i32, %arg0 : i32, i32
  }
}

</mosaic_0001>

<bundles_post_ra>
// kernel: tpu_custom_call.1
= control target key start
LH: loop header
LB: loop body
LE: loop exit
PB: predicated region body
PF: predicated region fallthrough
CT: control target
= control target key end

     0   :  { %s6347_s0 = inlined_call_operand.hbm [shape: f32[2,256], index: 0, kind: input, shape index: {}]   ;;  %s6348_s1 = inlined_call_operand.hbm [shape: f32[256,256], index: 1, kind: input, shape index: {}]   ;;  %s6349_s2 = inlined_call_operand.hbm [shape: f32[1,256], index: 2, kind: input, shape index: {}]   ;;  %s6350_s3 = inlined_call_operand.hbm [shape: s8[256,16384], index: 3, kind: input, shape index: {}]   ;;  %s6351_s4 = inlined_call_operand.hbm [shape: f32[1,16384], index: 4, kind: input, shape index: {}]   ;;  %s6352_s5 = inlined_call_operand.hbm [shape: f32[1,16384], index: 5, kind: input, shape index: {}]   ;;  %s6353_s6 = inlined_call_operand.hbm [shape: f32[2,16384], index: 6, kind: output, shape index: {}]  }
   0x1   :  { %6368 = sst [smem:[#allocation21_spill]] %s6348_s1 }
   0x2   :  { %6369 = sst [smem:[#allocation22_spill]] %s6350_s3 }
   0x3   :  { %11 = vsyncpa [#allocation3], 0 }
   0x4   :  { %12 = vsyncpa [#allocation6], 0 }
   0x5   :  { %13 = vsyncpa [#allocation9], 0 }
   0x6   :  { %15 = vsyncpa [#allocation9 + $0x1], 0 }
   0x7   :  { %16 = vsyncpa [#allocation12], 0 }
   0x8   :  { %18 = vsyncpa [#allocation12 + $0x1], 0 }
   0x9   :  { %19 = vsyncpa [#allocation4], 0 }
   0xa   :  { %21 = vsyncpa [#allocation4 + $0x1], 0  ;;  %s5143_s21 = smov 0   ;;  %s5145_s22 = smov 0  }
   0xb   :  { %s5147_s23 = smov 0   ;;  %s5149_s24 = smov 0  }
   0xc LB: > { %s5164_s25 = sadd.s32 4294967295, %s5093_s24   ;;  %s4725_s26 = sadd.s32 4294967294, %s5093_s24   ;;  %s5093_s24 = sphi %s5149_s24, %s6397_s24   ;;  %s5089_s23 = sphi %s5147_s23, %s6401_s23   ;;  %s5085_s22 = sphi %s5145_s22, %s6400_s22   ;;  %s5081_s21 = sphi %s5143_s21, %s6399_s21  }
   0xd   : > { %s5168_s27 = sadd.s32 1, %s5093_s24   ;;  %s97_s28 = sadd.s32 1, %s5089_s23 }
   0xe   : > { %6370 = sst [smem:[#allocation19_spill]] %s5168_s27  ;;  %s94_s29 = ssub.s32 %s5093_s24, %s5168_s27 }
   0xf   : > { %p104_p0 = scmp.ne.s32.totalorder %s5089_s23, %s5085_s22  ;;  %p95_p1 = scmp.eq.s32.totalorder %s94_s29, 0 }
  0x10   : > { %p105_p2 = scmp.eq.s32.totalorder %s5093_s24, 0  ;;  %p110_p3 = scmp.ne.s32.totalorder %s5085_s22, %s5081_s21 }
  0x11   : > { %p6358_p4 = scmp.eq.s32.totalorder %s5164_s25, 0  ;;  %p186_p7 = scmp.eq.s32.totalorder %s5164_s25, 1 }
  0x12   : > { %s5180_s30 = scalar_select %p95_p1, %s5089_s23, %s97_s28  }
  0x13   : > { %p5182_p5 = por %p105_p2, %p104_p0  ;;  %p5188_p6 = por %p6358_p4, %p110_p3 }
  0x14   : > { %6371 = sst [smem:[#allocation20_spill]] %s5180_s30  ;;  %p192_p8 = scmp.eq.s32.totalorder %s4725_s26, 1 }
  0x15   : > { %s6373_s8 = scalar_select %p5188_p6, 1, 0 }
  0x16   : > { %p4726_p9 = scmp.ge.s32.totalorder %s5093_s24, 1  ;;  %p199_p10 = scmp.lt.s32.totalorder %s5093_s24, 3 }
  0x17   : > { %p5195_p11 = por %p186_p7, %p104_p0  ;;  %p5199_p12 = por %p192_p8, %p110_p3 }
  0x18   : > { %p5203_p13 = pnand %p4726_p9, %p199_p10  ;;  %s5095_s12 = smov [#allocation5]  }
  0x19   : > { %s6374_s9 = scalar_select %p5195_p11, 1, 0 }
  0x1a   : > { %s6375_s10 = scalar_select %p5199_p12, 1, 0 }
  0x1b   : > { %s6376_s11 = scalar_select %p5203_p13, 1, 0 }
  0x1c   : > { %p4778_p1 = pneg %p5203_p13  ;;  %s222_s13 = sshll.u32 %s5095_s12, 4  ;;  %s223_s13 = int_to_ptr.vmem [resolvable:$true] %s222_s13 }
  0x1d   : > { %p4805_p3 = scmp.lt.s32.totalorder %s5093_s24, 2  ;;  %s247_s15 = sand.u32 1, %s5093_s24  }
  0x1e   : > { %p5211_p2 = pnand %p4778_p1, %p6358_p4  ;;  %s4866_s16 = scalar_lea.vmem %s223_s13, 8192 }
  0x1f   : > { %p4867_p8 = scmp.ne.s32.totalorder %s223_s13, %s4866_s16  ;;  %p4874_p12 = scmp.lt.s32.totalorder %s223_s13, %s223_s13 }
  0x20   : > { %s6377_s14 = scalar_select %p5211_p2, 1, 0 }
  0x21   : > { %p6359_p7 = pneg %p5211_p2  ;;  %p4875_p11 = scmp.lt.s32.totalorder %s4866_s16, %s4866_s16 }
  0x23   : > { %p4869_p9 = pnand %p4867_p8, %p6359_p7  ;;  %p4876_p6 = por %p4875_p11, %p4874_p12 }
  0x25   : > { %p4870_p10 = pneg %p4869_p9 }
  0x27   : > { %p4877_p1 = pnand %p4876_p6, %p4870_p10 }
  0x29   : > { %4880 = shalt.err (!%p4877_p1)
}
  0x2a   : > { %s5096_s17 = smov 256   ;;  %s5097_s18 = smov 16  }
  0x2b   : > { %s6378_s1 = sld [smem:[#allocation21_spill]]  ;;  %p5232_p8 = pnand %p4805_p3, %p5182_p5 }
  0x2c   : > { %s5237_s28 = sand.u32 1, %s5089_s23   ;;  %s4754_s12 = sshll.u32 %s5093_s24, 13 }
  0x2d   : > { %s6379_s26 = scalar_select %p5232_p8, 1, 0 }
  0x2e   : > { %s4731_s29 = sshll.u32 %s5237_s28, 12  ;;  %s6380_s3 = sld [smem:[#allocation22_spill]] }
  0x2f   : > { %s251_s7 = scalar_lea.vmem [#allocation8], %s4731_s29  ;;  %p5254_p6 = pneg %p5232_p8 }
  0x31   : > { %4784 = dma.hbm_to_vmem [thread:$0]  (!%p5211_p2), %s6378_s1, 8192, %s223_s13, [#allocation6], %s5096_s17, %s5096_s17, %s5097_s18  }
  0x32   : > { %s258_s13 = sshll.u32 %s251_s7, 4  ;;  %s5248_s17 = scalar_lea.sflag [#allocation9], %s247_s15  ;;  %s5246_s13 = int_to_ptr.vmem [resolvable:$true] %s258_s13 }
  0x33   : > { %s6381_s19 = scalar_select %p5254_p6, 1, 0 }
  0x34   : > { %s5244_s27 = scalar_lea.hbm %s6380_s3, %s4754_s12  ;;  %s4886_s29 = scalar_lea.hbm %s6380_s3, 131072 }
  0x35   : > { %s4881_s18 = scalar_lea.hbm %s5244_s27, 65536  ;;  %p4887_p3 = scmp.lt.s32.totalorder %s5244_s27, %s6380_s3 }
  0x36   : > { %p4882_p5 = scmp.ne.s32.totalorder %s5244_s27, %s4881_s18  ;;  %p4888_p9 = scmp.lt.s32.totalorder %s4886_s29, %s4881_s18 }
  0x38   : > { %p4884_p11 = pnand %p5254_p6, %p4882_p5  ;;  %p4889_p10 = por %p4888_p9, %p4887_p3 }
  0x3a   : > { %p4885_p12 = pneg %p4884_p11 }
  0x3c   : > { %p4890_p1 = pnand %p4889_p10, %p4885_p12 }
  0x3e   : > { %4893 = shalt.err (!%p4890_p1)
}
  0x3f   : > { %s4894_s15 = scalar_lea.vmem %s5246_s13, 65536  ;;  %s5098_s7 = smov [#allocation8]  }
  0x40   : > { %p4895_p0 = scmp.ne.s32.totalorder %s5246_s13, %s4894_s15  ;;  %s4899_s30 = sshll.u32 %s5098_s7, 4  ;;  %s4900_s30 = int_to_ptr.vmem [resolvable:$false] %s4899_s30 }
  0x41   : > { %s4901_s20 = scalar_lea.vmem %s4900_s30, 131072  ;;  %p4902_p4 = scmp.lt.s32.totalorder %s5246_s13, %s4900_s30 }
  0x42   : > { %p4897_p5 = pnand %p4895_p0, %p5254_p6  ;;  %p4903_p7 = scmp.lt.s32.totalorder %s4901_s20, %s4894_s15 }
  0x44   : > { %p4898_p11 = pneg %p4897_p5  ;;  %p4904_p13 = por %p4903_p7, %p4902_p4 }
  0x46   : > { %p4905_p2 = pnand %p4904_p13, %p4898_p11 }
  0x48   : > { %4908 = shalt.err (!%p4905_p2)
}
  0x49   : > { %s5099_s18 = smov 16384   ;;  %s5100_s29 = smov 8192  }
  0x4a   : > { %s5101_s12 = smov 512   ;;  %s5102_s16 = smov [#allocation2]  }
  0x4b   : > { %4791 = dma.hbm_to_vmem [thread:$0]  (!%p5232_p8), %s5244_s27, 65536, %s5246_s13, %s5248_s17, %s5099_s18, %s5100_s29, %s5101_s12  }
  0x4c   : > { %s212_s1 = sshll.u32 %s5102_s16, 4  ;;  %s5103_s7 = smov [#allocation7]   ;;  %s213_s1 = int_to_ptr.vmem [resolvable:$true] %s212_s1 }
  0x4d   : > { %s236_s3 = sshll.u32 %s5103_s7, 4  ;;  %s4920_s15 = scalar_lea.vmem %s213_s1, 64  ;;  %s237_s3 = int_to_ptr.vmem [resolvable:$true] %s236_s3 }
  0x4e   : > { %p4921_p4 = scmp.ne.s32.totalorder %s213_s1, %s4920_s15  ;;  %p6382_p13 = scmp.ne.s32.totalorder %s6377_s14, 0 }
  0x4f   : > { %p4928_p12 = scmp.lt.s32.totalorder %s213_s1, %s213_s1  ;;  %p4929_p3 = scmp.lt.s32.totalorder %s4920_s15, %s4920_s15 }
  0x50   : > { %p6383_p2 = pneg %p6382_p13 }
  0x51   : > { %p4930_p9 = por %p4929_p3, %p4928_p12 }
  0x52   : > { %p4923_p0 = pnand %p4921_p4, %p6383_p2 }
  0x54   : > { %p4924_p7 = pneg %p4923_p0 }
  0x56   : > { %p4931_p10 = pnand %p4930_p9, %p4924_p7 }
  0x58   : > { %4934 = shalt.err (!%p4931_p10)
}
  0x59   : > { %4781 = dma.hbm_to_vmem [thread:$0]  (!%p6382_p13), %s6347_s0, 64, %s213_s1, [#allocation3]  }
  0x5a   : > { %s4946_s30 = scalar_lea.vmem %s237_s3, 32  ;;  %p6384_p5 = pmov %p6383_p2 }
  0x5b   : > { %p4947_p1 = scmp.ne.s32.totalorder %s237_s3, %s4946_s30  ;;  %p4954_p4 = scmp.lt.s32.totalorder %s237_s3, %s237_s3 }
  0x5c   : > { %p4955_p2 = scmp.lt.s32.totalorder %s4946_s30, %s4946_s30 }
  0x5d   : > { %p4949_p11 = pnand %p4947_p1, %p6384_p5 }
  0x5e   : > { %p4956_p0 = por %p4955_p2, %p4954_p4 }
  0x5f   : > { %p4950_p8 = pneg %p4949_p11 }
  0x61   : > { %p4957_p6 = pnand %p4956_p0, %p4950_p8 }
  0x63   : > { %4960 = shalt.err (!%p4957_p6)
}
  0x64   : > { %4787 = dma.hbm_to_vmem [thread:$0]  (!%p6382_p13), %s6349_s2, 32, %s237_s3, [#allocation6]  }
  0x65   : > { %s6367_s1 = sshll.u32 %s5237_s28, 6  ;;  %s4755_s29 = sshll.u32 %s5093_s24, 10 }
  0x66   : > { %s278_s7 = scalar_lea.hbm %s6351_s4, %s4755_s29  ;;  %s272_s15 = scalar_lea.vmem [#allocation10], %s6367_s1 }
  0x67   : > { %s280_s27 = sshll.u32 %s272_s15, 4  ;;  %s4961_s14 = scalar_lea.hbm %s278_s7, 1024  ;;  %s281_s27 = int_to_ptr.vmem [resolvable:$true] %s280_s27 }
  0x68   : > { %p4962_p8 = scmp.ne.s32.totalorder %s278_s7, %s4961_s14  ;;  %p6385_p6 = scmp.ne.s32.totalorder %s6381_s19, 0 }
  0x69   : > { %s4966_s3 = scalar_lea.hbm %s6351_s4, 2048  ;;  %p4967_p13 = scmp.lt.s32.totalorder %s278_s7, %s6351_s4 }
  0x6a   : > { %p4964_p7 = pnand %p4962_p8, %p6385_p6  ;;  %p4968_p3 = scmp.lt.s32.totalorder %s4966_s3, %s4961_s14 }
  0x6c   : > { %p4965_p12 = pneg %p4964_p7  ;;  %p4969_p9 = por %p4968_p3, %p4967_p13 }
  0x6e   : > { %p4970_p10 = pnand %p4969_p9, %p4965_p12 }
  0x70   : > { %4973 = shalt.err (!%p4970_p10)
}
  0x71   : > { %s4974_s12 = scalar_lea.vmem %s281_s27, 1024  ;;  %s5104_s16 = smov [#allocation10]  }
  0x72   : > { %p4975_p1 = scmp.ne.s32.totalorder %s281_s27, %s4974_s12  ;;  %s4979_s15 = sshll.u32 %s5104_s16, 4  ;;  %s4980_s15 = int_to_ptr.vmem [resolvable:$false] %s4979_s15 }
  0x73   : > { %s4981_s1 = scalar_lea.vmem %s4980_s15, 2048  ;;  %p4982_p4 = scmp.lt.s32.totalorder %s281_s27, %s4980_s15 }
  0x74   : > { %p4977_p5 = pnand %p4975_p1, %p6385_p6  ;;  %p4983_p2 = scmp.lt.s32.totalorder %s4981_s1, %s4974_s12 }
  0x76   : > { %p4978_p11 = pneg %p4977_p5  ;;  %p4984_p0 = por %p4983_p2, %p4982_p4 }
  0x78   : > { %p4985_p8 = pnand %p4984_p0, %p4978_p11 }
  0x7a   : > { %4988 = shalt.err (!%p4985_p8)
}
  0x7b   : > { %p6386_p7 = scmp.ne.s32.totalorder %s6379_s26, 0  ;;  %s5320_s30 = scalar_lea.hbm %s6352_s5, %s4755_s29 }
  0x7c   : > { %s6387_s3 = sshll.u32 %s5237_s28, 6  ;;  %s288_s18 = scalar_lea.sflag [#allocation12], %s5237_s28 }
  0x7d   : > { %4794 = dma.hbm_to_vmem [thread:$0]  (!%p6386_p7), %s278_s7, 1024, %s281_s27, %s5248_s17  }
  0x7e   : > { %s291_s1 = scalar_lea.vmem [#allocation11], %s6387_s3  ;;  %s4989_s12 = scalar_lea.hbm %s5320_s30, 1024 }
  0x7f   : > { %s299_s20 = sshll.u32 %s291_s1, 4  ;;  %p4990_p12 = scmp.ne.s32.totalorder %s5320_s30, %s4989_s12  ;;  %s300_s20 = int_to_ptr.vmem [resolvable:$true] %s299_s20 }
  0x80   : > { %s4994_s27 = scalar_lea.hbm %s6352_s5, 2048  ;;  %p4995_p9 = scmp.lt.s32.totalorder %s5320_s30, %s6352_s5 }
  0x81   : > { %p4992_p13 = pnand %p4990_p12, %p6385_p6  ;;  %p4996_p10 = scmp.lt.s32.totalorder %s4994_s27, %s4989_s12 }
  0x83   : > { %p4993_p3 = pneg %p4992_p13  ;;  %p4997_p1 = por %p4996_p10, %p4995_p9 }
  0x85   : > { %p4998_p5 = pnand %p4997_p1, %p4993_p3 }
  0x87   : > { %5001 = shalt.err (!%p4998_p5)
}
  0x88   : > { %s5002_s15 = scalar_lea.vmem %s300_s20, 1024  ;;  %s5105_s28 = smov [#allocation11]  }
  0x89   : > { %p5003_p11 = scmp.ne.s32.totalorder %s300_s20, %s5002_s15  ;;  %s5007_s14 = sshll.u32 %s5105_s28, 4  ;;  %s5008_s14 = int_to_ptr.vmem [resolvable:$false] %s5007_s14 }
  0x8a   : > { %s5009_s13 = scalar_lea.vmem %s5008_s14, 2048  ;;  %p5010_p0 = scmp.lt.s32.totalorder %s300_s20, %s5008_s14 }
  0x8b   : > { %p5005_p4 = pnand %p5003_p11, %p6385_p6  ;;  %p5011_p8 = scmp.lt.s32.totalorder %s5009_s13, %s5002_s15 }
  0x8d   : > { %p5006_p2 = pneg %p5005_p4  ;;  %p5012_p12 = por %p5011_p8, %p5010_p0 }
  0x8f   : > { %p5013_p13 = pnand %p5012_p12, %p5006_p2 }
  0x91   : > { %5016 = shalt.err (!%p5013_p13)
}
  0x92   : > { %4797 = dma.hbm_to_vmem [thread:$0]  (!%p6386_p7), %s5320_s30, 1024, %s300_s20, %s288_s18  }
  0x93   : > { %p6388_p3 = scmp.ne.s32.totalorder %s6376_s11, 0 }
  0x94   : > { %p6389_p9 = scmp.eq.s32.totalorder (!%p6388_p3), %s5164_s25, 0 }
  0x95   : > { %308 = sbr.rel (%p6388_p3) target bundleno = 1625 (0x659), region = 44 }
  0x9a   : > { %5060 = dma.done.wait (%p6389_p9), [#allocation3], 64   ;;  %p6390_p6 = pmov %p6389_p9 }
  0x9c   : > { %5062 = vsyncadd (%p6390_p6), [#allocation3], 4294967232  ;;  %p6391_p10 = pmov %p6390_p6 }
  0x9d   : > { %p6392_p1 = pmov %p6390_p6 }
  0x9e   : > { %5064 = dma.done.wait (%p6391_p10), [#allocation6], 8224  }
  0x9f   : > { %5066 = vsyncadd (%p6392_p1), [#allocation6], 4294959072  ;;  %s322_s26 = sand.u32 1, %s5164_s25   ;;  %s5353_s19 = sand.u32 1, %s5085_s22  }
  0xa0   : > { %s4744_s11 = sshll.u32 %s5353_s19, 12  ;;  %s323_s30 = scalar_lea.sflag [#allocation9], %s322_s26 }
  0xa1   : > { %s5356_s3 = scalar_lea.vmem [#allocation8], %s4744_s11  ;;  %p6393_p7 = scmp.ne.s32.totalorder %s6373_s8, 0 }
  0xa3   : > { %5068 = dma.done.wait (%p6393_p7), %s323_s30, 66560  }
  0xa4   : > { %5070 = vsyncadd (%p6393_p7), %s323_s30, 4294900736  ;;  %s4745_s1 = sshll.u32 %s5353_s19, 6  ;;  %s341_s18 = scalar_lea.sflag [#allocation12], %s5353_s19 }
  0xa5   : > { %s5363_s20 = scalar_lea.vmem [#allocation10], %s4745_s1  ;;  %s5366_s12 = scalar_lea.vmem [#allocation11], %s4745_s1 }
  0xa6   : > { %5072 = dma.done.wait (%p6393_p7), %s341_s18, 1024  }
  0xa7   : > { %5074 = vsyncadd (%p6393_p7), %s341_s18, 4294966272  ;;  %v419_v0 = vld [vmem:[#allocation5 + $0xf8] sm:$0xff]  ;;  %v418_v1 = vld [vmem:[#allocation5 + $0xf0] sm:$0xff]  ;;  %s4747_s8 = sshll.u32 %s5353_s19, 7  ;;  %s4757_s7 = sshll.u32 %s5164_s25, 11 }
  0xa8   : > { %v417_v2 = vld [vmem:[#allocation5 + $0xe8] sm:$0xff]  ;;  %475 = vmatprep.subr.mxu0 %v419_v0  ;;  %v416_v3 = vld [vmem:[#allocation5 + $0xe0] sm:$0xff]  ;;  %v415_v4 = vld [vmem:[#allocation5 + $0xd8] sm:$0xff]  ;;  %s5591_s17 = scalar_lea.vmem [#allocation13], %s4747_s8  ;;  %s4579_s15 = scalar_lea.hbm %s6353_s6, %s4757_s7 }
  0xa9   : > { %476 = vmatpush1.msra.mxu0 %v418_v1  ;;  %v414_v5 = vld [vmem:[#allocation5 + $0xd0] sm:$0xff]  ;;  %v413_v6 = vld [vmem:[#allocation5 + $0xc8] sm:$0xff]  ;;  %v412_v7 = vld [vmem:[#allocation5 + $0xc0] sm:$0xff]  ;;  %s4581_s27 = sshll.u32 %s5591_s17, 4  ;;  %s4567_s28 = scalar_lea.sflag [#allocation4], %s5353_s19  ;;  %s4582_s27 = int_to_ptr.vmem [resolvable:$true] %s4581_s27 }
  0xaa   : > { %477 = vmatprep.subr.mxu0 %v417_v2  ;;  %v411_v8 = vld [vmem:[#allocation5 + $0xb8] sm:$0xff]  ;;  %v410_v9 = vld [vmem:[#allocation5 + $0xb0] sm:$0xff]  ;;  %v409_v10 = vld [vmem:[#allocation5 + $0xa8] sm:$0xff]  ;;  %s5017_s14 = scalar_lea.vmem %s4582_s27, 2048  ;;  %p6394_p11 = scmp.ne.s32.totalorder %s6374_s9, 0 }
  0xab   : > { %478 = vmatpush1.msra.mxu0 %v416_v3  ;;  %v408_v11 = vld [vmem:[#allocation5 + $0xa0] sm:$0xff]  ;;  %v407_v12 = vld [vmem:[#allocation5 + $0x98] sm:$0xff]  ;;  %v406_v13 = vld [vmem:[#allocation5 + $0x90] sm:$0xff]  ;;  %p5018_p5 = scmp.ne.s32.totalorder %s4582_s27, %s5017_s14  ;;  %s5107_s13 = smov [#allocation13]  }
  0xac   : > { %479 = vmatprep.subr.mxu0 %v415_v4  ;;  %v405_v14 = vld [vmem:[#allocation5 + $0x88] sm:$0xff]  ;;  %v404_v15 = vld [vmem:[#allocation5 + $0x80] sm:$0xff]  ;;  %v403_v16 = vld [vmem:[#allocation5 + $0x78] sm:$0xff]  ;;  %s5021_s26 = sshll.u32 %s5107_s13, 4  ;;  %s5022_s26 = int_to_ptr.vmem [resolvable:$false] %s5021_s26 }
  0xad   : > { %480 = vmatpush1.msra.mxu0 %v414_v5  ;;  %v402_v17 = vld [vmem:[#allocation5 + $0x70] sm:$0xff]  ;;  %v401_v18 = vld [vmem:[#allocation5 + $0x68] sm:$0xff]  ;;  %v400_v19 = vld [vmem:[#allocation5 + $0x60] sm:$0xff]  ;;  %p5019_p4 = pnand %p5018_p5, %p6394_p11  ;;  %s5023_s25 = scalar_lea.vmem %s5022_s26, 4096 }
  0xae   : > { %481 = vmatprep.subr.mxu0 %v413_v6  ;;  %v399_v20 = vld [vmem:[#allocation5 + $0x58] sm:$0xff]  ;;  %v398_v21 = vld [vmem:[#allocation5 + $0x50] sm:$0xff]  ;;  %v397_v22 = vld [vmem:[#allocation5 + $0x48] sm:$0xff]  ;;  %p5024_p0 = scmp.lt.s32.totalorder %s4582_s27, %s5022_s26  ;;  %p5025_p8 = scmp.lt.s32.totalorder %s5023_s25, %s5017_s14 }
  0xaf   : > { %482 = vmatpush1.msra.mxu0 %v412_v7  ;;  %v396_v23 = vld [vmem:[#allocation5 + $0x40] sm:$0xff]  ;;  %v5372_v24 = vld.sshfl [vmem:[#allocation2] sm:$0x33 pattern:$0x76325410]  ;;  %v741_v25 = vld [vmem:[%s5356_s3 + $0x608] sm:$0xff]  ;;  %p5020_p2 = pneg %p5019_p4 }
  0xb0   : > { %483 = vmatprep.subr.mxu0 %v411_v8  ;;  %v395_v26 = vld [vmem:[#allocation5 + $0x38] sm:$0xff]  ;;  %v472_v27 = vcombine.high %v5372_v24, %v5372_v24  ;;  %v1509_v28 = vunpack.c.h.s8.bf16 %v741_v25  ;;  %v740_v29 = vld [vmem:[%s5356_s3 + $0x600] sm:$0xff]  ;;  %v394_v30 = vld [vmem:[#allocation5 + $0x30] sm:$0xff]  ;;  %v1445_v31 = vunpack.c.l.s8.bf16 %v741_v25  ;;  %p5026_p12 = por %p5025_p8, %p5024_p0 }
  0xb1   : > { %484 = vmatpush1.msra.mxu0 %v410_v9  ;;  %v1508_v32 = vunpack.c.h.s8.bf16 %v740_v29  ;;  %v393_v33 = vld [vmem:[#allocation5 + $0x28] sm:$0xff]  ;;  %v392_v35 = vld [vmem:[#allocation5 + $0x20] sm:$0xff]  ;;  %v391_v36 = vld [vmem:[#allocation5 + $0x18] sm:$0xff]  ;;  %v1444_v37 = vunpack.c.l.s8.bf16 %v740_v29 }
  0xb2   : > { %485 = vmatprep.subr.mxu0 %v409_v10  ;;  %539 = vmatprep.mubr.f32.mxu0 %v472_v27  ;;  %v677_v34 = vld [vmem:[%s5356_s3 + $0x408] sm:$0xff]  ;;  %v676_v40 = vld [vmem:[%s5356_s3 + $0x400] sm:$0xff]  ;;  %v451_v43 = vld [vmem:[#allocation5 + $0x1f8] sm:$0xff]  ;;  %p5027_p13 = pnand %p5026_p12, %p5020_p2 }
  0xb3   : > { %486 = vmatpush1.msra.mxu0 %v408_v11  ;;  %2086 = vmatprep.subr.bf16.mxu1 %v1509_v28  ;;  %v390_v38 = vld [vmem:[#allocation5 + $0x10] sm:$0xff]  ;;  %v1381_v39 = vunpack.c.h.s8.bf16 %v677_v34  ;;  %v389_v41 = vld [vmem:[#allocation5 + $0x8] sm:$0xff]  ;;  %v388_v42 = vld [vmem:[#allocation5] sm:$0xff]  ;;  %v1380_v44 = vunpack.c.h.s8.bf16 %v676_v40  ;;  %v1317_v46 = vunpack.c.l.s8.bf16 %v677_v34  ;;  %v1316_v51 = vunpack.c.l.s8.bf16 %v676_v40 }
  0xb4   : > { %487 = vmatprep.subr.mxu0 %v407_v12  ;;  %2087 = vmatpush1.bf16.msra.mxu1 %v1508_v32  ;;  %v450_v45 = vld [vmem:[#allocation5 + $0x1f0] sm:$0xff]  ;;  %v449_v47 = vld [vmem:[#allocation5 + $0x1e8] sm:$0xff]  ;;  %v448_v49 = vld [vmem:[#allocation5 + $0x1e0] sm:$0xff] }
  0xb5   : > { %488 = vmatpush1.msra.mxu0 %v406_v13  ;;  %2088 = vmatprep.subr.bf16.mxu1 %v1445_v31  ;;  %v613_v48 = vld [vmem:[%s5356_s3 + $0x208] sm:$0xff]  ;;  %v447_v50 = vld [vmem:[#allocation5 + $0x1d8] sm:$0xff]  ;;  %v612_v54 = vld [vmem:[%s5356_s3 + $0x200] sm:$0xff] }
  0xb6   : > { %489 = vmatprep.subr.mxu0 %v405_v14  ;;  %v446_v52 = vld [vmem:[#allocation5 + $0x1d0] sm:$0xff]  ;;  %v1253_v53 = vunpack.c.h.s8.bf16 %v613_v48  ;;  %v445_v55 = vld [vmem:[#allocation5 + $0x1c8] sm:$0xff]  ;;  %v444_v56 = vld [vmem:[#allocation5 + $0x1c0] sm:$0xff]  ;;  %v1252_v58 = vunpack.c.h.s8.bf16 %v612_v54  ;;  %v1189_v60 = vunpack.c.l.s8.bf16 %v613_v48  ;;  %v1188_v1 = vunpack.c.l.s8.bf16 %v612_v54 }
  0xb7   : > { %490 = vmatpush1.msra.mxu0 %v404_v15  ;;  %v443_v57 = vld [vmem:[#allocation5 + $0x1b8] sm:$0xff]  ;;  %v442_v59 = vld [vmem:[#allocation5 + $0x1b0] sm:$0xff]  ;;  %v441_v61 = vld [vmem:[#allocation5 + $0x1a8] sm:$0xff] }
  0xb8   : > { %491 = vmatprep.subr.mxu0 %v403_v16  ;;  %2089 = vmatpush1.bf16.msra.mxu1 %v1444_v37  ;;  %v549_v62 = vld [vmem:[%s5356_s3 + $0x8] sm:$0xff]  ;;  %v440_v63 = vld [vmem:[#allocation5 + $0x1a0] sm:$0xff]  ;;  %v439_v0 = vld [vmem:[#allocation5 + $0x198] sm:$0xff] }
  0xb9   : > { %492 = vmatpush1.msra.mxu0 %v402_v17  ;;  %2090 = vmatprep.subr.bf16.mxu1 %v1381_v39  ;;  %v438_v2 = vld [vmem:[#allocation5 + $0x190] sm:$0xff]  ;;  %v1125_v3 = vunpack.c.h.s8.bf16 %v549_v62  ;;  %v548_v4 = vld [vmem:[%s5356_s3] sm:$0xff]  ;;  %v435_v7 = vld [vmem:[#allocation5 + $0x178] sm:$0xff]  ;;  %v1061_v10 = vunpack.c.l.s8.bf16 %v549_v62 }
  0xba   : > { %493 = vmatprep.subr.mxu0 %v401_v18  ;;  %v437_v5 = vld [vmem:[#allocation5 + $0x188] sm:$0xff]  ;;  %v436_v6 = vld [vmem:[#allocation5 + $0x180] sm:$0xff]  ;;  %v1124_v8 = vunpack.c.h.s8.bf16 %v548_v4  ;;  %v434_v9 = vld [vmem:[#allocation5 + $0x170] sm:$0xff]  ;;  %v1060_v15 = vunpack.c.l.s8.bf16 %v548_v4 }
  0xbb   : > { %494 = vmatpush1.msra.mxu0 %v400_v19  ;;  %v433_v11 = vld [vmem:[#allocation5 + $0x168] sm:$0xff]  ;;  %v432_v13 = vld [vmem:[#allocation5 + $0x160] sm:$0xff]  ;;  %v431_v14 = vld [vmem:[#allocation5 + $0x158] sm:$0xff] }
  0xbc   : > { %495 = vmatprep.subr.mxu0 %v399_v20  ;;  %2091 = vmatpush1.bf16.msra.mxu1 %v1380_v44  ;;  %v997_v12 = vld [vmem:[%s5356_s3 + $0xe08] sm:$0xff]  ;;  %v996_v18 = vld [vmem:[%s5356_s3 + $0xe00] sm:$0xff]  ;;  %v423_v29 = vld [vmem:[#allocation5 + $0x118] sm:$0xff] }
  0xbd   : > { %496 = vmatpush1.msra.mxu0 %v398_v21  ;;  %2092 = vmatprep.subr.bf16.mxu1 %v1317_v46  ;;  %v430_v16 = vld [vmem:[#allocation5 + $0x150] sm:$0xff]  ;;  %v2021_v17 = vunpack.c.h.s8.bf16 %v997_v12  ;;  %v429_v19 = vld [vmem:[#allocation5 + $0x148] sm:$0xff]  ;;  %v428_v20 = vld [vmem:[#allocation5 + $0x140] sm:$0xff]  ;;  %v1957_v25 = vunpack.c.l.s8.bf16 %v997_v12  ;;  %v1956_v31 = vunpack.c.l.s8.bf16 %v996_v18 }
  0xbe   : > { %497 = vmatprep.subr.mxu0 %v397_v22  ;;  %v427_v21 = vld [vmem:[#allocation5 + $0x138] sm:$0xff]  ;;  %v2020_v22 = vunpack.c.h.s8.bf16 %v996_v18  ;;  %v5387_v27 = vld [vmem:[%s5356_s3 + $0xc08] sm:$0xff]  ;;  %v424_v28 = vld [vmem:[#allocation5 + $0x120] sm:$0xff] }
  0xbf   : > { %498 = vmatpush1.msra.mxu0 %v396_v23  ;;  %v426_v23 = vld [vmem:[#allocation5 + $0x130] sm:$0xff]  ;;  %v1893_v34 = vunpack.c.h.s8.bf16 %v5387_v27  ;;  %v420_v37 = vld [vmem:[#allocation5 + $0x100] sm:$0xff] }
  0xc0   : > { %499 = vmatprep.subr.mxu0 %v395_v26  ;;  %2093 = vmatpush1.bf16.msra.mxu1 %v1316_v51  ;;  %v425_v26 = vld [vmem:[#allocation5 + $0x128] sm:$0xff]  ;;  %v422_v32 = vld [vmem:[#allocation5 + $0x110] sm:$0xff]  ;;  %v615_v48 = vld [vmem:[%s5356_s3 + $0x218] sm:$0xff] }
  0xc1   : > { %500 = vmatpush1.msra.mxu0 %v394_v30  ;;  %2094 = vmatprep.subr.bf16.mxu1 %v1253_v53  ;;  %v743_v30 = vld [vmem:[%s5356_s3 + $0x618] sm:$0xff]  ;;  %v998_v62 = vld [vmem:[%s5356_s3 + $0xe10] sm:$0xff] }
  0xc2   : > { %501 = vmatprep.subr.mxu0 %v393_v33  ;;  %v742_v33 = vld [vmem:[%s5356_s3 + $0x610] sm:$0xff]  ;;  %v551_v53 = vld [vmem:[%s5356_s3 + $0x18] sm:$0xff] }
  0xc3   : > { %502 = vmatpush1.msra.mxu0 %v392_v35  ;;  %v5393_v35 = vld [vmem:[%s5356_s3 + $0xc00] sm:$0xff]  ;;  %v1510_v39 = vunpack.c.h.s8.bf16 %v742_v33  ;;  %v934_v4 = vld [vmem:[%s5356_s3 + $0xc10] sm:$0xff] }
  0xc4   : > { %503 = vmatprep.subr.mxu0 %v391_v36  ;;  %2095 = vmatpush1.bf16.msra.mxu1 %v1252_v58  ;;  %v421_v36 = vld [vmem:[#allocation5 + $0x108] sm:$0xff]  ;;  %v1892_v40 = vunpack.c.h.s8.bf16 %v5393_v35  ;;  %v1063_v58 = vunpack.c.l.s8.bf16 %v551_v53 }
  0xc5   : > { %504 = vmatpush1.msra.mxu0 %v390_v38  ;;  %2096 = vmatprep.subr.bf16.mxu1 %v1189_v60  ;;  %v1511_v38 = vunpack.c.h.s8.bf16 %v743_v30 }
  0xc6   : > { %505 = vmatprep.subr.mxu0 %v389_v41  ;;  %v1447_v41 = vunpack.c.l.s8.bf16 %v743_v30 }
  0xc7   : > { %506 = vmatpush1.msra.mxu0 %v388_v42  ;;  %v679_v42 = vld [vmem:[%s5356_s3 + $0x418] sm:$0xff] }
  0xc8   : > { %507 = vmatprep.subr.mxu0 %v451_v43  ;;  %2097 = vmatpush1.bf16.msra.mxu1 %v1188_v1  ;;  %v1446_v43 = vunpack.c.l.s8.bf16 %v742_v33  ;;  %v1383_v44 = vunpack.c.h.s8.bf16 %v679_v42  ;;  %v935_v1 = vld [vmem:[%s5356_s3 + $0xc18] sm:$0xff] }
  0xc9   : > { %508 = vmatpush2.msra.mxu0 %v450_v45  ;;  %2098 = vmatprep.subr.bf16.mxu1 %v1125_v3  ;;  %v678_v45 = vld [vmem:[%s5356_s3 + $0x410] sm:$0xff]  ;;  %v1895_v3 = vunpack.c.h.s8.bf16 %v935_v1 }
  0xca   : > { %509 = vmatprep.subr.mxu0 %v449_v47  ;;  %v1382_v46 = vunpack.c.h.s8.bf16 %v678_v45  ;;  %v1319_v47 = vunpack.c.l.s8.bf16 %v679_v42  ;;  %v452_v42 = vld [vmem:[#allocation7] sm:$0x3] }
  0xcb   : > { %510 = vmatpush2.msra.mxu0 %v448_v49  ;;  %v1318_v49 = vunpack.c.l.s8.bf16 %v678_v45 }
  0xcc   : > { %511 = vmatprep.subr.mxu0 %v447_v50  ;;  %2099 = vmatpush1.bf16.msra.mxu1 %v1124_v8  ;;  %v1255_v50 = vunpack.c.h.s8.bf16 %v615_v48  ;;  %v1828_v8 = vunpack.c.l.s8.bf16 %v5393_v35  ;;  %v745_v35 = vld [vmem:[%s5356_s3 + $0x628] sm:$0xff] }
  0xcd   : > { %512 = vmatpush2.msra.mxu0 %v446_v52  ;;  %2100 = vmatprep.subr.bf16.mxu1 %v1061_v10  ;;  %v1191_v52 = vunpack.c.l.s8.bf16 %v615_v48  ;;  %v869_v10 = vld [vmem:[%s5356_s3 + $0xa08] sm:$0xff] }
  0xce   : > { %513 = vmatprep.subr.mxu0 %v445_v55  ;;  %v1127_v55 = vunpack.c.h.s8.bf16 %v551_v53  ;;  %v1765_v12 = vunpack.c.h.s8.bf16 %v869_v10  ;;  %v1701_v18 = vunpack.c.l.s8.bf16 %v869_v10 }
  0xcf   : > { %514 = vmatpush2.msra.mxu0 %v444_v56  ;;  %v550_v56 = vld [vmem:[%s5356_s3 + $0x10] sm:$0xff] }
  0xd0   : > { %515 = vmatprep.subr.mxu0 %v443_v57  ;;  %2101 = vmatpush1.bf16.msra.mxu1 %v1060_v15  ;;  %v1126_v57 = vunpack.c.h.s8.bf16 %v550_v56  ;;  %v1062_v60 = vunpack.c.l.s8.bf16 %v550_v56  ;;  %v870_v15 = vld [vmem:[%s5356_s3 + $0xa10] sm:$0xff] }
  0xd1   : > { %516 = vmatpush2.msra.mxu0 %v442_v59  ;;  %2102 = vmatprep.subr.bf16.mxu1 %v2021_v17  ;;  %v999_v59 = vld [vmem:[%s5356_s3 + $0xe18] sm:$0xff]  ;;  %v1766_v17 = vunpack.c.h.s8.bf16 %v870_v15 }
  0xd2   : > { %517 = vmatprep.subr.mxu0 %v441_v61  ;;  %v2023_v61 = vunpack.c.h.s8.bf16 %v999_v59 }
  0xd3   : > { %518 = vmatpush2.msra.mxu0 %v440_v63  ;;  %v2022_v63 = vunpack.c.h.s8.bf16 %v998_v62 }
  0xd4   : > { %519 = vmatprep.subr.mxu0 %v439_v0  ;;  %2103 = vmatpush2.bf16.msra.mxu1 %v2020_v22  ;;  %v1959_v0 = vunpack.c.l.s8.bf16 %v999_v59  ;;  %v805_v22 = vld [vmem:[%s5356_s3 + $0x808] sm:$0xff] }
  0xd5   : > { %520 = vmatpush2.msra.mxu0 %v438_v2  ;;  %2104 = vmatprep.subr.bf16.mxu1 %v1957_v25  ;;  %v1958_v2 = vunpack.c.l.s8.bf16 %v998_v62  ;;  %v1637_v25 = vunpack.c.h.s8.bf16 %v805_v22  ;;  %v681_v59 = vld [vmem:[%s5356_s3 + $0x428] sm:$0xff] }
  0xd6   : > { %521 = vmatprep.subr.mxu0 %v437_v5  ;;  %v1894_v5 = vunpack.c.h.s8.bf16 %v934_v4 }
  0xd7   : > { %522 = vmatpush2.msra.mxu0 %v436_v6  ;;  %v1829_v6 = vunpack.c.l.s8.bf16 %v5387_v27  ;;  %v804_v27 = vld [vmem:[%s5356_s3 + $0x800] sm:$0xff] }
  0xd8   : > { %523 = vmatprep.subr.mxu0 %v435_v7  ;;  %2105 = vmatpush2.bf16.msra.mxu1 %v1956_v31  ;;  %v1831_v7 = vunpack.c.l.s8.bf16 %v935_v1  ;;  %v1573_v31 = vunpack.c.l.s8.bf16 %v805_v22  ;;  %v1572_v33 = vunpack.c.l.s8.bf16 %v804_v27  ;;  %v680_v1 = vld [vmem:[%s5356_s3 + $0x420] sm:$0xff] }
  0xd9   : > { %524 = vmatpush2.msra.mxu0 %v434_v9  ;;  %2106 = vmatprep.subr.bf16.mxu1 %v1893_v34  ;;  %v1830_v9 = vunpack.c.l.s8.bf16 %v934_v4 }
  0xda   : > { %525 = vmatprep.subr.mxu0 %v433_v11  ;;  %v871_v11 = vld [vmem:[%s5356_s3 + $0xa18] sm:$0xff] }
  0xdb   : > { %526 = vmatpush2.msra.mxu0 %v432_v13  ;;  %v1767_v13 = vunpack.c.h.s8.bf16 %v871_v11 }
  0xdc   : > { %527 = vmatprep.subr.mxu0 %v431_v14  ;;  %2107 = vmatpush2.bf16.msra.mxu1 %v1892_v40  ;;  %v868_v14 = vld [vmem:[%s5356_s3 + $0xa00] sm:$0xff] }
  0xdd   : > { %528 = vmatpush2.msra.mxu0 %v430_v16  ;;  %2108 = vmatprep.subr.bf16.mxu1 %v1829_v6  ;;  %v1764_v16 = vunpack.c.h.s8.bf16 %v868_v14 }
  0xde   : > { %529 = vmatprep.subr.mxu0 %v429_v19  ;;  %v1703_v19 = vunpack.c.l.s8.bf16 %v871_v11 }
  0xdf   : > { %530 = vmatpush2.msra.mxu0 %v428_v20  ;;  %v1700_v20 = vunpack.c.l.s8.bf16 %v868_v14  ;;  %v618_v14 = vld [vmem:[%s5356_s3 + $0x230] sm:$0xff] }
  0xe0   : > { %531 = vmatprep.subr.mxu0 %v427_v21  ;;  %2109 = vmatpush2.bf16.msra.mxu1 %v1828_v8  ;;  %v1702_v21 = vunpack.c.l.s8.bf16 %v870_v15  ;;  %v619_v8 = vld [vmem:[%s5356_s3 + $0x238] sm:$0xff]  ;;  %v1194_v22 = vunpack.c.l.s8.bf16 %v618_v14 }
  0xe1   : > { %532 = vmatpush2.msra.mxu0 %v426_v23  ;;  %2110 = vmatprep.subr.bf16.mxu1 %v1765_v12  ;;  %v807_v23 = vld [vmem:[%s5356_s3 + $0x818] sm:$0xff]  ;;  %v1259_v12 = vunpack.c.h.s8.bf16 %v619_v8 }
  0xe2   : > { %533 = vmatprep.subr.mxu0 %v425_v26  ;;  %v1639_v26 = vunpack.c.h.s8.bf16 %v807_v23 }
  0xe3   : > { %534 = vmatpush2.msra.mxu0 %v424_v28  ;;  %v806_v28 = vld [vmem:[%s5356_s3 + $0x810] sm:$0xff] }
  0xe4   : > { %535 = vmatprep.subr.mxu0 %v423_v29  ;;  %2111 = vmatpush2.bf16.msra.mxu1 %v1764_v16  ;;  %v1636_v29 = vunpack.c.h.s8.bf16 %v804_v27  ;;  %v1638_v30 = vunpack.c.h.s8.bf16 %v806_v28  ;;  %v1574_v34 = vunpack.c.l.s8.bf16 %v806_v28  ;;  %v1258_v16 = vunpack.c.h.s8.bf16 %v618_v14  ;;  %v554_v27 = vld [vmem:[%s5356_s3 + $0x30] sm:$0xff]  ;;  %v808_v14 = vld [vmem:[%s5356_s3 + $0x820] sm:$0xff] }
  0xe5   : > { %536 = vmatpush2.msra.mxu0 %v422_v32  ;;  %2112 = vmatprep.subr.bf16.mxu1 %v1701_v18  ;;  %v1575_v32 = vunpack.c.l.s8.bf16 %v807_v23  ;;  %v1195_v18 = vunpack.c.l.s8.bf16 %v619_v8  ;;  %v809_v8 = vld [vmem:[%s5356_s3 + $0x828] sm:$0xff] }
  0xe6   : > { %537 = vmatprep.subr.mxu0 %v421_v36  ;;  %v747_v36 = vld [vmem:[%s5356_s3 + $0x638] sm:$0xff] }
  0xe7   : > { %538 = vmatpush2.msra.mxu0 %v420_v37  ;;  %v1513_v37 = vunpack.c.h.s8.bf16 %v745_v35 }
  0xe8   : > { %540 = vmatmul.mubr.f32.vlgmr.msra.gmra.mxu0 %v5372_v24  ;;  %2127 = vmatprep.subr.bf16.mxu0 %v1511_v38  ;;  %v614_v24 = vld [vmem:[%s5356_s3 + $0x210] sm:$0xff]  ;;  %v1515_v38 = vunpack.c.h.s8.bf16 %v747_v36 }
  0xe9   : > { %2128 = vmatpush1.bf16.msra.mxu0 %v1510_v39  ;;  %v1254_v51 = vunpack.c.h.s8.bf16 %v614_v24  ;;  %v1190_v54 = vunpack.c.l.s8.bf16 %v614_v24  ;;  %2113 = vmatpush2.bf16.msra.mxu1 %v1700_v20  ;;  %v454_v39 = vlaneseq  ;;  %v746_v24 = vld [vmem:[%s5356_s3 + $0x630] sm:$0xff]  ;;  %v555_v20 = vld [vmem:[%s5356_s3 + $0x38] sm:$0xff] }
  0xea   : > { %2129 = vmatprep.subr.bf16.mxu0 %v1447_v41  ;;  %2114 = vmatprep.subr.bf16.mxu1 %v1637_v25  ;;  %v1450_v62 = vunpack.c.l.s8.bf16 %v746_v24  ;;  %v1131_v25 = vunpack.c.h.s8.bf16 %v555_v20 }
  0xeb   : > { %v5419_v40 = vshrl.u32 %v454_v39, 7  ;;  %v1002_v39 = vld [vmem:[%s5356_s3 + $0xe30] sm:$0xff] }
  0xed   : > { %2130 = vmatpush1.bf16.msra.mxu0 %v1446_v43  ;;  %2115 = vmatpush2.bf16.msra.mxu1 %v1636_v29  ;;  %v5422_v41 = vsub.s32 0, %v5419_v40  ;;  %v5425_v43 = vsub.s32 1, %v5419_v40  ;;  %v1130_v29 = vunpack.c.h.s8.bf16 %v554_v27 }
  0xee   : > { %2131 = vmatprep.subr.bf16.mxu0 %v1383_v44  ;;  %2116 = vmatprep.subr.bf16.mxu1 %v1573_v31  ;;  %v1067_v31 = vunpack.c.l.s8.bf16 %v555_v20  ;;  %v749_v20 = vld [vmem:[%s5356_s3 + $0x648] sm:$0xff] }
  0xef   : > { %v457_v44 = vrot.slane %v452_v42, %v5422_v41  ;;  %v461_v45 = vrot.slane %v452_v42, %v5425_v43 }
  0xf1   : > { %2132 = vmatpush1.bf16.msra.mxu0 %v1382_v46  ;;  %2117 = vmatpush2.bf16.msra.mxu1 %v1572_v33  ;;  %v1003_v33 = vld [vmem:[%s5356_s3 + $0xe38] sm:$0xff] }
  0xf2   : > { %2133 = vmatprep.subr.bf16.mxu0 %v1319_v47  ;;  %2168 = vmatprep.subr.bf16.mxu1 %v1513_v37  ;;  %v2027_v37 = vunpack.c.h.s8.bf16 %v1003_v33 }
  0xf5   : > { %2134 = vmatpush1.bf16.msra.mxu0 %v1318_v49 }
  0xf6   : > { %2135 = vmatprep.subr.bf16.mxu0 %v1255_v50  ;;  %v744_v50 = vld [vmem:[%s5356_s3 + $0x620] sm:$0xff] }
  0xf9   : > { %2136 = vmatpush1.bf16.msra.mxu0 %v1254_v51 }
  0xfa   : > { %2137 = vmatprep.subr.bf16.mxu0 %v1191_v52 }
  0xfd   : > { %2138 = vmatpush1.bf16.msra.mxu0 %v1190_v54  ;;  %v1512_v54 = vunpack.c.h.s8.bf16 %v744_v50 }
  0xfe   : > { %2139 = vmatprep.subr.bf16.mxu0 %v1127_v55  ;;  %v1514_v55 = vunpack.c.h.s8.bf16 %v746_v24 }
 0x101   : > { %2140 = vmatpush1.bf16.msra.mxu0 %v1126_v57  ;;  %v1449_v57 = vunpack.c.l.s8.bf16 %v745_v35  ;;  %v1066_v35 = vunpack.c.l.s8.bf16 %v554_v27  ;;  %v748_v27 = vld [vmem:[%s5356_s3 + $0x640] sm:$0xff] }
 0x102   : > { %2141 = vmatprep.subr.bf16.mxu0 %v1063_v58  ;;  %v1451_v58 = vunpack.c.l.s8.bf16 %v747_v36 }
 0x105   : > { %2142 = vmatpush1.bf16.msra.mxu0 %v1062_v60  ;;  %v683_v60 = vld [vmem:[%s5356_s3 + $0x438] sm:$0xff] }
 0x106   : > { %2143 = vmatprep.subr.bf16.mxu0 %v2023_v61  ;;  %v1448_v61 = vunpack.c.l.s8.bf16 %v744_v50  ;;  %v1323_v6 = vunpack.c.l.s8.bf16 %v683_v60  ;;  %v1962_v50 = vunpack.c.l.s8.bf16 %v1002_v39 }
 0x109   : > { %2144 = vmatpush2.bf16.msra.mxu0 %v2022_v63  ;;  %v1385_v63 = vunpack.c.h.s8.bf16 %v681_v59 }
 0x10a   : > { %2145 = vmatprep.subr.bf16.mxu0 %v1959_v0  ;;  %v1387_v0 = vunpack.c.h.s8.bf16 %v683_v60  ;;  %v873_v60 = vld [vmem:[%s5356_s3 + $0xa28] sm:$0xff] }
 0x10d   : > { %2146 = vmatpush2.bf16.msra.mxu0 %v1958_v2  ;;  %v682_v2 = vld [vmem:[%s5356_s3 + $0x430] sm:$0xff] }
 0x10e   : > { %2147 = vmatprep.subr.bf16.mxu0 %v1895_v3  ;;  %v1384_v3 = vunpack.c.h.s8.bf16 %v680_v1  ;;  %v1386_v4 = vunpack.c.h.s8.bf16 %v682_v2  ;;  %v1322_v10 = vunpack.c.l.s8.bf16 %v682_v2  ;;  %v872_v2 = vld [vmem:[%s5356_s3 + $0xa20] sm:$0xff] }
 0x111   : > { %2148 = vmatpush2.bf16.msra.mxu0 %v1894_v5  ;;  %v1321_v5 = vunpack.c.l.s8.bf16 %v681_v59 }
 0x112   : > { %2149 = vmatprep.subr.bf16.mxu0 %v1831_v7  ;;  %v617_v7 = vld [vmem:[%s5356_s3 + $0x228] sm:$0xff] }
 0x113   : > { %v1257_v11 = vunpack.c.h.s8.bf16 %v617_v7 }
 0x115   : > { %2150 = vmatpush2.bf16.msra.mxu0 %v1830_v9  ;;  %v1320_v9 = vunpack.c.l.s8.bf16 %v680_v1 }
 0x116   : > { %2151 = vmatprep.subr.bf16.mxu0 %v1767_v13  ;;  %v616_v13 = vld [vmem:[%s5356_s3 + $0x220] sm:$0xff] }
 0x117   : > { %v1256_v15 = vunpack.c.h.s8.bf16 %v616_v13 }
 0x119   : > { %2152 = vmatpush2.bf16.msra.mxu0 %v1766_v17  ;;  %v1193_v17 = vunpack.c.l.s8.bf16 %v617_v7 }
 0x11a   : > { %2153 = vmatprep.subr.bf16.mxu0 %v1703_v19  ;;  %v553_v19 = vld [vmem:[%s5356_s3 + $0x28] sm:$0xff] }
 0x11b   : > { %v1129_v23 = vunpack.c.h.s8.bf16 %v553_v19 }
 0x11d   : > { %2154 = vmatpush2.bf16.msra.mxu0 %v1702_v21  ;;  %v1192_v21 = vunpack.c.l.s8.bf16 %v616_v13 }
 0x11e   : > { %2155 = vmatprep.subr.bf16.mxu0 %v1639_v26  ;;  %v552_v26 = vld [vmem:[%s5356_s3 + $0x20] sm:$0xff] }
 0x11f   : > { %v1128_v28 = vunpack.c.h.s8.bf16 %v552_v26 }
 0x121   : > { %2156 = vmatpush2.bf16.msra.mxu0 %v1638_v30  ;;  %v1065_v30 = vunpack.c.l.s8.bf16 %v553_v19 }
 0x122   : > { %2157 = vmatprep.subr.bf16.mxu0 %v1575_v32  ;;  %v1001_v32 = vld [vmem:[%s5356_s3 + $0xe28] sm:$0xff] }
 0x123   : > { %v2025_v36 = vunpack.c.h.s8.bf16 %v1001_v32 }
 0x125   : > { %2158 = vmatpush2.bf16.msra.mxu0 %v1574_v34  ;;  %v1064_v34 = vunpack.c.l.s8.bf16 %v552_v26 }
 0x126   : > { %2209 = vmatprep.subr.bf16.mxu0 %v1515_v38  ;;  %v1000_v38 = vld [vmem:[%s5356_s3 + $0xe20] sm:$0xff] }
 0x127   : > { %v2024_v42 = vunpack.c.h.s8.bf16 %v1000_v38 }
 0x1a8   : > { %v541_v46 = vpop.f32.mrf.mxu0 }
 0x1a9   : > { %v542_v47 = vadd.f32 %v541_v46, %v457_v44  ;;  %v2026_v44 = vunpack.c.h.s8.bf16 %v1002_v39  ;;  %v1963_v46 = vunpack.c.l.s8.bf16 %v1003_v33  ;;  %v685_v33 = vld [vmem:[%s5356_s3 + $0x448] sm:$0xff] }
 0x1aa   : > { %v543_v48 = vpop.f32.mrf.mxu0 }
 0x1ab   : > { %v544_v49 = vadd.f32 %v543_v48, %v461_v45  ;;  %4851 = vtanh.f32 %v542_v47  ;;  %v1961_v45 = vunpack.c.l.s8.bf16 %v1001_v32  ;;  %v937_v47 = vld [vmem:[%s5356_s3 + $0xc28] sm:$0xff]  ;;  %v939_v48 = vld [vmem:[%s5356_s3 + $0xc38] sm:$0xff] }
 0x1ac   : > { %v1897_v24 = vunpack.c.h.s8.bf16 %v937_v47  ;;  %v1835_v59 = vunpack.c.l.s8.bf16 %v939_v48 }
 0x1ad   : > { %4853 = vtanh.f32 %v544_v49  ;;  %v1960_v49 = vunpack.c.l.s8.bf16 %v1000_v38  ;;  %v684_v38 = vld [vmem:[%s5356_s3 + $0x440] sm:$0xff] }
 0x1b8   : > { %v4852_v51 = vpop.eup %4851 }
 0x1b9   : > { %v5433_v56 = vpack.c.bf16 %v4852_v51, %v4852_v51  ;;  %v1899_v51 = vunpack.c.h.s8.bf16 %v939_v48  ;;  %v621_v48 = vld [vmem:[%s5356_s3 + $0x248] sm:$0xff] }
 0x1ba   : > { %v4854_v52 = vpop.eup %4853 }
 0x1bb   : > { %v5431_v53 = vpack.c.bf16 %v4854_v52, %v4854_v52  ;;  %v936_v52 = vld [vmem:[%s5356_s3 + $0xc20] sm:$0xff] }
 0x1bd   : > { %2118 = vmatprep.mubr.bf16.mxu1 %v5431_v53  ;;  %2159 = vmatprep.mubr.bf16.mxu0 %v5431_v53 }
 0x1be   : > { %2119 = vmatmul.mubr.bf16.vlgmr.msra.gmra.mxu1 %v5433_v56  ;;  %2160 = vmatmul.mubr.bf16.vlgmr.msra.gmra.mxu0 %v5433_v56 }
 0x1bf   : > { %2169 = vmatpush1.bf16.msra.mxu1 %v1512_v54  ;;  %2210 = vmatpush1.bf16.msra.mxu0 %v1514_v55  ;;  %v938_v54 = vld [vmem:[%s5356_s3 + $0xc30] sm:$0xff]  ;;  %v1896_v55 = vunpack.c.h.s8.bf16 %v936_v52 }
 0x1c0   : > { %2200 = vmatprep.mubr.bf16.mxu1 %v5431_v53  ;;  %2241 = vmatprep.mubr.bf16.mxu0 %v5431_v53 }
 0x1c1   : > { %2170 = vmatprep.subr.bf16.mxu1 %v1449_v57  ;;  %2211 = vmatprep.subr.bf16.mxu0 %v1451_v58  ;;  %v1898_v57 = vunpack.c.h.s8.bf16 %v938_v54  ;;  %v1833_v58 = vunpack.c.l.s8.bf16 %v937_v47 }
 0x1c3   : > { %2171 = vmatpush1.bf16.msra.mxu1 %v1448_v61  ;;  %2212 = vmatpush1.bf16.msra.mxu0 %v1450_v62  ;;  %v875_v61 = vld [vmem:[%s5356_s3 + $0xa38] sm:$0xff]  ;;  %v1832_v62 = vunpack.c.l.s8.bf16 %v936_v52  ;;  %v620_v52 = vld [vmem:[%s5356_s3 + $0x240] sm:$0xff] }
 0x1c4   : > { %2172 = vmatprep.subr.bf16.mxu1 %v1385_v63  ;;  %2213 = vmatprep.subr.bf16.mxu0 %v1387_v0  ;;  %v1834_v63 = vunpack.c.l.s8.bf16 %v938_v54  ;;  %v1769_v0 = vunpack.c.h.s8.bf16 %v873_v60  ;;  %v1771_v1 = vunpack.c.h.s8.bf16 %v875_v61  ;;  %v1707_v7 = vunpack.c.l.s8.bf16 %v875_v61  ;;  %v557_v61 = vld [vmem:[%s5356_s3 + $0x48] sm:$0xff] }
 0x1c7   : > { %2173 = vmatpush1.bf16.msra.mxu1 %v1384_v3  ;;  %2214 = vmatpush1.bf16.msra.mxu0 %v1386_v4  ;;  %v874_v3 = vld [vmem:[%s5356_s3 + $0xa30] sm:$0xff]  ;;  %v1768_v4 = vunpack.c.h.s8.bf16 %v872_v2 }
 0x1c8   : > { %2174 = vmatprep.subr.bf16.mxu1 %v1321_v5  ;;  %2215 = vmatprep.subr.bf16.mxu0 %v1323_v6  ;;  %v1770_v5 = vunpack.c.h.s8.bf16 %v874_v3  ;;  %v1705_v6 = vunpack.c.l.s8.bf16 %v873_v60 }
 0x1cb   : > { %2175 = vmatpush1.bf16.msra.mxu1 %v1320_v9  ;;  %2216 = vmatpush1.bf16.msra.mxu0 %v1322_v10  ;;  %v811_v9 = vld [vmem:[%s5356_s3 + $0x838] sm:$0xff]  ;;  %v1704_v10 = vunpack.c.l.s8.bf16 %v872_v2  ;;  %v556_v2 = vld [vmem:[%s5356_s3 + $0x40] sm:$0xff] }
 0x1cc   : > { %2176 = vmatprep.subr.bf16.mxu1 %v1257_v11  ;;  %2217 = vmatprep.subr.bf16.mxu0 %v1259_v12  ;;  %v1706_v11 = vunpack.c.l.s8.bf16 %v874_v3  ;;  %v1641_v12 = vunpack.c.h.s8.bf16 %v809_v8  ;;  %v1643_v13 = vunpack.c.h.s8.bf16 %v811_v9  ;;  %v1579_v19 = vunpack.c.l.s8.bf16 %v811_v9  ;;  %v1005_v9 = vld [vmem:[%s5356_s3 + $0xe48] sm:$0xff] }
 0x1cf   : > { %2177 = vmatpush1.bf16.msra.mxu1 %v1256_v15  ;;  %2218 = vmatpush1.bf16.msra.mxu0 %v1258_v16  ;;  %v810_v15 = vld [vmem:[%s5356_s3 + $0x830] sm:$0xff]  ;;  %v1640_v16 = vunpack.c.h.s8.bf16 %v808_v14 }
 0x1d0   : > { %2178 = vmatprep.subr.bf16.mxu1 %v1193_v17  ;;  %2219 = vmatprep.subr.bf16.mxu0 %v1195_v18  ;;  %v1642_v17 = vunpack.c.h.s8.bf16 %v810_v15  ;;  %v1577_v18 = vunpack.c.l.s8.bf16 %v809_v8 }
 0x1d3   : > { %2179 = vmatpush1.bf16.msra.mxu1 %v1192_v21  ;;  %2220 = vmatpush1.bf16.msra.mxu0 %v1194_v22  ;;  %v751_v21 = vld [vmem:[%s5356_s3 + $0x658] sm:$0xff]  ;;  %v1576_v22 = vunpack.c.l.s8.bf16 %v808_v14  ;;  %v1004_v14 = vld [vmem:[%s5356_s3 + $0xe40] sm:$0xff] }
 0x1d4   : > { %2180 = vmatprep.subr.bf16.mxu1 %v1129_v23  ;;  %2221 = vmatprep.subr.bf16.mxu0 %v1131_v25  ;;  %v1578_v23 = vunpack.c.l.s8.bf16 %v810_v15  ;;  %v1517_v25 = vunpack.c.h.s8.bf16 %v749_v20  ;;  %v1519_v26 = vunpack.c.h.s8.bf16 %v751_v21  ;;  %v1455_v32 = vunpack.c.l.s8.bf16 %v751_v21  ;;  %v941_v21 = vld [vmem:[%s5356_s3 + $0xc48] sm:$0xff] }
 0x1d7   : > { %2181 = vmatpush1.bf16.msra.mxu1 %v1128_v28  ;;  %2222 = vmatpush1.bf16.msra.mxu0 %v1130_v29  ;;  %v750_v28 = vld [vmem:[%s5356_s3 + $0x650] sm:$0xff]  ;;  %v1516_v29 = vunpack.c.h.s8.bf16 %v748_v27 }
 0x1d8   : > { %2182 = vmatprep.subr.bf16.mxu1 %v1065_v30  ;;  %2223 = vmatprep.subr.bf16.mxu0 %v1067_v31  ;;  %v1518_v30 = vunpack.c.h.s8.bf16 %v750_v28  ;;  %v1453_v31 = vunpack.c.l.s8.bf16 %v749_v20 }
 0x1db   : > { %2183 = vmatpush1.bf16.msra.mxu1 %v1064_v34  ;;  %2224 = vmatpush1.bf16.msra.mxu0 %v1066_v35  ;;  %v687_v34 = vld [vmem:[%s5356_s3 + $0x458] sm:$0xff]  ;;  %v1452_v35 = vunpack.c.l.s8.bf16 %v748_v27  ;;  %v940_v27 = vld [vmem:[%s5356_s3 + $0xc40] sm:$0xff] }
 0x1dc   : > { %2184 = vmatprep.subr.bf16.mxu1 %v2025_v36  ;;  %2225 = vmatprep.subr.bf16.mxu0 %v2027_v37  ;;  %v1454_v36 = vunpack.c.l.s8.bf16 %v750_v28  ;;  %v1389_v37 = vunpack.c.h.s8.bf16 %v685_v33  ;;  %v1391_v39 = vunpack.c.h.s8.bf16 %v687_v34  ;;  %v1327_v47 = vunpack.c.l.s8.bf16 %v687_v34  ;;  %v877_v34 = vld [vmem:[%s5356_s3 + $0xa48] sm:$0xff] }
 0x1df   : > { %2185 = vmatpush2.bf16.msra.mxu1 %v2024_v42  ;;  %2226 = vmatpush2.bf16.msra.mxu0 %v2026_v44  ;;  %v686_v42 = vld [vmem:[%s5356_s3 + $0x450] sm:$0xff]  ;;  %v1388_v44 = vunpack.c.h.s8.bf16 %v684_v38 }
 0x1e0   : > { %2186 = vmatprep.subr.bf16.mxu1 %v1961_v45  ;;  %2227 = vmatprep.subr.bf16.mxu0 %v1963_v46  ;;  %v1390_v45 = vunpack.c.h.s8.bf16 %v686_v42  ;;  %v1325_v46 = vunpack.c.l.s8.bf16 %v685_v33 }
 0x1e3   : > { %2187 = vmatpush2.bf16.msra.mxu1 %v1960_v49  ;;  %2228 = vmatpush2.bf16.msra.mxu0 %v1962_v50  ;;  %v623_v49 = vld [vmem:[%s5356_s3 + $0x258] sm:$0xff]  ;;  %v1324_v50 = vunpack.c.l.s8.bf16 %v684_v38  ;;  %v1773_v38 = vunpack.c.h.s8.bf16 %v877_v34 }
 0x1e4   : > { %2188 = vmatprep.subr.bf16.mxu1 %v1897_v24  ;;  %2229 = vmatprep.subr.bf16.mxu0 %v1899_v51  ;;  %v1326_v24 = vunpack.c.l.s8.bf16 %v686_v42  ;;  %v1261_v51 = vunpack.c.h.s8.bf16 %v621_v48  ;;  %v1263_v54 = vunpack.c.h.s8.bf16 %v623_v49  ;;  %v1199_v60 = vunpack.c.l.s8.bf16 %v623_v49  ;;  %v813_v49 = vld [vmem:[%s5356_s3 + $0x848] sm:$0xff] }
 0x1e7   : > { %2189 = vmatpush2.bf16.msra.mxu1 %v1896_v55  ;;  %2230 = vmatpush2.bf16.msra.mxu0 %v1898_v57  ;;  %v622_v55 = vld [vmem:[%s5356_s3 + $0x250] sm:$0xff]  ;;  %v1260_v57 = vunpack.c.h.s8.bf16 %v620_v52 }
 0x1e8   : > { %2190 = vmatprep.subr.bf16.mxu1 %v1833_v58  ;;  %2231 = vmatprep.subr.bf16.mxu0 %v1835_v59  ;;  %v1262_v58 = vunpack.c.h.s8.bf16 %v622_v55  ;;  %v1197_v59 = vunpack.c.l.s8.bf16 %v621_v48 }
 0x1eb   : > { %2191 = vmatpush2.bf16.msra.mxu1 %v1832_v62  ;;  %2232 = vmatpush2.bf16.msra.mxu0 %v1834_v63  ;;  %v559_v62 = vld [vmem:[%s5356_s3 + $0x58] sm:$0xff]  ;;  %v1196_v63 = vunpack.c.l.s8.bf16 %v620_v52  ;;  %v1645_v52 = vunpack.c.h.s8.bf16 %v813_v49 }
 0x1ec   : > { %2192 = vmatprep.subr.bf16.mxu1 %v1769_v0  ;;  %2233 = vmatprep.subr.bf16.mxu0 %v1771_v1  ;;  %v1198_v0 = vunpack.c.l.s8.bf16 %v622_v55  ;;  %v1133_v1 = vunpack.c.h.s8.bf16 %v557_v61  ;;  %v1135_v3 = vunpack.c.h.s8.bf16 %v559_v62  ;;  %v1071_v8 = vunpack.c.l.s8.bf16 %v559_v62  ;;  %v753_v62 = vld [vmem:[%s5356_s3 + $0x668] sm:$0xff] }
 0x1ef   : > { %2193 = vmatpush2.bf16.msra.mxu1 %v1768_v4  ;;  %2234 = vmatpush2.bf16.msra.mxu0 %v1770_v5  ;;  %v558_v4 = vld [vmem:[%s5356_s3 + $0x50] sm:$0xff]  ;;  %v1132_v5 = vunpack.c.h.s8.bf16 %v556_v2 }
 0x1f0   : > { %2194 = vmatprep.subr.bf16.mxu1 %v1705_v6  ;;  %2235 = vmatprep.subr.bf16.mxu0 %v1707_v7  ;;  %v1134_v6 = vunpack.c.h.s8.bf16 %v558_v4  ;;  %v1069_v7 = vunpack.c.l.s8.bf16 %v557_v61 }
 0x1f3   : > { %2195 = vmatpush2.bf16.msra.mxu1 %v1704_v10  ;;  %2236 = vmatpush2.bf16.msra.mxu0 %v1706_v11  ;;  %v1007_v10 = vld [vmem:[%s5356_s3 + $0xe58] sm:$0xff]  ;;  %v1068_v11 = vunpack.c.l.s8.bf16 %v556_v2  ;;  %v1521_v2 = vunpack.c.h.s8.bf16 %v753_v62 }
 0x1f4   : > { %2196 = vmatprep.subr.bf16.mxu1 %v1641_v12  ;;  %2237 = vmatprep.subr.bf16.mxu0 %v1643_v13  ;;  %v1070_v12 = vunpack.c.l.s8.bf16 %v558_v4  ;;  %v2029_v13 = vunpack.c.h.s8.bf16 %v1005_v9  ;;  %v2031_v15 = vunpack.c.h.s8.bf16 %v1007_v10  ;;  %v1967_v20 = vunpack.c.l.s8.bf16 %v1007_v10 }
 0x1f7   : > { %2197 = vmatpush2.bf16.msra.mxu1 %v1640_v16  ;;  %2238 = vmatpush2.bf16.msra.mxu0 %v1642_v17  ;;  %v1006_v16 = vld [vmem:[%s5356_s3 + $0xe50] sm:$0xff]  ;;  %v2028_v17 = vunpack.c.h.s8.bf16 %v1004_v14 }
 0x1f8   : > { %2198 = vmatprep.subr.bf16.mxu1 %v1577_v18  ;;  %2239 = vmatprep.subr.bf16.mxu0 %v1579_v19  ;;  %v2030_v18 = vunpack.c.h.s8.bf16 %v1006_v16  ;;  %v1965_v19 = vunpack.c.l.s8.bf16 %v1005_v9  ;;  %v689_v9 = vld [vmem:[%s5356_s3 + $0x468] sm:$0xff] }
 0x1fb   : > { %2199 = vmatpush2.bf16.msra.mxu1 %v1576_v22  ;;  %2240 = vmatpush2.bf16.msra.mxu0 %v1578_v23  ;;  %v943_v22 = vld [vmem:[%s5356_s3 + $0xc58] sm:$0xff]  ;;  %v1964_v23 = vunpack.c.l.s8.bf16 %v1004_v14  ;;  %v1393_v14 = vunpack.c.h.s8.bf16 %v689_v9 }
 0x1fc   : > { %2250 = vmatprep.subr.bf16.mxu1 %v1517_v25  ;;  %2291 = vmatprep.subr.bf16.mxu0 %v1519_v26  ;;  %v1966_v25 = vunpack.c.l.s8.bf16 %v1006_v16  ;;  %v1901_v26 = vunpack.c.h.s8.bf16 %v941_v21  ;;  %v1903_v28 = vunpack.c.h.s8.bf16 %v943_v22  ;;  %v1839_v33 = vunpack.c.l.s8.bf16 %v943_v22  ;;  %v625_v22 = vld [vmem:[%s5356_s3 + $0x268] sm:$0xff] }
 0x1fe   : > { %2201 = vmatmul.mubr.bf16.vlgmr.msra.gmra.mxu1 %v5433_v56  ;;  %2242 = vmatmul.mubr.bf16.vlgmr.msra.gmra.mxu0 %v5433_v56 }
 0x1ff   : > { %2251 = vmatpush1.bf16.msra.mxu1 %v1516_v29  ;;  %2282 = vmatprep.mubr.bf16.mxu1 %v5431_v53  ;;  %v942_v29 = vld [vmem:[%s5356_s3 + $0xc50] sm:$0xff] }
 0x200   : > { %2292 = vmatpush1.bf16.msra.mxu0 %v1518_v30  ;;  %2323 = vmatprep.mubr.bf16.mxu0 %v5431_v53  ;;  %v1900_v30 = vunpack.c.h.s8.bf16 %v940_v27 }
 0x201   : > { %2252 = vmatprep.subr.bf16.mxu1 %v1453_v31  ;;  %2293 = vmatprep.subr.bf16.mxu0 %v1455_v32  ;;  %v1902_v31 = vunpack.c.h.s8.bf16 %v942_v29  ;;  %v1837_v32 = vunpack.c.l.s8.bf16 %v941_v21 }
 0x203   : > { %2253 = vmatpush1.bf16.msra.mxu1 %v1452_v35  ;;  %v879_v35 = vld [vmem:[%s5356_s3 + $0xa58] sm:$0xff] }
 0x204   : > { %2294 = vmatpush1.bf16.msra.mxu0 %v1454_v36  ;;  %2254 = vmatprep.subr.bf16.mxu1 %v1389_v37  ;;  %v1836_v36 = vunpack.c.l.s8.bf16 %v940_v27  ;;  %v1838_v37 = vunpack.c.l.s8.bf16 %v942_v29  ;;  %v1775_v42 = vunpack.c.h.s8.bf16 %v879_v35  ;;  %v1711_v48 = vunpack.c.l.s8.bf16 %v879_v35  ;;  %v561_v35 = vld [vmem:[%s5356_s3 + $0x68] sm:$0xff] }
 0x205   : > { %2295 = vmatprep.subr.bf16.mxu0 %v1391_v39  ;;  %v876_v39 = vld [vmem:[%s5356_s3 + $0xa40] sm:$0xff]  ;;  %v1265_v27 = vunpack.c.h.s8.bf16 %v625_v22 }
 0x207   : > { %2255 = vmatpush1.bf16.msra.mxu1 %v1388_v44  ;;  %v878_v44 = vld [vmem:[%s5356_s3 + $0xa50] sm:$0xff] }
 0x208   : > { %2296 = vmatpush1.bf16.msra.mxu0 %v1390_v45  ;;  %2256 = vmatprep.subr.bf16.mxu1 %v1325_v46  ;;  %v1772_v45 = vunpack.c.h.s8.bf16 %v876_v39  ;;  %v1774_v46 = vunpack.c.h.s8.bf16 %v878_v44 }
 0x209   : > { %2297 = vmatprep.subr.bf16.mxu0 %v1327_v47  ;;  %v1709_v47 = vunpack.c.l.s8.bf16 %v877_v34 }
 0x20b   : > { %2257 = vmatpush1.bf16.msra.mxu1 %v1324_v50  ;;  %v815_v50 = vld [vmem:[%s5356_s3 + $0x858] sm:$0xff] }
 0x20c   : > { %2298 = vmatpush1.bf16.msra.mxu0 %v1326_v24  ;;  %2258 = vmatprep.subr.bf16.mxu1 %v1261_v51  ;;  %v1708_v24 = vunpack.c.l.s8.bf16 %v876_v39  ;;  %v1710_v51 = vunpack.c.l.s8.bf16 %v878_v44  ;;  %v1647_v55 = vunpack.c.h.s8.bf16 %v815_v50  ;;  %v1583_v61 = vunpack.c.l.s8.bf16 %v815_v50  ;;  %v1009_v50 = vld [vmem:[%s5356_s3 + $0xe68] sm:$0xff] }
 0x20d   : > { %2299 = vmatprep.subr.bf16.mxu0 %v1263_v54  ;;  %v812_v54 = vld [vmem:[%s5356_s3 + $0x840] sm:$0xff]  ;;  %v1137_v39 = vunpack.c.h.s8.bf16 %v561_v35 }
 0x20f   : > { %2259 = vmatpush1.bf16.msra.mxu1 %v1260_v57  ;;  %v814_v57 = vld [vmem:[%s5356_s3 + $0x850] sm:$0xff] }
 0x210   : > { %2300 = vmatpush1.bf16.msra.mxu0 %v1262_v58  ;;  %2260 = vmatprep.subr.bf16.mxu1 %v1197_v59  ;;  %v1644_v58 = vunpack.c.h.s8.bf16 %v812_v54  ;;  %v1646_v59 = vunpack.c.h.s8.bf16 %v814_v57 }
 0x211   : > { %2301 = vmatprep.subr.bf16.mxu0 %v1199_v60  ;;  %v1581_v60 = vunpack.c.l.s8.bf16 %v813_v49 }
 0x213   : > { %2261 = vmatpush1.bf16.msra.mxu1 %v1196_v63  ;;  %v755_v63 = vld [vmem:[%s5356_s3 + $0x678] sm:$0xff] }
 0x214   : > { %2302 = vmatpush1.bf16.msra.mxu0 %v1198_v0  ;;  %2262 = vmatprep.subr.bf16.mxu1 %v1133_v1  ;;  %v1580_v0 = vunpack.c.l.s8.bf16 %v812_v54  ;;  %v1582_v1 = vunpack.c.l.s8.bf16 %v814_v57  ;;  %v1523_v4 = vunpack.c.h.s8.bf16 %v755_v63  ;;  %v1459_v10 = vunpack.c.l.s8.bf16 %v755_v63  ;;  %v945_v63 = vld [vmem:[%s5356_s3 + $0xc68] sm:$0xff] }
 0x215   : > { %2303 = vmatprep.subr.bf16.mxu0 %v1135_v3  ;;  %v752_v3 = vld [vmem:[%s5356_s3 + $0x660] sm:$0xff]  ;;  %v2033_v54 = vunpack.c.h.s8.bf16 %v1009_v50 }
 0x217   : > { %2263 = vmatpush1.bf16.msra.mxu1 %v1132_v5  ;;  %v754_v5 = vld [vmem:[%s5356_s3 + $0x670] sm:$0xff] }
 0x218   : > { %2304 = vmatpush1.bf16.msra.mxu0 %v1134_v6  ;;  %2264 = vmatprep.subr.bf16.mxu1 %v1069_v7  ;;  %v1520_v6 = vunpack.c.h.s8.bf16 %v752_v3  ;;  %v1522_v7 = vunpack.c.h.s8.bf16 %v754_v5 }
 0x219   : > { %2305 = vmatprep.subr.bf16.mxu0 %v1071_v8  ;;  %v1457_v8 = vunpack.c.l.s8.bf16 %v753_v62 }
 0x21b   : > { %2265 = vmatpush1.bf16.msra.mxu1 %v1068_v11  ;;  %v691_v11 = vld [vmem:[%s5356_s3 + $0x478] sm:$0xff] }
 0x21c   : > { %2306 = vmatpush1.bf16.msra.mxu0 %v1070_v12  ;;  %2266 = vmatprep.subr.bf16.mxu1 %v2029_v13  ;;  %v1456_v12 = vunpack.c.l.s8.bf16 %v752_v3  ;;  %v1458_v13 = vunpack.c.l.s8.bf16 %v754_v5  ;;  %v1395_v16 = vunpack.c.h.s8.bf16 %v691_v11  ;;  %v1331_v21 = vunpack.c.l.s8.bf16 %v691_v11  ;;  %v881_v11 = vld [vmem:[%s5356_s3 + $0xa68] sm:$0xff] }
 0x21d   : > { %2307 = vmatprep.subr.bf16.mxu0 %v2031_v15  ;;  %v688_v15 = vld [vmem:[%s5356_s3 + $0x460] sm:$0xff]  ;;  %v1905_v3 = vunpack.c.h.s8.bf16 %v945_v63 }
 0x21f   : > { %2267 = vmatpush2.bf16.msra.mxu1 %v2028_v17  ;;  %v690_v17 = vld [vmem:[%s5356_s3 + $0x470] sm:$0xff] }
 0x220   : > { %2308 = vmatpush2.bf16.msra.mxu0 %v2030_v18  ;;  %2268 = vmatprep.subr.bf16.mxu1 %v1965_v19  ;;  %v1392_v18 = vunpack.c.h.s8.bf16 %v688_v15  ;;  %v1394_v19 = vunpack.c.h.s8.bf16 %v690_v17 }
 0x221   : > { %2309 = vmatprep.subr.bf16.mxu0 %v1967_v20  ;;  %v1329_v20 = vunpack.c.l.s8.bf16 %v689_v9  ;;  %v1841_v9 = vunpack.c.l.s8.bf16 %v945_v63 }
 0x223   : > { %2269 = vmatpush2.bf16.msra.mxu1 %v1964_v23  ;;  %v627_v23 = vld [vmem:[%s5356_s3 + $0x278] sm:$0xff] }
 0x224   : > { %2310 = vmatpush2.bf16.msra.mxu0 %v1966_v25  ;;  %2270 = vmatprep.subr.bf16.mxu1 %v1901_v26  ;;  %v1328_v25 = vunpack.c.l.s8.bf16 %v688_v15  ;;  %v1330_v26 = vunpack.c.l.s8.bf16 %v690_v17  ;;  %v1267_v29 = vunpack.c.h.s8.bf16 %v627_v23  ;;  %v1203_v34 = vunpack.c.l.s8.bf16 %v627_v23  ;;  %v817_v23 = vld [vmem:[%s5356_s3 + $0x868] sm:$0xff] }
 0x225   : > { %2311 = vmatprep.subr.bf16.mxu0 %v1903_v28  ;;  %v624_v28 = vld [vmem:[%s5356_s3 + $0x260] sm:$0xff]  ;;  %v1777_v15 = vunpack.c.h.s8.bf16 %v881_v11 }
 0x227   : > { %2271 = vmatpush2.bf16.msra.mxu1 %v1900_v30  ;;  %v626_v30 = vld [vmem:[%s5356_s3 + $0x270] sm:$0xff] }
 0x228   : > { %2312 = vmatpush2.bf16.msra.mxu0 %v1902_v31  ;;  %2272 = vmatprep.subr.bf16.mxu1 %v1837_v32  ;;  %v1264_v31 = vunpack.c.h.s8.bf16 %v624_v28  ;;  %v1266_v32 = vunpack.c.h.s8.bf16 %v626_v30 }
 0x229   : > { %2313 = vmatprep.subr.bf16.mxu0 %v1839_v33  ;;  %v1201_v33 = vunpack.c.l.s8.bf16 %v625_v22 }
 0x22b   : > { %2273 = vmatpush2.bf16.msra.mxu1 %v1836_v36  ;;  %v563_v36 = vld [vmem:[%s5356_s3 + $0x78] sm:$0xff] }
 0x22c   : > { %2314 = vmatpush2.bf16.msra.mxu0 %v1838_v37  ;;  %2274 = vmatprep.subr.bf16.mxu1 %v1773_v38  ;;  %v1200_v37 = vunpack.c.l.s8.bf16 %v624_v28  ;;  %v1202_v38 = vunpack.c.l.s8.bf16 %v626_v30  ;;  %v1139_v44 = vunpack.c.h.s8.bf16 %v563_v36  ;;  %v1075_v49 = vunpack.c.l.s8.bf16 %v563_v36  ;;  %v757_v36 = vld [vmem:[%s5356_s3 + $0x688] sm:$0xff] }
 0x22d   : > { %2315 = vmatprep.subr.bf16.mxu0 %v1775_v42  ;;  %v560_v42 = vld [vmem:[%s5356_s3 + $0x60] sm:$0xff]  ;;  %v1649_v28 = vunpack.c.h.s8.bf16 %v817_v23 }
 0x22f   : > { %2275 = vmatpush2.bf16.msra.mxu1 %v1772_v45  ;;  %v562_v45 = vld [vmem:[%s5356_s3 + $0x70] sm:$0xff] }
 0x230   : > { %2316 = vmatpush2.bf16.msra.mxu0 %v1774_v46  ;;  %2276 = vmatprep.subr.bf16.mxu1 %v1709_v47  ;;  %v1136_v46 = vunpack.c.h.s8.bf16 %v560_v42  ;;  %v1138_v47 = vunpack.c.h.s8.bf16 %v562_v45 }
 0x231   : > { %2317 = vmatprep.subr.bf16.mxu0 %v1711_v48  ;;  %v1073_v48 = vunpack.c.l.s8.bf16 %v561_v35 }
 0x233   : > { %2277 = vmatpush2.bf16.msra.mxu1 %v1708_v24  ;;  %v1011_v24 = vld [vmem:[%s5356_s3 + $0xe78] sm:$0xff] }
 0x234   : > { %2318 = vmatpush2.bf16.msra.mxu0 %v1710_v51  ;;  %2278 = vmatprep.subr.bf16.mxu1 %v1645_v52  ;;  %v1072_v51 = vunpack.c.l.s8.bf16 %v560_v42  ;;  %v1074_v52 = vunpack.c.l.s8.bf16 %v562_v45  ;;  %v2035_v57 = vunpack.c.h.s8.bf16 %v1011_v24  ;;  %v1971_v62 = vunpack.c.l.s8.bf16 %v1011_v24  ;;  %v5547_v45 = vld [vmem:[%s5363_s20] sm:$0xff] }
 0x235   : > { %2319 = vmatprep.subr.bf16.mxu0 %v1647_v55  ;;  %v1008_v55 = vld [vmem:[%s5356_s3 + $0xe60] sm:$0xff]  ;;  %v5106_v24 = vmov 1983009808  }
 0x237   : > { %2279 = vmatpush2.bf16.msra.mxu1 %v1644_v58  ;;  %v1010_v58 = vld [vmem:[%s5356_s3 + $0xe70] sm:$0xff] }
 0x238   : > { %2320 = vmatpush2.bf16.msra.mxu0 %v1646_v59  ;;  %2280 = vmatprep.subr.bf16.mxu1 %v1581_v60  ;;  %v2032_v59 = vunpack.c.h.s8.bf16 %v1008_v55  ;;  %v2034_v60 = vunpack.c.h.s8.bf16 %v1010_v58 }
 0x239   : > { %2321 = vmatprep.subr.bf16.mxu0 %v1583_v61  ;;  %v1969_v61 = vunpack.c.l.s8.bf16 %v1009_v50  ;;  %v5555_v50 = vld [vmem:[%s5366_s12] sm:$0xff] }
 0x23b   : > { %2281 = vmatpush2.bf16.msra.mxu1 %v1580_v0  ;;  %v947_v0 = vld [vmem:[%s5356_s3 + $0xc78] sm:$0xff] }
 0x23c   : > { %2322 = vmatpush2.bf16.msra.mxu0 %v1582_v1  ;;  %2332 = vmatprep.subr.bf16.mxu1 %v1521_v2  ;;  %v1968_v1 = vunpack.c.l.s8.bf16 %v1008_v55  ;;  %v1970_v2 = vunpack.c.l.s8.bf16 %v1010_v58  ;;  %v1907_v5 = vunpack.c.h.s8.bf16 %v947_v0  ;;  %v3817_v58 = vrot.slane %v5555_v50, %v5422_v41 }
 0x23d   : > { %2373 = vmatprep.subr.bf16.mxu0 %v1523_v4  ;;  %v944_v4 = vld [vmem:[%s5356_s3 + $0xc60] sm:$0xff] }
 0x23e   : > { %2283 = vmatmul.mubr.bf16.vlgmr.msra.gmra.mxu1 %v5433_v56 }
 0x23f   : > { %2324 = vmatmul.mubr.bf16.vlgmr.msra.gmra.mxu0 %v5433_v56  ;;  %2333 = vmatpush1.bf16.msra.mxu1 %v1520_v6  ;;  %v946_v6 = vld [vmem:[%s5356_s3 + $0xc70] sm:$0xff] }
 0x240   : > { %2364 = vmatprep.mubr.bf16.mxu1 %v5431_v53  ;;  %2374 = vmatpush1.bf16.msra.mxu0 %v1522_v7  ;;  %v1904_v7 = vunpack.c.h.s8.bf16 %v944_v4 }
 0x241   : > { %2405 = vmatprep.mubr.bf16.mxu0 %v5431_v53  ;;  %2334 = vmatprep.subr.bf16.mxu1 %v1457_v8  ;;  %v1906_v8 = vunpack.c.h.s8.bf16 %v946_v6 }
 0x242   : > { %2375 = vmatprep.subr.bf16.mxu0 %v1459_v10  ;;  %v1843_v10 = vunpack.c.l.s8.bf16 %v947_v0 }
 0x243   : > { %2335 = vmatpush1.bf16.msra.mxu1 %v1456_v12  ;;  %v883_v12 = vld [vmem:[%s5356_s3 + $0xa78] sm:$0xff] }
 0x244   : > { %2376 = vmatpush1.bf16.msra.mxu0 %v1458_v13  ;;  %2336 = vmatprep.subr.bf16.mxu1 %v1393_v14  ;;  %v1840_v13 = vunpack.c.l.s8.bf16 %v944_v4  ;;  %v1842_v14 = vunpack.c.l.s8.bf16 %v946_v6  ;;  %v1779_v17 = vunpack.c.h.s8.bf16 %v883_v12  ;;  %v1715_v22 = vunpack.c.l.s8.bf16 %v883_v12 }
 0x245   : > { %2377 = vmatprep.subr.bf16.mxu0 %v1395_v16  ;;  %v880_v16 = vld [vmem:[%s5356_s3 + $0xa60] sm:$0xff] }
 0x247   : > { %2337 = vmatpush1.bf16.msra.mxu1 %v1392_v18  ;;  %v882_v18 = vld [vmem:[%s5356_s3 + $0xa70] sm:$0xff] }
 0x248   : > { %2378 = vmatpush1.bf16.msra.mxu0 %v1394_v19  ;;  %2338 = vmatprep.subr.bf16.mxu1 %v1329_v20  ;;  %v1776_v19 = vunpack.c.h.s8.bf16 %v880_v16  ;;  %v1778_v20 = vunpack.c.h.s8.bf16 %v882_v18 }
 0x249   : > { %2379 = vmatprep.subr.bf16.mxu0 %v1331_v21  ;;  %v1713_v21 = vunpack.c.l.s8.bf16 %v881_v11 }
 0x24b   : > { %2339 = vmatpush1.bf16.msra.mxu1 %v1328_v25  ;;  %v819_v25 = vld [vmem:[%s5356_s3 + $0x878] sm:$0xff] }
 0x24c   : > { %2380 = vmatpush1.bf16.msra.mxu0 %v1330_v26  ;;  %2340 = vmatprep.subr.bf16.mxu1 %v1265_v27  ;;  %v1712_v26 = vunpack.c.l.s8.bf16 %v880_v16  ;;  %v1714_v27 = vunpack.c.l.s8.bf16 %v882_v18  ;;  %v1651_v30 = vunpack.c.h.s8.bf16 %v819_v25  ;;  %v1587_v35 = vunpack.c.l.s8.bf16 %v819_v25  ;;  %v694_v18 = vld [vmem:[%s5356_s3 + $0x490] sm:$0xff] }
 0x24d   : > { %2381 = vmatprep.subr.bf16.mxu0 %v1267_v29  ;;  %v816_v29 = vld [vmem:[%s5356_s3 + $0x860] sm:$0xff] }
 0x24f   : > { %2341 = vmatpush1.bf16.msra.mxu1 %v1264_v31  ;;  %v818_v31 = vld [vmem:[%s5356_s3 + $0x870] sm:$0xff] }
 0x250   : > { %2382 = vmatpush1.bf16.msra.mxu0 %v1266_v32  ;;  %2342 = vmatprep.subr.bf16.mxu1 %v1201_v33  ;;  %v1648_v32 = vunpack.c.h.s8.bf16 %v816_v29  ;;  %v1650_v33 = vunpack.c.h.s8.bf16 %v818_v31  ;;  %v1586_v42 = vunpack.c.l.s8.bf16 %v818_v31 }
 0x251   : > { %2383 = vmatprep.subr.bf16.mxu0 %v1203_v34  ;;  %v1585_v34 = vunpack.c.l.s8.bf16 %v817_v23 }
 0x253   : > { %2343 = vmatpush1.bf16.msra.mxu1 %v1200_v37  ;;  %v759_v37 = vld [vmem:[%s5356_s3 + $0x698] sm:$0xff] }
 0x254   : > { %2384 = vmatpush1.bf16.msra.mxu0 %v1202_v38  ;;  %2344 = vmatprep.subr.bf16.mxu1 %v1137_v39  ;;  %v1584_v38 = vunpack.c.l.s8.bf16 %v816_v29  ;;  %v5544_v39 = vsub.s32 2, %v5419_v40  ;;  %v1463_v4 = vunpack.c.l.s8.bf16 %v759_v37 }
 0x255   : > { %2385 = vmatprep.subr.bf16.mxu0 %v1139_v44  ;;  %v1525_v44 = vunpack.c.h.s8.bf16 %v757_v36 }
 0x257   : > { %2345 = vmatpush1.bf16.msra.mxu1 %v1136_v46  ;;  %v756_v46 = vld [vmem:[%s5356_s3 + $0x680] sm:$0xff] }
 0x258   : > { %2386 = vmatpush1.bf16.msra.mxu0 %v1138_v47  ;;  %2346 = vmatprep.subr.bf16.mxu1 %v1073_v48  ;;  %v1527_v47 = vunpack.c.h.s8.bf16 %v759_v37  ;;  %v758_v48 = vld [vmem:[%s5356_s3 + $0x690] sm:$0xff]  ;;  %v1524_v55 = vunpack.c.h.s8.bf16 %v756_v46 }
 0x259   : > { %2387 = vmatprep.subr.bf16.mxu0 %v1075_v49  ;;  %v5552_v49 = vsub.s32 3, %v5419_v40 }
 0x25b   : > { %2347 = vmatpush1.bf16.msra.mxu1 %v1072_v51  ;;  %v4265_v51 = vunpack.c.l.s4 %v5106_v24 }
 0x25c   : > { %2388 = vmatpush1.bf16.msra.mxu0 %v1074_v52  ;;  %2348 = vmatprep.subr.bf16.mxu1 %v2033_v54  ;;  %v3417_v52 = vrot.slane %v5547_v45, %v5422_v41  ;;  %v3425_v54 = vrot.slane %v5547_v45, %v5544_v39 }
 0x25d   : > { %2389 = vmatprep.subr.bf16.mxu0 %v2035_v57  ;;  %v1526_v57 = vunpack.c.h.s8.bf16 %v758_v48 }
 0x25f   : > { %2349 = vmatpush2.bf16.msra.mxu1 %v2032_v59  ;;  %v3825_v59 = vrot.slane %v5555_v50, %v5544_v39 }
 0x260   : > { %2390 = vmatpush2.bf16.msra.mxu0 %v2034_v60  ;;  %2350 = vmatprep.subr.bf16.mxu1 %v1969_v61  ;;  %v3421_v60 = vrot.slane %v5547_v45, %v5425_v43  ;;  %v3429_v61 = vrot.slane %v5547_v45, %v5552_v49 }
 0x261   : > { %2391 = vmatprep.subr.bf16.mxu0 %v1971_v62  ;;  %v693_v62 = vld [vmem:[%s5356_s3 + $0x488] sm:$0xff] }
 0x262   : > { %v1333_v31 = vunpack.c.l.s8.bf16 %v693_v62 }
 0x263   : > { %2351 = vmatpush2.bf16.msra.mxu1 %v1968_v1  ;;  %v3821_v1 = vrot.slane %v5555_v50, %v5425_v43 }
 0x264   : > { %2392 = vmatpush2.bf16.msra.mxu0 %v1970_v2  ;;  %2352 = vmatprep.subr.bf16.mxu1 %v1905_v3  ;;  %v4266_v2 = vunpack.c.0.s8 %v4265_v51  ;;  %v1461_v3 = vunpack.c.l.s8.bf16 %v757_v36  ;;  %v631_v36 = vld [vmem:[%s5356_s3 + $0x298] sm:$0xff]  ;;  %v630_v51 = vld [vmem:[%s5356_s3 + $0x290] sm:$0xff] }
 0x265   : > { %2393 = vmatprep.subr.bf16.mxu0 %v1907_v5  ;;  %v695_v5 = vld [vmem:[%s5356_s3 + $0x498] sm:$0xff]  ;;  %v1271_v24 = vunpack.c.h.s8.bf16 %v631_v36 }
 0x267   : > { %2353 = vmatpush2.bf16.msra.mxu1 %v1904_v7 }
 0x268   : > { %2394 = vmatpush2.bf16.msra.mxu0 %v1906_v8  ;;  %2354 = vmatprep.subr.bf16.mxu1 %v1841_v9  ;;  %v3829_v8 = vrot.slane %v5555_v50, %v5552_v49  ;;  %v1460_v9 = vunpack.c.l.s8.bf16 %v756_v46 }
 0x269   : > { %2395 = vmatprep.subr.bf16.mxu0 %v1843_v10  ;;  %v692_v10 = vld [vmem:[%s5356_s3 + $0x480] sm:$0xff] }
 0x26b   : > { %2355 = vmatpush2.bf16.msra.mxu1 %v1840_v13  ;;  %v1462_v13 = vunpack.c.l.s8.bf16 %v758_v48 }
 0x26c   : > { %2396 = vmatpush2.bf16.msra.mxu0 %v1842_v14  ;;  %2356 = vmatprep.subr.bf16.mxu1 %v1777_v15  ;;  %v1397_v14 = vunpack.c.h.s8.bf16 %v693_v62 }
 0x26d   : > { %2397 = vmatprep.subr.bf16.mxu0 %v1779_v17  ;;  %v1399_v17 = vunpack.c.h.s8.bf16 %v695_v5 }
 0x26f   : > { %2357 = vmatpush2.bf16.msra.mxu1 %v1776_v19  ;;  %v5582_v19 = vsub.s32 %v4266_v2, %v5419_v40 }
 0x270   : > { %2398 = vmatpush2.bf16.msra.mxu0 %v1778_v20  ;;  %2358 = vmatprep.subr.bf16.mxu1 %v1713_v21 }
 0x271   : > { %2399 = vmatprep.subr.bf16.mxu0 %v1715_v22  ;;  %v1396_v22 = vunpack.c.h.s8.bf16 %v692_v10 }
 0x273   : > { %2359 = vmatpush2.bf16.msra.mxu1 %v1712_v26 }
 0x274   : > { %2400 = vmatpush2.bf16.msra.mxu0 %v1714_v27  ;;  %2360 = vmatprep.subr.bf16.mxu1 %v1649_v28 }
 0x275   : > { %2401 = vmatprep.subr.bf16.mxu0 %v1651_v30  ;;  %v1398_v30 = vunpack.c.h.s8.bf16 %v694_v18 }
 0x277   : > { %2361 = vmatpush2.bf16.msra.mxu1 %v1648_v32 }
 0x278   : > { %2402 = vmatpush2.bf16.msra.mxu0 %v1650_v33  ;;  %2362 = vmatprep.subr.bf16.mxu1 %v1585_v34  ;;  %v1335_v34 = vunpack.c.l.s8.bf16 %v695_v5 }
 0x279   : > { %2403 = vmatprep.subr.bf16.mxu0 %v1587_v35  ;;  %v629_v35 = vld [vmem:[%s5356_s3 + $0x288] sm:$0xff] }
 0x27a   : > { %v1269_v46 = vunpack.c.h.s8.bf16 %v629_v35 }
 0x27b   : > { %2363 = vmatpush2.bf16.msra.mxu1 %v1584_v38 }
 0x27c   : > { %2404 = vmatpush2.bf16.msra.mxu0 %v1586_v42  ;;  %2414 = vmatprep.subr.bf16.mxu1 %v1525_v44  ;;  %v1332_v42 = vunpack.c.l.s8.bf16 %v692_v10  ;;  %v1334_v44 = vunpack.c.l.s8.bf16 %v694_v18  ;;  %v949_v18 = vld [vmem:[%s5356_s3 + $0xc88] sm:$0xff] }
 0x27d   : > { %2455 = vmatprep.subr.bf16.mxu0 %v1527_v47  ;;  %v628_v47 = vld [vmem:[%s5356_s3 + $0x280] sm:$0xff] }
 0x27e   : > { %2365 = vmatmul.mubr.bf16.vlgmr.msra.gmra.mxu1 %v5433_v56  ;;  %v2120_v63 = vpop.f32.mrf.mxu1  ;;  %v2161_v0 = vpop.f32.mrf.mxu0 }
 0x27f   : > { %2406 = vmatmul.mubr.bf16.vlgmr.msra.gmra.mxu0 %v5433_v56  ;;  %v3734_v6 = vmul.f32 %v3417_v52, %v2120_v63  ;;  %v3736_v7 = vmul.f32 %v3425_v54, %v2161_v0  ;;  %2415 = vmatpush1.bf16.msra.mxu1 %v1524_v55  ;;  %v1268_v52 = vunpack.c.h.s8.bf16 %v628_v47  ;;  %v1270_v54 = vunpack.c.h.s8.bf16 %v630_v51  ;;  %v564_v63 = vld [vmem:[%s5356_s3 + $0x80] sm:$0xff] }
 0x280   : > { %2446 = vmatprep.mubr.bf16.mxu1 %v5431_v53  ;;  %2456 = vmatpush1.bf16.msra.mxu0 %v1526_v57  ;;  %v2122_v11 = vpop.f32.mrf.mxu1  ;;  %v2163_v12 = vpop.f32.mrf.mxu0  ;;  %v1205_v55 = vunpack.c.l.s8.bf16 %v629_v35  ;;  %v1207_v57 = vunpack.c.l.s8.bf16 %v631_v36  ;;  %v1140_v2 = vunpack.c.h.s8.bf16 %v564_v63 }
 0x281   : > { %2487 = vmatprep.mubr.bf16.mxu0 %v5431_v53  ;;  %v3735_v15 = vmul.f32 %v3421_v60, %v2122_v11  ;;  %v3737_v16 = vmul.f32 %v3429_v61, %v2163_v12  ;;  %2416 = vmatprep.subr.bf16.mxu1 %v1461_v3  ;;  %v4134_v23 = vadd.f32 %v3817_v58, %v3734_v6  ;;  %v565_v58 = vld [vmem:[%s5356_s3 + $0x88] sm:$0xff]  ;;  %v1204_v60 = vunpack.c.l.s8.bf16 %v628_v47  ;;  %v1012_v11 = vld [vmem:[%s5356_s3 + $0xe80] sm:$0xff] }
 0x282   : > { %2457 = vmatprep.subr.bf16.mxu0 %v1463_v4  ;;  %v2124_v20 = vpop.f32.mrf.mxu1  ;;  %v2165_v21 = vpop.f32.mrf.mxu0  ;;  %v4136_v25 = vadd.f32 %v3825_v59, %v3736_v7  ;;  %v567_v59 = vld [vmem:[%s5356_s3 + $0x98] sm:$0xff]  ;;  %v1206_v61 = vunpack.c.l.s8.bf16 %v630_v51  ;;  %v1141_v62 = vunpack.c.h.s8.bf16 %v565_v58  ;;  %v1077_v4 = vunpack.c.l.s8.bf16 %v565_v58  ;;  %v1013_v6 = vld [vmem:[%s5356_s3 + $0xe88] sm:$0xff] }
 0x283   : > { %v4135_v26 = vadd.f32 %v3821_v1, %v3735_v15  ;;  %v4137_v27 = vadd.f32 %v3829_v8, %v3737_v16  ;;  %2417 = vmatpush1.bf16.msra.mxu1 %v1460_v9  ;;  %v1143_v0 = vunpack.c.h.s8.bf16 %v567_v59  ;;  %v566_v1 = vld [vmem:[%s5356_s3 + $0x90] sm:$0xff]  ;;  %v1079_v5 = vunpack.c.l.s8.bf16 %v567_v59  ;;  %v1015_v7 = vld [vmem:[%s5356_s3 + $0xe98] sm:$0xff] }
 0x284   : > { %2458 = vmatpush1.bf16.msra.mxu0 %v1462_v13  ;;  %v2125_v28 = vpop.f32.mrf.mxu1  ;;  %v2166_v29 = vpop.f32.mrf.mxu0  ;;  %2418 = vmatprep.subr.bf16.mxu1 %v1397_v14  ;;  %v1142_v3 = vunpack.c.h.s8.bf16 %v566_v1  ;;  %v1076_v8 = vunpack.c.l.s8.bf16 %v564_v63  ;;  %v1078_v9 = vunpack.c.l.s8.bf16 %v566_v1  ;;  %v2037_v10 = vunpack.c.h.s8.bf16 %v1013_v6  ;;  %v1014_v13 = vld [vmem:[%s5356_s3 + $0xe90] sm:$0xff]  ;;  %v951_v20 = vld [vmem:[%s5356_s3 + $0xc98] sm:$0xff] }
 0x285   : > { %v4262_v32 = vcombine.low %v4134_v23, %v4135_v26  ;;  %v4263_v33 = vcombine.low %v4136_v25, %v4137_v27  ;;  %2459 = vmatprep.subr.bf16.mxu0 %v1399_v17  ;;  %v2039_v12 = vunpack.c.h.s8.bf16 %v1015_v7  ;;  %v2036_v14 = vunpack.c.h.s8.bf16 %v1012_v11  ;;  %v948_v25 = vld [vmem:[%s5356_s3 + $0xc80] sm:$0xff]  ;;  %v950_v27 = vld [vmem:[%s5356_s3 + $0xc90] sm:$0xff]  ;;  %v823_v51 = vld [vmem:[%s5356_s3 + $0x898] sm:$0xff] }
 0x286   : > { %v2038_v15 = vunpack.c.h.s8.bf16 %v1014_v13  ;;  %v1973_v16 = vunpack.c.l.s8.bf16 %v1013_v6  ;;  %v1975_v17 = vunpack.c.l.s8.bf16 %v1015_v7  ;;  %v1972_v21 = vunpack.c.l.s8.bf16 %v1012_v11  ;;  %v822_v59 = vld [vmem:[%s5356_s3 + $0x890] sm:$0xff]  ;;  %v763_v1 = vld [vmem:[%s5356_s3 + $0x6b8] sm:$0xff]  ;;  %v760_v7 = vld [vmem:[%s5356_s3 + $0x6a0] sm:$0xff] }
 0x287   : > { %v4270_v37 = vrot.slane %v4262_v32, %v5582_v19  ;;  %v4277_v38 = vrot.slane %v4263_v33, %v5582_v19  ;;  %2419 = vmatpush1.bf16.msra.mxu1 %v1396_v22  ;;  %v1974_v22 = vunpack.c.l.s8.bf16 %v1014_v13  ;;  %v1909_v23 = vunpack.c.h.s8.bf16 %v949_v18  ;;  %v885_v32 = vld [vmem:[%s5356_s3 + $0xa88] sm:$0xff]  ;;  %v887_v33 = vld [vmem:[%s5356_s3 + $0xa98] sm:$0xff] }
 0x288   : > { %2460 = vmatpush1.bf16.msra.mxu0 %v1398_v30  ;;  %2420 = vmatprep.subr.bf16.mxu1 %v1333_v31  ;;  %v1911_v26 = vunpack.c.h.s8.bf16 %v951_v20  ;;  %v1908_v28 = vunpack.c.h.s8.bf16 %v948_v25  ;;  %v1910_v29 = vunpack.c.h.s8.bf16 %v950_v27  ;;  %v1845_v30 = vunpack.c.l.s8.bf16 %v949_v18 }
 0x289   : > { %v4278_v48 = vcombine.low %v4270_v37, %v4277_v38  ;;  %2461 = vmatprep.subr.bf16.mxu0 %v1335_v34  ;;  %v1847_v31 = vunpack.c.l.s8.bf16 %v951_v20  ;;  %v1844_v34 = vunpack.c.l.s8.bf16 %v948_v25  ;;  %v1846_v35 = vunpack.c.l.s8.bf16 %v950_v27  ;;  %v884_v37 = vld [vmem:[%s5356_s3 + $0xa80] sm:$0xff]  ;;  %v697_v20 = vld [vmem:[%s5356_s3 + $0x4a8] sm:$0xff] }
 0x28a   : > { %v1781_v36 = vunpack.c.h.s8.bf16 %v885_v32  ;;  %v1783_v38 = vunpack.c.h.s8.bf16 %v887_v33  ;;  %v1717_v47 = vunpack.c.l.s8.bf16 %v885_v32  ;;  %v1655_v58 = vunpack.c.h.s8.bf16 %v823_v51 }
 0x28b   : > { %4550 = vst [vmem:[%s5591_s17] sm:$0xff] %v4278_v48  ;;  %2421 = vmatpush1.bf16.msra.mxu1 %v1332_v42  ;;  %v886_v42 = vld [vmem:[%s5356_s3 + $0xa90] sm:$0xff]  ;;  %v1719_v48 = vunpack.c.l.s8.bf16 %v887_v33  ;;  %v1591_v63 = vunpack.c.l.s8.bf16 %v823_v51  ;;  %v5628_v11 = vsub.s32 7, %v5419_v40  ;;  %v1467_v27 = vunpack.c.l.s8.bf16 %v763_v1 }
 0x28c   : > { %2462 = vmatpush1.bf16.msra.mxu0 %v1334_v44  ;;  %2422 = vmatprep.subr.bf16.mxu1 %v1269_v46  ;;  %v1780_v44 = vunpack.c.h.s8.bf16 %v884_v37  ;;  %v1782_v46 = vunpack.c.h.s8.bf16 %v886_v42 }
 0x28d   : > { %2463 = vmatprep.subr.bf16.mxu0 %v1271_v24  ;;  %v821_v24 = vld [vmem:[%s5356_s3 + $0x888] sm:$0xff]  ;;  %v3445_v18 = vrot.slane %v5547_v45, %v5628_v11 }
 0x28f   : > { %2423 = vmatpush1.bf16.msra.mxu1 %v1268_v52  ;;  %v1716_v52 = vunpack.c.l.s8.bf16 %v884_v37 }
 0x290   : > { %2464 = vmatpush1.bf16.msra.mxu0 %v1270_v54  ;;  %2424 = vmatprep.subr.bf16.mxu1 %v1205_v55  ;;  %v1718_v54 = vunpack.c.l.s8.bf16 %v886_v42  ;;  %v1653_v55 = vunpack.c.h.s8.bf16 %v821_v24 }
 0x291   : > { %2465 = vmatprep.subr.bf16.mxu0 %v1207_v57  ;;  %v820_v57 = vld [vmem:[%s5356_s3 + $0x880] sm:$0xff] }
 0x293   : > { %2425 = vmatpush1.bf16.msra.mxu1 %v1204_v60  ;;  %v1652_v60 = vunpack.c.h.s8.bf16 %v820_v57 }
 0x294   : > { %2466 = vmatpush1.bf16.msra.mxu0 %v1206_v61  ;;  %2426 = vmatprep.subr.bf16.mxu1 %v1141_v62  ;;  %v1654_v61 = vunpack.c.h.s8.bf16 %v822_v59  ;;  %v1589_v62 = vunpack.c.l.s8.bf16 %v821_v24 }
 0x295   : > { %2467 = vmatprep.subr.bf16.mxu0 %v1143_v0  ;;  %v761_v0 = vld [vmem:[%s5356_s3 + $0x6a8] sm:$0xff] }
 0x296   : > { %v1529_v6 = vunpack.c.h.s8.bf16 %v761_v0 }
 0x297   : > { %2427 = vmatpush1.bf16.msra.mxu1 %v1140_v2  ;;  %v1588_v2 = vunpack.c.l.s8.bf16 %v820_v57  ;;  %v1337_v57 = vunpack.c.l.s8.bf16 %v697_v20 }
 0x298   : > { %2468 = vmatpush1.bf16.msra.mxu0 %v1142_v3  ;;  %2428 = vmatprep.subr.bf16.mxu1 %v1077_v4  ;;  %v5617_v3 = vsub.s32 4, %v5419_v40  ;;  %v5620_v4 = vsub.s32 6, %v5419_v40 }
 0x299   : > { %2469 = vmatprep.subr.bf16.mxu0 %v1079_v5  ;;  %v1590_v5 = vunpack.c.l.s8.bf16 %v822_v59 }
 0x29a   : > { %v3441_v13 = vrot.slane %v5547_v45, %v5620_v4 }
 0x29b   : > { %2429 = vmatpush1.bf16.msra.mxu1 %v1076_v8  ;;  %v1531_v8 = vunpack.c.h.s8.bf16 %v763_v1 }
 0x29c   : > { %2470 = vmatpush1.bf16.msra.mxu0 %v1078_v9  ;;  %2430 = vmatprep.subr.bf16.mxu1 %v2037_v10  ;;  %v762_v9 = vld [vmem:[%s5356_s3 + $0x6b0] sm:$0xff]  ;;  %v5625_v10 = vsub.s32 5, %v5419_v40 }
 0x29d   : > { %2471 = vmatprep.subr.bf16.mxu0 %v2039_v12  ;;  %v3433_v12 = vrot.slane %v5547_v45, %v5617_v3  ;;  %v1466_v33 = vunpack.c.l.s8.bf16 %v762_v9 }
 0x29e   : > { %v3437_v40 = vrot.slane %v5547_v45, %v5625_v10  ;;  %v3837_v25 = vrot.slane %v5555_v50, %v5625_v10  ;;  %v3845_v45 = vrot.slane %v5555_v50, %v5628_v11 }
 0x29f   : > { %2431 = vmatpush2.bf16.msra.mxu1 %v2036_v14  ;;  %v1528_v14 = vunpack.c.h.s8.bf16 %v760_v7 }
 0x2a0   : > { %2472 = vmatpush2.bf16.msra.mxu0 %v2038_v15  ;;  %2432 = vmatprep.subr.bf16.mxu1 %v1973_v16  ;;  %v1530_v15 = vunpack.c.h.s8.bf16 %v762_v9  ;;  %v3833_v16 = vrot.slane %v5555_v50, %v5617_v3  ;;  %v634_v9 = vld [vmem:[%s5356_s3 + $0x2b0] sm:$0xff] }
 0x2a1   : > { %2473 = vmatprep.subr.bf16.mxu0 %v1975_v17  ;;  %v3841_v17 = vrot.slane %v5555_v50, %v5620_v4 }
 0x2a3   : > { %2433 = vmatpush2.bf16.msra.mxu1 %v1972_v21  ;;  %v699_v21 = vld [vmem:[%s5356_s3 + $0x4b8] sm:$0xff] }
 0x2a4   : > { %2474 = vmatpush2.bf16.msra.mxu0 %v1974_v22  ;;  %2434 = vmatprep.subr.bf16.mxu1 %v1909_v23 }
 0x2a5   : > { %2475 = vmatprep.subr.bf16.mxu0 %v1911_v26  ;;  %v1465_v26 = vunpack.c.l.s8.bf16 %v761_v0 }
 0x2a7   : > { %2435 = vmatpush2.bf16.msra.mxu1 %v1908_v28 }
 0x2a8   : > { %2476 = vmatpush2.bf16.msra.mxu0 %v1910_v29  ;;  %2436 = vmatprep.subr.bf16.mxu1 %v1845_v30  ;;  %v1464_v30 = vunpack.c.l.s8.bf16 %v760_v7 }
 0x2a9   : > { %2477 = vmatprep.subr.bf16.mxu0 %v1847_v31 }
 0x2ab   : > { %2437 = vmatpush2.bf16.msra.mxu1 %v1844_v34  ;;  %v1401_v34 = vunpack.c.h.s8.bf16 %v697_v20 }
 0x2ac   : > { %2478 = vmatpush2.bf16.msra.mxu0 %v1846_v35  ;;  %2438 = vmatprep.subr.bf16.mxu1 %v1781_v36  ;;  %v1403_v35 = vunpack.c.h.s8.bf16 %v699_v21  ;;  %v696_v36 = vld [vmem:[%s5356_s3 + $0x4a0] sm:$0xff] }
 0x2ad   : > { %2479 = vmatprep.subr.bf16.mxu0 %v1783_v38  ;;  %v1400_v51 = vunpack.c.h.s8.bf16 %v696_v36  ;;  %v1336_v1 = vunpack.c.l.s8.bf16 %v696_v36 }
 0x2af   : > { %2439 = vmatpush2.bf16.msra.mxu1 %v1780_v44 }
 0x2b0   : > { %2480 = vmatpush2.bf16.msra.mxu0 %v1782_v46  ;;  %2440 = vmatprep.subr.bf16.mxu1 %v1717_v47  ;;  %v698_v46 = vld [vmem:[%s5356_s3 + $0x4b0] sm:$0xff] }
 0x2b1   : > { %2481 = vmatprep.subr.bf16.mxu0 %v1719_v48 }
 0x2b3   : > { %2441 = vmatpush2.bf16.msra.mxu1 %v1716_v52 }
 0x2b4   : > { %2482 = vmatpush2.bf16.msra.mxu0 %v1718_v54  ;;  %2442 = vmatprep.subr.bf16.mxu1 %v1653_v55  ;;  %v1402_v55 = vunpack.c.h.s8.bf16 %v698_v46 }
 0x2b5   : > { %2483 = vmatprep.subr.bf16.mxu0 %v1655_v58 }
 0x2b7   : > { %2443 = vmatpush2.bf16.msra.mxu1 %v1652_v60  ;;  %v1339_v60 = vunpack.c.l.s8.bf16 %v699_v21  ;;  %v568_v21 = vld [vmem:[%s5356_s3 + $0xa0] sm:$0xff] }
 0x2b8   : > { %2484 = vmatpush2.bf16.msra.mxu0 %v1654_v61  ;;  %2444 = vmatprep.subr.bf16.mxu1 %v1589_v62  ;;  %v633_v61 = vld [vmem:[%s5356_s3 + $0x2a8] sm:$0xff]  ;;  %v635_v62 = vld [vmem:[%s5356_s3 + $0x2b8] sm:$0xff] }
 0x2b9   : > { %2485 = vmatprep.subr.bf16.mxu0 %v1591_v63 }
 0x2bb   : > { %2445 = vmatpush2.bf16.msra.mxu1 %v1588_v2  ;;  %v1338_v2 = vunpack.c.l.s8.bf16 %v698_v46  ;;  %v955_v46 = vld [vmem:[%s5356_s3 + $0xcb8] sm:$0xff] }
 0x2bc   : > { %2486 = vmatpush2.bf16.msra.mxu0 %v1590_v5  ;;  %2496 = vmatprep.subr.bf16.mxu1 %v1529_v6  ;;  %v1273_v5 = vunpack.c.h.s8.bf16 %v633_v61  ;;  %v632_v6 = vld [vmem:[%s5356_s3 + $0x2a0] sm:$0xff] }
 0x2bd   : > { %2537 = vmatprep.subr.bf16.mxu0 %v1531_v8  ;;  %v1275_v8 = vunpack.c.h.s8.bf16 %v635_v62 }
 0x2be   : > { %v2202_v22 = vpop.f32.mrf.mxu1  ;;  %v2243_v23 = vpop.f32.mrf.mxu0  ;;  %2447 = vmatmul.mubr.bf16.vlgmr.msra.gmra.mxu1 %v5433_v56 }
 0x2bf   : > { %v3738_v28 = vmul.f32 %v3433_v12, %v2202_v22  ;;  %v3740_v29 = vmul.f32 %v3441_v13, %v2243_v23  ;;  %2488 = vmatmul.mubr.bf16.vlgmr.msra.gmra.mxu0 %v5433_v56  ;;  %2497 = vmatpush1.bf16.msra.mxu1 %v1528_v14  ;;  %v1272_v12 = vunpack.c.h.s8.bf16 %v632_v6  ;;  %v1274_v13 = vunpack.c.h.s8.bf16 %v634_v9  ;;  %v570_v23 = vld [vmem:[%s5356_s3 + $0xb0] sm:$0xff] }
 0x2c0   : > { %2528 = vmatprep.mubr.bf16.mxu1 %v5431_v53  ;;  %2538 = vmatpush1.bf16.msra.mxu0 %v1530_v15  ;;  %v2204_v31 = vpop.f32.mrf.mxu1  ;;  %v2245_v32 = vpop.f32.mrf.mxu0  ;;  %v1209_v14 = vunpack.c.l.s8.bf16 %v633_v61  ;;  %v1211_v15 = vunpack.c.l.s8.bf16 %v635_v62 }
 0x2c1   : > { %v4138_v37 = vadd.f32 %v3833_v16, %v3738_v28  ;;  %v4140_v38 = vadd.f32 %v3841_v17, %v3740_v29  ;;  %2569 = vmatprep.mubr.bf16.mxu0 %v5431_v53  ;;  %v3739_v42 = vmul.f32 %v3437_v40, %v2204_v31  ;;  %v3741_v44 = vmul.f32 %v3445_v18, %v2245_v32  ;;  %v569_v16 = vld [vmem:[%s5356_s3 + $0xa8] sm:$0xff]  ;;  %v571_v17 = vld [vmem:[%s5356_s3 + $0xb8] sm:$0xff] }
 0x2c2   : > { %v2206_v47 = vpop.f32.mrf.mxu1  ;;  %v2247_v48 = vpop.f32.mrf.mxu0  ;;  %2498 = vmatprep.subr.bf16.mxu1 %v1465_v26  ;;  %2539 = vmatprep.subr.bf16.mxu0 %v1467_v27  ;;  %v1208_v40 = vunpack.c.l.s8.bf16 %v632_v6  ;;  %v1210_v18 = vunpack.c.l.s8.bf16 %v634_v9  ;;  %v1145_v20 = vunpack.c.h.s8.bf16 %v569_v16  ;;  %v1147_v22 = vunpack.c.h.s8.bf16 %v571_v17  ;;  %v1017_v29 = vld [vmem:[%s5356_s3 + $0xea8] sm:$0xff] }
 0x2c3   : > { %v4139_v50 = vadd.f32 %v3837_v25, %v3739_v42  ;;  %v4141_v24 = vadd.f32 %v3845_v45, %v3741_v44  ;;  %2499 = vmatpush1.bf16.msra.mxu1 %v1464_v30  ;;  %v1144_v25 = vunpack.c.h.s8.bf16 %v568_v21  ;;  %v1146_v26 = vunpack.c.h.s8.bf16 %v570_v23  ;;  %v1019_v45 = vld [vmem:[%s5356_s3 + $0xeb8] sm:$0xff]  ;;  %v953_v44 = vld [vmem:[%s5356_s3 + $0xca8] sm:$0xff] }
 0x2c4   : > { %2540 = vmatpush1.bf16.msra.mxu0 %v1466_v33  ;;  %v2207_v52 = vpop.f32.mrf.mxu1  ;;  %v2248_v54 = vpop.f32.mrf.mxu0  ;;  %2500 = vmatprep.subr.bf16.mxu1 %v1401_v34  ;;  %v1081_v27 = vunpack.c.l.s8.bf16 %v569_v16  ;;  %v1083_v28 = vunpack.c.l.s8.bf16 %v571_v17  ;;  %v1080_v30 = vunpack.c.l.s8.bf16 %v568_v21  ;;  %v1082_v31 = vunpack.c.l.s8.bf16 %v570_v23  ;;  %v1016_v33 = vld [vmem:[%s5356_s3 + $0xea0] sm:$0xff]  ;;  %v825_v9 = vld [vmem:[%s5356_s3 + $0x8a8] sm:$0xff] }
 0x2c5   : > { %v4279_v58 = vcombine.low %v4138_v37, %v4139_v50  ;;  %v4280_v59 = vcombine.low %v4140_v38, %v4141_v24  ;;  %2541 = vmatprep.subr.bf16.mxu0 %v1403_v35  ;;  %v2041_v32 = vunpack.c.h.s8.bf16 %v1017_v29  ;;  %v2043_v34 = vunpack.c.h.s8.bf16 %v1019_v45  ;;  %v1018_v35 = vld [vmem:[%s5356_s3 + $0xeb0] sm:$0xff]  ;;  %v952_v24 = vld [vmem:[%s5356_s3 + $0xca0] sm:$0xff]  ;;  %v765_v23 = vld [vmem:[%s5356_s3 + $0x6c8] sm:$0xff] }
 0x2c6   : > { %v2040_v36 = vunpack.c.h.s8.bf16 %v1016_v33  ;;  %v2042_v37 = vunpack.c.h.s8.bf16 %v1018_v35  ;;  %v1977_v38 = vunpack.c.l.s8.bf16 %v1017_v29  ;;  %v1979_v42 = vunpack.c.l.s8.bf16 %v1019_v45  ;;  %v954_v52 = vld [vmem:[%s5356_s3 + $0xcb0] sm:$0xff]  ;;  %v824_v16 = vld [vmem:[%s5356_s3 + $0x8a0] sm:$0xff] }
 0x2c7   : > { %v4287_v63 = vrot.slane %v4279_v58, %v5582_v19  ;;  %v4294_v0 = vrot.slane %v4280_v59, %v5582_v19  ;;  %2501 = vmatpush1.bf16.msra.mxu1 %v1400_v51  ;;  %v1976_v47 = vunpack.c.l.s8.bf16 %v1016_v33  ;;  %v1978_v48 = vunpack.c.l.s8.bf16 %v1018_v35  ;;  %v889_v59 = vld [vmem:[%s5356_s3 + $0xaa8] sm:$0xff]  ;;  %v764_v45 = vld [vmem:[%s5356_s3 + $0x6c0] sm:$0xff] }
 0x2c8   : > { %2542 = vmatpush1.bf16.msra.mxu0 %v1402_v55  ;;  %2502 = vmatprep.subr.bf16.mxu1 %v1337_v57  ;;  %v1913_v50 = vunpack.c.h.s8.bf16 %v953_v44  ;;  %v1915_v51 = vunpack.c.h.s8.bf16 %v955_v46  ;;  %v1912_v54 = vunpack.c.h.s8.bf16 %v952_v24  ;;  %v1914_v55 = vunpack.c.h.s8.bf16 %v954_v52  ;;  %v5691_v33 = vld [vmem:[%s5366_s12 + $0x8] sm:$0xff] }
 0x2c9   : > { %v4295_v7 = vcombine.low %v4287_v63, %v4294_v0  ;;  %2543 = vmatprep.subr.bf16.mxu0 %v1339_v60  ;;  %v1849_v57 = vunpack.c.l.s8.bf16 %v953_v44  ;;  %v1851_v58 = vunpack.c.l.s8.bf16 %v955_v46  ;;  %v891_v60 = vld [vmem:[%s5356_s3 + $0xab8] sm:$0xff]  ;;  %v1848_v61 = vunpack.c.l.s8.bf16 %v952_v24  ;;  %v888_v0 = vld [vmem:[%s5356_s3 + $0xaa0] sm:$0xff] }
 0x2ca   : > { %v1850_v62 = vunpack.c.l.s8.bf16 %v954_v52  ;;  %v1785_v63 = vunpack.c.h.s8.bf16 %v889_v59  ;;  %v1593_v21 = vunpack.c.l.s8.bf16 %v825_v9  ;;  %v1533_v29 = vunpack.c.h.s8.bf16 %v765_v23 }
 0x2cb   : > { %4551 = vst [vmem:[%s5591_s17 + $0x8] sm:$0xff] %v4295_v7  ;;  %2503 = vmatpush1.bf16.msra.mxu1 %v1336_v1  ;;  %v1787_v1 = vunpack.c.h.s8.bf16 %v891_v60  ;;  %v1721_v7 = vunpack.c.l.s8.bf16 %v889_v59  ;;  %v3849_v46 = vrot.slane %v5691_v33, %v5422_v41  ;;  %v3857_v52 = vrot.slane %v5691_v33, %v5544_v39 }
 0x2cc   : > { %2544 = vmatpush1.bf16.msra.mxu0 %v1338_v2  ;;  %2504 = vmatprep.subr.bf16.mxu1 %v1273_v5  ;;  %v890_v2 = vld [vmem:[%s5356_s3 + $0xab0] sm:$0xff]  ;;  %v1784_v5 = vunpack.c.h.s8.bf16 %v888_v0  ;;  %v3861_v59 = vrot.slane %v5691_v33, %v5552_v49 }
 0x2cd   : > { %2545 = vmatprep.subr.bf16.mxu0 %v1275_v8  ;;  %v1786_v6 = vunpack.c.h.s8.bf16 %v890_v2  ;;  %v1723_v8 = vunpack.c.l.s8.bf16 %v891_v60 }
 0x2cf   : > { %2505 = vmatpush1.bf16.msra.mxu1 %v1272_v12  ;;  %v827_v12 = vld [vmem:[%s5356_s3 + $0x8b8] sm:$0xff] }
 0x2d0   : > { %2546 = vmatpush1.bf16.msra.mxu0 %v1274_v13  ;;  %2506 = vmatprep.subr.bf16.mxu1 %v1209_v14  ;;  %v1720_v13 = vunpack.c.l.s8.bf16 %v888_v0  ;;  %v1722_v14 = vunpack.c.l.s8.bf16 %v890_v2  ;;  %v1659_v17 = vunpack.c.h.s8.bf16 %v827_v12  ;;  %v702_v2 = vld [vmem:[%s5356_s3 + $0x4d0] sm:$0xff] }
 0x2d1   : > { %2547 = vmatprep.subr.bf16.mxu0 %v1211_v15  ;;  %v1657_v15 = vunpack.c.h.s8.bf16 %v825_v9 }
 0x2d3   : > { %2507 = vmatpush1.bf16.msra.mxu1 %v1208_v40  ;;  %v826_v40 = vld [vmem:[%s5356_s3 + $0x8b0] sm:$0xff] }
 0x2d4   : > { %2548 = vmatpush1.bf16.msra.mxu0 %v1210_v18  ;;  %2508 = vmatprep.subr.bf16.mxu1 %v1145_v20  ;;  %v1656_v18 = vunpack.c.h.s8.bf16 %v824_v16  ;;  %v1658_v20 = vunpack.c.h.s8.bf16 %v826_v40 }
 0x2d5   : > { %2549 = vmatprep.subr.bf16.mxu0 %v1147_v22  ;;  %v1595_v22 = vunpack.c.l.s8.bf16 %v827_v12 }
 0x2d7   : > { %2509 = vmatpush1.bf16.msra.mxu1 %v1144_v25  ;;  %v767_v25 = vld [vmem:[%s5356_s3 + $0x6d8] sm:$0xff] }
 0x2d8   : > { %2550 = vmatpush1.bf16.msra.mxu0 %v1146_v26  ;;  %2510 = vmatprep.subr.bf16.mxu1 %v1081_v27  ;;  %v1592_v26 = vunpack.c.l.s8.bf16 %v824_v16  ;;  %v1594_v27 = vunpack.c.l.s8.bf16 %v826_v40  ;;  %v1406_v16 = vunpack.c.h.s8.bf16 %v702_v2 }
 0x2d9   : > { %2551 = vmatprep.subr.bf16.mxu0 %v1083_v28  ;;  %v5684_v28 = vld [vmem:[%s5363_s20 + $0x8] sm:$0xff] }
 0x2da   : > { %v3457_v35 = vrot.slane %v5684_v28, %v5544_v39 }
 0x2db   : > { %2511 = vmatpush1.bf16.msra.mxu1 %v1080_v30  ;;  %v1535_v30 = vunpack.c.h.s8.bf16 %v767_v25 }
 0x2dc   : > { %2552 = vmatpush1.bf16.msra.mxu0 %v1082_v31  ;;  %2512 = vmatprep.subr.bf16.mxu1 %v2041_v32  ;;  %v766_v31 = vld [vmem:[%s5356_s3 + $0x6d0] sm:$0xff]  ;;  %v3449_v32 = vrot.slane %v5684_v28, %v5422_v41 }
 0x2dd   : > { %2553 = vmatprep.subr.bf16.mxu0 %v2043_v34  ;;  %v1532_v34 = vunpack.c.h.s8.bf16 %v764_v45  ;;  %v1470_v60 = vunpack.c.l.s8.bf16 %v766_v31 }
 0x2df   : > { %2513 = vmatpush2.bf16.msra.mxu1 %v2040_v36  ;;  %v1534_v36 = vunpack.c.h.s8.bf16 %v766_v31 }
 0x2e0   : > { %2554 = vmatpush2.bf16.msra.mxu0 %v2042_v37  ;;  %2514 = vmatprep.subr.bf16.mxu1 %v1977_v38  ;;  %v3453_v37 = vrot.slane %v5684_v28, %v5425_v43  ;;  %v1469_v38 = vunpack.c.l.s8.bf16 %v765_v23  ;;  %v639_v23 = vld [vmem:[%s5356_s3 + $0x2d8] sm:$0xff] }
 0x2e1   : > { %2555 = vmatprep.subr.bf16.mxu0 %v1979_v42  ;;  %v701_v42 = vld [vmem:[%s5356_s3 + $0x4c8] sm:$0xff]  ;;  %v1279_v31 = vunpack.c.h.s8.bf16 %v639_v23 }
 0x2e3   : > { %2515 = vmatpush2.bf16.msra.mxu1 %v1976_v47  ;;  %v3461_v47 = vrot.slane %v5684_v28, %v5552_v49 }
 0x2e4   : > { %2556 = vmatpush2.bf16.msra.mxu0 %v1978_v48  ;;  %2516 = vmatprep.subr.bf16.mxu1 %v1913_v50  ;;  %v1471_v48 = vunpack.c.l.s8.bf16 %v767_v25  ;;  %v703_v50 = vld [vmem:[%s5356_s3 + $0x4d8] sm:$0xff] }
 0x2e5   : > { %2557 = vmatprep.subr.bf16.mxu0 %v1915_v51 }
 0x2e7   : > { %2517 = vmatpush2.bf16.msra.mxu1 %v1912_v54  ;;  %v3853_v54 = vrot.slane %v5691_v33, %v5425_v43 }
 0x2e8   : > { %2558 = vmatpush2.bf16.msra.mxu0 %v1914_v55  ;;  %2518 = vmatprep.subr.bf16.mxu1 %v1849_v57  ;;  %v1468_v55 = vunpack.c.l.s8.bf16 %v764_v45 }
 0x2e9   : > { %2559 = vmatprep.subr.bf16.mxu0 %v1851_v58 }
 0x2eb   : > { %2519 = vmatpush2.bf16.msra.mxu1 %v1848_v61  ;;  %v1405_v61 = vunpack.c.h.s8.bf16 %v701_v42 }
 0x2ec   : > { %2560 = vmatpush2.bf16.msra.mxu0 %v1850_v62  ;;  %2520 = vmatprep.subr.bf16.mxu1 %v1785_v63  ;;  %v700_v62 = vld [vmem:[%s5356_s3 + $0x4c0] sm:$0xff] }
 0x2ed   : > { %2561 = vmatprep.subr.bf16.mxu0 %v1787_v1  ;;  %v1407_v1 = vunpack.c.h.s8.bf16 %v703_v50  ;;  %v1404_v12 = vunpack.c.h.s8.bf16 %v700_v62 }
 0x2ef   : > { %2521 = vmatpush2.bf16.msra.mxu1 %v1784_v5 }
 0x2f0   : > { %2562 = vmatpush2.bf16.msra.mxu0 %v1786_v6  ;;  %2522 = vmatprep.subr.bf16.mxu1 %v1721_v7 }
 0x2f1   : > { %2563 = vmatprep.subr.bf16.mxu0 %v1723_v8 }
 0x2f3   : > { %2523 = vmatpush2.bf16.msra.mxu1 %v1720_v13 }
 0x2f4   : > { %2564 = vmatpush2.bf16.msra.mxu0 %v1722_v14  ;;  %2524 = vmatprep.subr.bf16.mxu1 %v1657_v15 }
 0x2f5   : > { %2565 = vmatprep.subr.bf16.mxu0 %v1659_v17  ;;  %v1341_v17 = vunpack.c.l.s8.bf16 %v701_v42  ;;  %v573_v42 = vld [vmem:[%s5356_s3 + $0xc8] sm:$0xff] }
 0x2f7   : > { %2525 = vmatpush2.bf16.msra.mxu1 %v1656_v18 }
 0x2f8   : > { %2566 = vmatpush2.bf16.msra.mxu0 %v1658_v20  ;;  %2526 = vmatprep.subr.bf16.mxu1 %v1593_v21  ;;  %v1343_v20 = vunpack.c.l.s8.bf16 %v703_v50  ;;  %v637_v21 = vld [vmem:[%s5356_s3 + $0x2c8] sm:$0xff]  ;;  %v572_v50 = vld [vmem:[%s5356_s3 + $0xc0] sm:$0xff] }
 0x2f9   : > { %2567 = vmatprep.subr.bf16.mxu0 %v1595_v22  ;;  %v1277_v45 = vunpack.c.h.s8.bf16 %v637_v21 }
 0x2fb   : > { %2527 = vmatpush2.bf16.msra.mxu1 %v1592_v26  ;;  %v1340_v26 = vunpack.c.l.s8.bf16 %v700_v62 }
 0x2fc   : > { %2568 = vmatpush2.bf16.msra.mxu0 %v1594_v27  ;;  %2578 = vmatprep.subr.bf16.mxu1 %v1533_v29  ;;  %v1342_v29 = vunpack.c.l.s8.bf16 %v702_v2 }
 0x2fd   : > { %2619 = vmatprep.subr.bf16.mxu0 %v1535_v30  ;;  %v636_v30 = vld [vmem:[%s5356_s3 + $0x2c0] sm:$0xff] }
 0x2fe   : > { %v2284_v44 = vpop.f32.mrf.mxu1  ;;  %2529 = vmatmul.mubr.bf16.vlgmr.msra.gmra.mxu1 %v5433_v56 }
 0x2ff   : > { %v3742_v24 = vmul.f32 %v3449_v32, %v2284_v44  ;;  %v2325_v51 = vpop.f32.mrf.mxu0  ;;  %2570 = vmatmul.mubr.bf16.vlgmr.msra.gmra.mxu0 %v5433_v56  ;;  %2579 = vmatpush1.bf16.msra.mxu1 %v1532_v34  ;;  %v638_v32 = vld [vmem:[%s5356_s3 + $0x2d0] sm:$0xff]  ;;  %v575_v44 = vld [vmem:[%s5356_s3 + $0xd8] sm:$0xff] }
 0x300   : > { %v3744_v57 = vmul.f32 %v3457_v35, %v2325_v51  ;;  %2610 = vmatprep.mubr.bf16.mxu1 %v5431_v53  ;;  %2620 = vmatpush1.bf16.msra.mxu0 %v1534_v36  ;;  %v2286_v58 = vpop.f32.mrf.mxu1  ;;  %v1276_v35 = vunpack.c.h.s8.bf16 %v636_v30  ;;  %v1278_v36 = vunpack.c.h.s8.bf16 %v638_v32  ;;  %v574_v51 = vld [vmem:[%s5356_s3 + $0xd0] sm:$0xff] }
 0x301   : > { %2651 = vmatprep.mubr.bf16.mxu0 %v5431_v53  ;;  %v3743_v63 = vmul.f32 %v3453_v37, %v2286_v58  ;;  %v2327_v0 = vpop.f32.mrf.mxu0  ;;  %2580 = vmatprep.subr.bf16.mxu1 %v1469_v38  ;;  %v4142_v7 = vadd.f32 %v3849_v46, %v3742_v24  ;;  %v1213_v37 = vunpack.c.l.s8.bf16 %v637_v21  ;;  %v1215_v38 = vunpack.c.l.s8.bf16 %v639_v23  ;;  %v1021_v58 = vld [vmem:[%s5356_s3 + $0xec8] sm:$0xff]  ;;  %v895_v23 = vld [vmem:[%s5356_s3 + $0xad8] sm:$0xff] }
 0x302   : > { %v3745_v5 = vmul.f32 %v3461_v47, %v2327_v0  ;;  %v2288_v6 = vpop.f32.mrf.mxu1  ;;  %2621 = vmatprep.subr.bf16.mxu0 %v1471_v48  ;;  %v4144_v13 = vadd.f32 %v3857_v52, %v3744_v57  ;;  %v1212_v46 = vunpack.c.l.s8.bf16 %v636_v30  ;;  %v1214_v47 = vunpack.c.l.s8.bf16 %v638_v32  ;;  %v894_v30 = vld [vmem:[%s5356_s3 + $0xad0] sm:$0xff] }
 0x303   : > { %v4143_v8 = vadd.f32 %v3853_v54, %v3743_v63  ;;  %v2329_v9 = vpop.f32.mrf.mxu0  ;;  %2581 = vmatpush1.bf16.msra.mxu1 %v1468_v55  ;;  %v1149_v48 = vunpack.c.h.s8.bf16 %v573_v42  ;;  %v1151_v24 = vunpack.c.h.s8.bf16 %v575_v44  ;;  %v1148_v52 = vunpack.c.h.s8.bf16 %v572_v50  ;;  %v1020_v63 = vld [vmem:[%s5356_s3 + $0xec0] sm:$0xff] }
 0x304   : > { %v4145_v14 = vadd.f32 %v3861_v59, %v3745_v5  ;;  %2622 = vmatpush1.bf16.msra.mxu0 %v1470_v60  ;;  %v2289_v15 = vpop.f32.mrf.mxu1  ;;  %2582 = vmatprep.subr.bf16.mxu1 %v1405_v61  ;;  %v1150_v54 = vunpack.c.h.s8.bf16 %v574_v51  ;;  %v1085_v55 = vunpack.c.l.s8.bf16 %v573_v42  ;;  %v1087_v57 = vunpack.c.l.s8.bf16 %v575_v44  ;;  %v1023_v59 = vld [vmem:[%s5356_s3 + $0xed8] sm:$0xff] }
 0x305   : > { %v4296_v40 = vcombine.low %v4142_v7, %v4143_v8  ;;  %v2330_v18 = vpop.f32.mrf.mxu0  ;;  %2623 = vmatprep.subr.bf16.mxu0 %v1407_v1  ;;  %v1084_v60 = vunpack.c.l.s8.bf16 %v572_v50  ;;  %v1086_v61 = vunpack.c.l.s8.bf16 %v574_v51  ;;  %v2045_v62 = vunpack.c.h.s8.bf16 %v1021_v58  ;;  %v1022_v1 = vld [vmem:[%s5356_s3 + $0xed0] sm:$0xff]  ;;  %v957_v8 = vld [vmem:[%s5356_s3 + $0xcc8] sm:$0xff]  ;;  %v959_v9 = vld [vmem:[%s5356_s3 + $0xcd8] sm:$0xff] }
 0x306   : > { %v4297_v22 = vcombine.low %v4144_v13, %v4145_v14  ;;  %v2047_v0 = vunpack.c.h.s8.bf16 %v1023_v59  ;;  %v2044_v2 = vunpack.c.h.s8.bf16 %v1020_v63  ;;  %v2046_v5 = vunpack.c.h.s8.bf16 %v1022_v1  ;;  %v956_v15 = vld [vmem:[%s5356_s3 + $0xcc0] sm:$0xff] }
 0x307   : > { %v4304_v25 = vrot.slane %v4296_v40, %v5582_v19  ;;  %2583 = vmatpush1.bf16.msra.mxu1 %v1404_v12  ;;  %v1981_v6 = vunpack.c.l.s8.bf16 %v1021_v58  ;;  %v1983_v7 = vunpack.c.l.s8.bf16 %v1023_v59  ;;  %v1980_v12 = vunpack.c.l.s8.bf16 %v1020_v63 }
 0x308   : > { %v4311_v27 = vrot.slane %v4297_v22, %v5582_v19  ;;  %2624 = vmatpush1.bf16.msra.mxu0 %v1406_v16  ;;  %2584 = vmatprep.subr.bf16.mxu1 %v1341_v17  ;;  %v1982_v13 = vunpack.c.l.s8.bf16 %v1022_v1  ;;  %v1917_v14 = vunpack.c.h.s8.bf16 %v957_v8  ;;  %v1919_v16 = vunpack.c.h.s8.bf16 %v959_v9  ;;  %v958_v17 = vld [vmem:[%s5356_s3 + $0xcd0] sm:$0xff]  ;;  %v893_v22 = vld [vmem:[%s5356_s3 + $0xac8] sm:$0xff] }
 0x309   : > { %2625 = vmatprep.subr.bf16.mxu0 %v1343_v20  ;;  %v1916_v40 = vunpack.c.h.s8.bf16 %v956_v15  ;;  %v1918_v18 = vunpack.c.h.s8.bf16 %v958_v17  ;;  %v1853_v20 = vunpack.c.l.s8.bf16 %v957_v8  ;;  %v1855_v21 = vunpack.c.l.s8.bf16 %v959_v9  ;;  %v705_v8 = vld [vmem:[%s5356_s3 + $0x4e8] sm:$0xff] }
 0x30a   : > { %v4312_v34 = vcombine.low %v4304_v25, %v4311_v27  ;;  %v1852_v25 = vunpack.c.l.s8.bf16 %v956_v15  ;;  %v1789_v27 = vunpack.c.h.s8.bf16 %v893_v22  ;;  %v1790_v32 = vunpack.c.h.s8.bf16 %v894_v30  ;;  %v707_v15 = vld [vmem:[%s5356_s3 + $0x4f8] sm:$0xff] }
 0x30b   : > { %2585 = vmatpush1.bf16.msra.mxu1 %v1340_v26  ;;  %v1854_v26 = vunpack.c.l.s8.bf16 %v958_v17  ;;  %v1726_v42 = vunpack.c.l.s8.bf16 %v894_v30  ;;  %v3465_v63 = vrot.slane %v5684_v28, %v5617_v3  ;;  %v3473_v1 = vrot.slane %v5684_v28, %v5620_v4  ;;  %v706_v30 = vld [vmem:[%s5356_s3 + $0x4f0] sm:$0xff] }
 0x30c   : > { %4552 = vst [vmem:[%s5591_s17 + $0x10] sm:$0xff] %v4312_v34  ;;  %2626 = vmatpush1.bf16.msra.mxu0 %v1342_v29  ;;  %2586 = vmatprep.subr.bf16.mxu1 %v1277_v45  ;;  %v892_v29 = vld [vmem:[%s5356_s3 + $0xac0] sm:$0xff]  ;;  %v1791_v45 = vunpack.c.h.s8.bf16 %v895_v23  ;;  %v1725_v34 = vunpack.c.l.s8.bf16 %v893_v22 }
 0x30d   : > { %2627 = vmatprep.subr.bf16.mxu0 %v1279_v31  ;;  %v1788_v31 = vunpack.c.h.s8.bf16 %v892_v29 }
 0x30f   : > { %2587 = vmatpush1.bf16.msra.mxu1 %v1276_v35  ;;  %v1727_v35 = vunpack.c.l.s8.bf16 %v895_v23  ;;  %v1409_v23 = vunpack.c.h.s8.bf16 %v705_v8 }
 0x310   : > { %2628 = vmatpush1.bf16.msra.mxu0 %v1278_v36  ;;  %2588 = vmatprep.subr.bf16.mxu1 %v1213_v37  ;;  %v829_v36 = vld [vmem:[%s5356_s3 + $0x8c8] sm:$0xff]  ;;  %v831_v37 = vld [vmem:[%s5356_s3 + $0x8d8] sm:$0xff] }
 0x311   : > { %2629 = vmatprep.subr.bf16.mxu0 %v1215_v38  ;;  %v1724_v38 = vunpack.c.l.s8.bf16 %v892_v29  ;;  %v1661_v44 = vunpack.c.h.s8.bf16 %v829_v36  ;;  %v1597_v51 = vunpack.c.l.s8.bf16 %v829_v36 }
 0x313   : > { %2589 = vmatpush1.bf16.msra.mxu1 %v1212_v46  ;;  %v828_v46 = vld [vmem:[%s5356_s3 + $0x8c0] sm:$0xff] }
 0x314   : > { %2630 = vmatpush1.bf16.msra.mxu0 %v1214_v47  ;;  %2590 = vmatprep.subr.bf16.mxu1 %v1149_v48  ;;  %v1663_v47 = vunpack.c.h.s8.bf16 %v831_v37  ;;  %v830_v48 = vld [vmem:[%s5356_s3 + $0x8d0] sm:$0xff]  ;;  %v1660_v50 = vunpack.c.h.s8.bf16 %v828_v46 }
 0x315   : > { %2631 = vmatprep.subr.bf16.mxu0 %v1151_v24  ;;  %v1662_v24 = vunpack.c.h.s8.bf16 %v830_v48  ;;  %v1598_v58 = vunpack.c.l.s8.bf16 %v830_v48  ;;  %v1347_v48 = vunpack.c.l.s8.bf16 %v707_v15 }
 0x317   : > { %2591 = vmatpush1.bf16.msra.mxu1 %v1148_v52  ;;  %v1599_v52 = vunpack.c.l.s8.bf16 %v831_v37 }
 0x318   : > { %2632 = vmatpush1.bf16.msra.mxu0 %v1150_v54  ;;  %2592 = vmatprep.subr.bf16.mxu1 %v1085_v55  ;;  %v769_v54 = vld [vmem:[%s5356_s3 + $0x6e8] sm:$0xff]  ;;  %v771_v55 = vld [vmem:[%s5356_s3 + $0x6f8] sm:$0xff] }
 0x319   : > { %2633 = vmatprep.subr.bf16.mxu0 %v1087_v57  ;;  %v1596_v57 = vunpack.c.l.s8.bf16 %v828_v46  ;;  %v1537_v59 = vunpack.c.h.s8.bf16 %v769_v54 }
 0x31b   : > { %2593 = vmatpush1.bf16.msra.mxu1 %v1084_v60  ;;  %v768_v60 = vld [vmem:[%s5356_s3 + $0x6e0] sm:$0xff] }
 0x31c   : > { %2634 = vmatpush1.bf16.msra.mxu0 %v1086_v61  ;;  %2594 = vmatprep.subr.bf16.mxu1 %v2045_v62  ;;  %v1539_v61 = vunpack.c.h.s8.bf16 %v771_v55  ;;  %v770_v62 = vld [vmem:[%s5356_s3 + $0x6f0] sm:$0xff] }
 0x31d   : > { %2635 = vmatprep.subr.bf16.mxu0 %v2047_v0  ;;  %v1536_v0 = vunpack.c.h.s8.bf16 %v768_v60  ;;  %v1474_v22 = vunpack.c.l.s8.bf16 %v770_v62 }
 0x31f   : > { %2595 = vmatpush2.bf16.msra.mxu1 %v2044_v2  ;;  %v1538_v2 = vunpack.c.h.s8.bf16 %v770_v62 }
 0x320   : > { %2636 = vmatpush2.bf16.msra.mxu0 %v2046_v5  ;;  %2596 = vmatprep.subr.bf16.mxu1 %v1981_v6  ;;  %v3865_v5 = vrot.slane %v5691_v33, %v5617_v3  ;;  %v3469_v6 = vrot.slane %v5684_v28, %v5625_v10 }
 0x321   : > { %2637 = vmatprep.subr.bf16.mxu0 %v1983_v7  ;;  %v1473_v7 = vunpack.c.l.s8.bf16 %v769_v54 }
 0x323   : > { %2597 = vmatpush2.bf16.msra.mxu1 %v1980_v12  ;;  %v3873_v12 = vrot.slane %v5691_v33, %v5620_v4 }
 0x324   : > { %2638 = vmatpush2.bf16.msra.mxu0 %v1982_v13  ;;  %2598 = vmatprep.subr.bf16.mxu1 %v1917_v14  ;;  %v3477_v13 = vrot.slane %v5684_v28, %v5628_v11  ;;  %v1475_v14 = vunpack.c.l.s8.bf16 %v771_v55  ;;  %v3877_v28 = vrot.slane %v5691_v33, %v5628_v11 }
 0x325   : > { %2639 = vmatprep.subr.bf16.mxu0 %v1919_v16 }
 0x327   : > { %2599 = vmatpush2.bf16.msra.mxu1 %v1916_v40  ;;  %v3869_v40 = vrot.slane %v5691_v33, %v5625_v10 }
 0x328   : > { %2640 = vmatpush2.bf16.msra.mxu0 %v1918_v18  ;;  %2600 = vmatprep.subr.bf16.mxu1 %v1853_v20  ;;  %v1472_v18 = vunpack.c.l.s8.bf16 %v768_v60 }
 0x329   : > { %2641 = vmatprep.subr.bf16.mxu0 %v1855_v21 }
 0x32b   : > { %2601 = vmatpush2.bf16.msra.mxu1 %v1852_v25  ;;  %v704_v25 = vld [vmem:[%s5356_s3 + $0x4e0] sm:$0xff] }
 0x32c   : > { %2642 = vmatpush2.bf16.msra.mxu0 %v1854_v26  ;;  %2602 = vmatprep.subr.bf16.mxu1 %v1789_v27  ;;  %v1408_v33 = vunpack.c.h.s8.bf16 %v704_v25  ;;  %v1344_v54 = vunpack.c.l.s8.bf16 %v704_v25 }
 0x32d   : > { %2643 = vmatprep.subr.bf16.mxu0 %v1791_v45  ;;  %v1411_v45 = vunpack.c.h.s8.bf16 %v707_v15 }
 0x32f   : > { %2603 = vmatpush2.bf16.msra.mxu1 %v1788_v31 }
 0x330   : > { %2644 = vmatpush2.bf16.msra.mxu0 %v1790_v32  ;;  %2604 = vmatprep.subr.bf16.mxu1 %v1725_v34 }
 0x331   : > { %2645 = vmatprep.subr.bf16.mxu0 %v1727_v35 }
 0x333   : > { %2605 = vmatpush2.bf16.msra.mxu1 %v1724_v38 }
 0x334   : > { %2646 = vmatpush2.bf16.msra.mxu0 %v1726_v42  ;;  %2606 = vmatprep.subr.bf16.mxu1 %v1661_v44  ;;  %v1410_v42 = vunpack.c.h.s8.bf16 %v706_v30  ;;  %v1345_v44 = vunpack.c.l.s8.bf16 %v705_v8 }
 0x335   : > { %2647 = vmatprep.subr.bf16.mxu0 %v1663_v47 }
 0x337   : > { %2607 = vmatpush2.bf16.msra.mxu1 %v1660_v50  ;;  %v641_v50 = vld [vmem:[%s5356_s3 + $0x2e8] sm:$0xff] }
 0x338   : > { %2648 = vmatpush2.bf16.msra.mxu0 %v1662_v24  ;;  %2608 = vmatprep.subr.bf16.mxu1 %v1597_v51  ;;  %v643_v51 = vld [vmem:[%s5356_s3 + $0x2f8] sm:$0xff] }
 0x339   : > { %2649 = vmatprep.subr.bf16.mxu0 %v1599_v52  ;;  %v1283_v60 = vunpack.c.h.s8.bf16 %v643_v51 }
 0x33b   : > { %2609 = vmatpush2.bf16.msra.mxu1 %v1596_v57  ;;  %v1346_v57 = vunpack.c.l.s8.bf16 %v706_v30 }
 0x33c   : > { %2650 = vmatpush2.bf16.msra.mxu0 %v1598_v58  ;;  %2660 = vmatprep.subr.bf16.mxu1 %v1537_v59  ;;  %v1281_v58 = vunpack.c.h.s8.bf16 %v641_v50  ;;  %v640_v59 = vld [vmem:[%s5356_s3 + $0x2e0] sm:$0xff] }
 0x33d   : > { %2701 = vmatprep.subr.bf16.mxu0 %v1539_v61  ;;  %v642_v61 = vld [vmem:[%s5356_s3 + $0x2f0] sm:$0xff] }
 0x33e   : > { %v2366_v9 = vpop.f32.mrf.mxu1  ;;  %2611 = vmatmul.mubr.bf16.vlgmr.msra.gmra.mxu1 %v5433_v56  ;;  %v1218_v8 = vunpack.c.l.s8.bf16 %v642_v61 }
 0x33f   : > { %v3746_v16 = vmul.f32 %v3465_v63, %v2366_v9  ;;  %v2407_v17 = vpop.f32.mrf.mxu0  ;;  %2652 = vmatmul.mubr.bf16.vlgmr.msra.gmra.mxu0 %v5433_v56  ;;  %2661 = vmatpush1.bf16.msra.mxu1 %v1536_v0  ;;  %v1280_v63 = vunpack.c.h.s8.bf16 %v640_v59  ;;  %v1282_v0 = vunpack.c.h.s8.bf16 %v642_v61 }
 0x340   : > { %v3748_v20 = vmul.f32 %v3473_v1, %v2407_v17  ;;  %2692 = vmatprep.mubr.bf16.mxu1 %v5431_v53  ;;  %2702 = vmatpush1.bf16.msra.mxu0 %v1538_v2  ;;  %v2368_v21 = vpop.f32.mrf.mxu1  ;;  %v1217_v1 = vunpack.c.l.s8.bf16 %v641_v50  ;;  %v1219_v2 = vunpack.c.l.s8.bf16 %v643_v51  ;;  %v899_v50 = vld [vmem:[%s5356_s3 + $0xaf8] sm:$0xff] }
 0x341   : > { %v4146_v26 = vadd.f32 %v3865_v5, %v3746_v16  ;;  %2733 = vmatprep.mubr.bf16.mxu0 %v5431_v53  ;;  %v3747_v27 = vmul.f32 %v3469_v6, %v2368_v21  ;;  %v2409_v29 = vpop.f32.mrf.mxu0  ;;  %2662 = vmatprep.subr.bf16.mxu1 %v1473_v7  ;;  %v577_v5 = vld [vmem:[%s5356_s3 + $0xe8] sm:$0xff]  ;;  %v579_v6 = vld [vmem:[%s5356_s3 + $0xf8] sm:$0xff]  ;;  %v1216_v7 = vunpack.c.l.s8.bf16 %v640_v59  ;;  %v1731_v61 = vunpack.c.l.s8.bf16 %v899_v50 }
 0x342   : > { %v4148_v31 = vadd.f32 %v3873_v12, %v3748_v20  ;;  %v3749_v32 = vmul.f32 %v3477_v13, %v2409_v29  ;;  %v2370_v34 = vpop.f32.mrf.mxu1  ;;  %2703 = vmatprep.subr.bf16.mxu0 %v1475_v14  ;;  %v1153_v9 = vunpack.c.h.s8.bf16 %v577_v5  ;;  %v576_v12 = vld [vmem:[%s5356_s3 + $0xe0] sm:$0xff]  ;;  %v1155_v13 = vunpack.c.h.s8.bf16 %v579_v6  ;;  %v578_v14 = vld [vmem:[%s5356_s3 + $0xf0] sm:$0xff]  ;;  %v1027_v20 = vld [vmem:[%s5356_s3 + $0xef8] sm:$0xff] }
 0x343   : > { %v4147_v35 = vadd.f32 %v3869_v40, %v3747_v27  ;;  %v2411_v36 = vpop.f32.mrf.mxu0  ;;  %2663 = vmatpush1.bf16.msra.mxu1 %v1472_v18  ;;  %v1152_v15 = vunpack.c.h.s8.bf16 %v576_v12  ;;  %v1154_v16 = vunpack.c.h.s8.bf16 %v578_v14  ;;  %v1089_v17 = vunpack.c.l.s8.bf16 %v577_v5  ;;  %v1025_v18 = vld [vmem:[%s5356_s3 + $0xee8] sm:$0xff]  ;;  %v832_v5 = vld [vmem:[%s5356_s3 + $0x8e0] sm:$0xff] }
 0x344   : > { %v4149_v37 = vadd.f32 %v3877_v28, %v3749_v32  ;;  %2704 = vmatpush1.bf16.msra.mxu0 %v1474_v22  ;;  %v2371_v38 = vpop.f32.mrf.mxu1  ;;  %2664 = vmatprep.subr.bf16.mxu1 %v1409_v23  ;;  %v1091_v40 = vunpack.c.l.s8.bf16 %v579_v6  ;;  %v1088_v21 = vunpack.c.l.s8.bf16 %v576_v12  ;;  %v1090_v28 = vunpack.c.l.s8.bf16 %v578_v14  ;;  %v1024_v23 = vld [vmem:[%s5356_s3 + $0xee0] sm:$0xff]  ;;  %v963_v32 = vld [vmem:[%s5356_s3 + $0xcf8] sm:$0xff]  ;;  %v773_v14 = vld [vmem:[%s5356_s3 + $0x708] sm:$0xff] }
 0x345   : > { %v4313_v46 = vcombine.low %v4146_v26, %v4147_v35  ;;  %v2412_v47 = vpop.f32.mrf.mxu0  ;;  %2705 = vmatprep.subr.bf16.mxu0 %v1411_v45  ;;  %v2049_v22 = vunpack.c.h.s8.bf16 %v1025_v18  ;;  %v2051_v25 = vunpack.c.h.s8.bf16 %v1027_v20  ;;  %v1026_v26 = vld [vmem:[%s5356_s3 + $0xef0] sm:$0xff]  ;;  %v2048_v27 = vunpack.c.h.s8.bf16 %v1024_v23 }
 0x346   : > { %v4314_v24 = vcombine.low %v4148_v31, %v4149_v37  ;;  %v2050_v29 = vunpack.c.h.s8.bf16 %v1026_v26  ;;  %v1985_v45 = vunpack.c.l.s8.bf16 %v1025_v18  ;;  %v1987_v30 = vunpack.c.l.s8.bf16 %v1027_v20  ;;  %v961_v31 = vld [vmem:[%s5356_s3 + $0xce8] sm:$0xff]  ;;  %v962_v38 = vld [vmem:[%s5356_s3 + $0xcf0] sm:$0xff]  ;;  %v772_v20 = vld [vmem:[%s5356_s3 + $0x700] sm:$0xff] }
 0x347   : > { %v4321_v52 = vrot.slane %v4313_v46, %v5582_v19  ;;  %2665 = vmatpush1.bf16.msra.mxu1 %v1408_v33  ;;  %v1984_v34 = vunpack.c.l.s8.bf16 %v1024_v23  ;;  %v1986_v35 = vunpack.c.l.s8.bf16 %v1026_v26  ;;  %v1921_v36 = vunpack.c.h.s8.bf16 %v961_v31  ;;  %v960_v33 = vld [vmem:[%s5356_s3 + $0xce0] sm:$0xff]  ;;  %v5807_v23 = vld [vmem:[%s5366_s12 + $0x10] sm:$0xff] }
 0x348   : > { %v4328_v55 = vrot.slane %v4314_v24, %v5582_v19  ;;  %2706 = vmatpush1.bf16.msra.mxu0 %v1410_v42  ;;  %2666 = vmatprep.subr.bf16.mxu1 %v1345_v44  ;;  %v1923_v37 = vunpack.c.h.s8.bf16 %v963_v32  ;;  %v1920_v42 = vunpack.c.h.s8.bf16 %v960_v33  ;;  %v1922_v44 = vunpack.c.h.s8.bf16 %v962_v38 }
 0x349   : > { %2707 = vmatprep.subr.bf16.mxu0 %v1347_v48  ;;  %v1857_v46 = vunpack.c.l.s8.bf16 %v961_v31  ;;  %v1859_v47 = vunpack.c.l.s8.bf16 %v963_v32  ;;  %v897_v48 = vld [vmem:[%s5356_s3 + $0xae8] sm:$0xff]  ;;  %v1856_v24 = vunpack.c.l.s8.bf16 %v960_v33  ;;  %v1858_v51 = vunpack.c.l.s8.bf16 %v962_v38 }
 0x34a   : > { %v4329_v62 = vcombine.low %v4321_v52, %v4328_v55  ;;  %v1793_v52 = vunpack.c.h.s8.bf16 %v897_v48  ;;  %v1795_v55 = vunpack.c.h.s8.bf16 %v899_v50  ;;  %v1541_v18 = vunpack.c.h.s8.bf16 %v773_v14 }
 0x34b   : > { %2667 = vmatpush1.bf16.msra.mxu1 %v1344_v54  ;;  %v896_v54 = vld [vmem:[%s5356_s3 + $0xae0] sm:$0xff]  ;;  %v3881_v32 = vrot.slane %v5807_v23, %v5422_v41  ;;  %v3889_v38 = vrot.slane %v5807_v23, %v5544_v39 }
 0x34c   : > { %4553 = vst [vmem:[%s5591_s17 + $0x18] sm:$0xff] %v4329_v62  ;;  %2708 = vmatpush1.bf16.msra.mxu0 %v1346_v57  ;;  %2668 = vmatprep.subr.bf16.mxu1 %v1281_v58  ;;  %v898_v57 = vld [vmem:[%s5356_s3 + $0xaf0] sm:$0xff]  ;;  %v1792_v58 = vunpack.c.h.s8.bf16 %v896_v54  ;;  %v833_v62 = vld [vmem:[%s5356_s3 + $0x8e8] sm:$0xff] }
 0x34d   : > { %2709 = vmatprep.subr.bf16.mxu0 %v1283_v60  ;;  %v1794_v59 = vunpack.c.h.s8.bf16 %v898_v57  ;;  %v1729_v60 = vunpack.c.l.s8.bf16 %v897_v48  ;;  %v1601_v12 = vunpack.c.l.s8.bf16 %v833_v62  ;;  %v3893_v48 = vrot.slane %v5807_v23, %v5552_v49 }
 0x34f   : > { %2669 = vmatpush1.bf16.msra.mxu1 %v1280_v63  ;;  %v835_v63 = vld [vmem:[%s5356_s3 + $0x8f8] sm:$0xff] }
 0x350   : > { %2710 = vmatpush1.bf16.msra.mxu0 %v1282_v0  ;;  %2670 = vmatprep.subr.bf16.mxu1 %v1217_v1  ;;  %v1728_v0 = vunpack.c.l.s8.bf16 %v896_v54  ;;  %v1730_v1 = vunpack.c.l.s8.bf16 %v898_v57  ;;  %v1667_v6 = vunpack.c.h.s8.bf16 %v835_v63  ;;  %v710_v57 = vld [vmem:[%s5356_s3 + $0x510] sm:$0xff] }
 0x351   : > { %2711 = vmatprep.subr.bf16.mxu0 %v1219_v2  ;;  %v1665_v2 = vunpack.c.h.s8.bf16 %v833_v62 }
 0x353   : > { %2671 = vmatpush1.bf16.msra.mxu1 %v1216_v7  ;;  %v834_v7 = vld [vmem:[%s5356_s3 + $0x8f0] sm:$0xff] }
 0x354   : > { %2712 = vmatpush1.bf16.msra.mxu0 %v1218_v8  ;;  %2672 = vmatprep.subr.bf16.mxu1 %v1153_v9  ;;  %v1664_v8 = vunpack.c.h.s8.bf16 %v832_v5  ;;  %v1666_v9 = vunpack.c.h.s8.bf16 %v834_v7 }
 0x355   : > { %2713 = vmatprep.subr.bf16.mxu0 %v1155_v13  ;;  %v1603_v13 = vunpack.c.l.s8.bf16 %v835_v63 }
 0x357   : > { %2673 = vmatpush1.bf16.msra.mxu1 %v1152_v15  ;;  %v775_v15 = vld [vmem:[%s5356_s3 + $0x718] sm:$0xff] }
 0x358   : > { %2714 = vmatpush1.bf16.msra.mxu0 %v1154_v16  ;;  %2674 = vmatprep.subr.bf16.mxu1 %v1089_v17  ;;  %v1600_v16 = vunpack.c.l.s8.bf16 %v832_v5  ;;  %v1602_v17 = vunpack.c.l.s8.bf16 %v834_v7  ;;  %v1414_v5 = vunpack.c.h.s8.bf16 %v710_v57 }
 0x359   : > { %2715 = vmatprep.subr.bf16.mxu0 %v1091_v40  ;;  %v5800_v40 = vld [vmem:[%s5363_s20 + $0x10] sm:$0xff] }
 0x35a   : > { %v3489_v26 = vrot.slane %v5800_v40, %v5544_v39 }
 0x35b   : > { %2675 = vmatpush1.bf16.msra.mxu1 %v1088_v21  ;;  %v1543_v21 = vunpack.c.h.s8.bf16 %v775_v15 }
 0x35c   : > { %2716 = vmatpush1.bf16.msra.mxu0 %v1090_v28  ;;  %2676 = vmatprep.subr.bf16.mxu1 %v2049_v22  ;;  %v774_v28 = vld [vmem:[%s5356_s3 + $0x710] sm:$0xff]  ;;  %v3481_v22 = vrot.slane %v5800_v40, %v5422_v41 }
 0x35d   : > { %2717 = vmatprep.subr.bf16.mxu0 %v2051_v25  ;;  %v1540_v25 = vunpack.c.h.s8.bf16 %v772_v20  ;;  %v1478_v50 = vunpack.c.l.s8.bf16 %v774_v28 }
 0x35f   : > { %2677 = vmatpush2.bf16.msra.mxu1 %v2048_v27  ;;  %v1542_v27 = vunpack.c.h.s8.bf16 %v774_v28 }
 0x360   : > { %2718 = vmatpush2.bf16.msra.mxu0 %v2050_v29  ;;  %2678 = vmatprep.subr.bf16.mxu1 %v1985_v45  ;;  %v3485_v29 = vrot.slane %v5800_v40, %v5425_v43  ;;  %v1477_v45 = vunpack.c.l.s8.bf16 %v773_v14  ;;  %v647_v14 = vld [vmem:[%s5356_s3 + $0x318] sm:$0xff] }
 0x361   : > { %2719 = vmatprep.subr.bf16.mxu0 %v1987_v30  ;;  %v709_v30 = vld [vmem:[%s5356_s3 + $0x508] sm:$0xff]  ;;  %v1287_v28 = vunpack.c.h.s8.bf16 %v647_v14 }
 0x363   : > { %2679 = vmatpush2.bf16.msra.mxu1 %v1984_v34  ;;  %v3493_v34 = vrot.slane %v5800_v40, %v5552_v49 }
 0x364   : > { %2720 = vmatpush2.bf16.msra.mxu0 %v1986_v35  ;;  %2680 = vmatprep.subr.bf16.mxu1 %v1921_v36  ;;  %v1479_v35 = vunpack.c.l.s8.bf16 %v775_v15  ;;  %v711_v36 = vld [vmem:[%s5356_s3 + $0x518] sm:$0xff] }
 0x365   : > { %2721 = vmatprep.subr.bf16.mxu0 %v1923_v37 }
 0x367   : > { %2681 = vmatpush2.bf16.msra.mxu1 %v1920_v42  ;;  %v3885_v42 = vrot.slane %v5807_v23, %v5425_v43 }
 0x368   : > { %2722 = vmatpush2.bf16.msra.mxu0 %v1922_v44  ;;  %2682 = vmatprep.subr.bf16.mxu1 %v1857_v46  ;;  %v1476_v44 = vunpack.c.l.s8.bf16 %v772_v20 }
 0x369   : > { %2723 = vmatprep.subr.bf16.mxu0 %v1859_v47 }
 0x36b   : > { %2683 = vmatpush2.bf16.msra.mxu1 %v1856_v24  ;;  %v1413_v24 = vunpack.c.h.s8.bf16 %v709_v30 }
 0x36c   : > { %2724 = vmatpush2.bf16.msra.mxu0 %v1858_v51  ;;  %2684 = vmatprep.subr.bf16.mxu1 %v1793_v52  ;;  %v708_v51 = vld [vmem:[%s5356_s3 + $0x500] sm:$0xff] }
 0x36d   : > { %2725 = vmatprep.subr.bf16.mxu0 %v1795_v55  ;;  %v1415_v55 = vunpack.c.h.s8.bf16 %v711_v36  ;;  %v1412_v63 = vunpack.c.h.s8.bf16 %v708_v51 }
 0x36f   : > { %2685 = vmatpush2.bf16.msra.mxu1 %v1792_v58 }
 0x370   : > { %2726 = vmatpush2.bf16.msra.mxu0 %v1794_v59  ;;  %2686 = vmatprep.subr.bf16.mxu1 %v1729_v60 }
 0x371   : > { %2727 = vmatprep.subr.bf16.mxu0 %v1731_v61 }
 0x373   : > { %2687 = vmatpush2.bf16.msra.mxu1 %v1728_v0 }
 0x374   : > { %2728 = vmatpush2.bf16.msra.mxu0 %v1730_v1  ;;  %2688 = vmatprep.subr.bf16.mxu1 %v1665_v2 }
 0x375   : > { %2729 = vmatprep.subr.bf16.mxu0 %v1667_v6  ;;  %v1349_v6 = vunpack.c.l.s8.bf16 %v709_v30  ;;  %v581_v30 = vld [vmem:[%s5356_s3 + $0x108] sm:$0xff] }
 0x377   : > { %2689 = vmatpush2.bf16.msra.mxu1 %v1664_v8 }
 0x378   : > { %2730 = vmatpush2.bf16.msra.mxu0 %v1666_v9  ;;  %2690 = vmatprep.subr.bf16.mxu1 %v1601_v12  ;;  %v1351_v9 = vunpack.c.l.s8.bf16 %v711_v36  ;;  %v645_v12 = vld [vmem:[%s5356_s3 + $0x308] sm:$0xff]  ;;  %v580_v36 = vld [vmem:[%s5356_s3 + $0x100] sm:$0xff] }
 0x379   : > { %2731 = vmatprep.subr.bf16.mxu0 %v1603_v13  ;;  %v1285_v20 = vunpack.c.h.s8.bf16 %v645_v12 }
 0x37b   : > { %2691 = vmatpush2.bf16.msra.mxu1 %v1600_v16  ;;  %v1348_v16 = vunpack.c.l.s8.bf16 %v708_v51 }
 0x37c   : > { %2732 = vmatpush2.bf16.msra.mxu0 %v1602_v17  ;;  %2742 = vmatprep.subr.bf16.mxu1 %v1541_v18  ;;  %v1350_v18 = vunpack.c.l.s8.bf16 %v710_v57 }
 0x37d   : > { %2783 = vmatprep.subr.bf16.mxu0 %v1543_v21  ;;  %v644_v21 = vld [vmem:[%s5356_s3 + $0x300] sm:$0xff] }
 0x37e   : > { %v2448_v31 = vpop.f32.mrf.mxu1  ;;  %2693 = vmatmul.mubr.bf16.vlgmr.msra.gmra.mxu1 %v5433_v56 }
 0x37f   : > { %v3750_v33 = vmul.f32 %v3481_v22, %v2448_v31  ;;  %v2489_v37 = vpop.f32.mrf.mxu0  ;;  %2734 = vmatmul.mubr.bf16.vlgmr.msra.gmra.mxu0 %v5433_v56  ;;  %2743 = vmatpush1.bf16.msra.mxu1 %v1540_v25  ;;  %v646_v22 = vld [vmem:[%s5356_s3 + $0x310] sm:$0xff]  ;;  %v583_v31 = vld [vmem:[%s5356_s3 + $0x118] sm:$0xff] }
 0x380   : > { %v3752_v46 = vmul.f32 %v3489_v26, %v2489_v37  ;;  %2774 = vmatprep.mubr.bf16.mxu1 %v5431_v53  ;;  %2784 = vmatpush1.bf16.msra.mxu0 %v1542_v27  ;;  %v2450_v47 = vpop.f32.mrf.mxu1  ;;  %v1284_v26 = vunpack.c.h.s8.bf16 %v644_v21  ;;  %v1286_v27 = vunpack.c.h.s8.bf16 %v646_v22  ;;  %v582_v37 = vld [vmem:[%s5356_s3 + $0x110] sm:$0xff] }
 0x381   : > { %2815 = vmatprep.mubr.bf16.mxu0 %v5431_v53  ;;  %v3751_v52 = vmul.f32 %v3485_v29, %v2450_v47  ;;  %v2491_v54 = vpop.f32.mrf.mxu0  ;;  %2744 = vmatprep.subr.bf16.mxu1 %v1477_v45  ;;  %v4150_v60 = vadd.f32 %v3881_v32, %v3750_v33  ;;  %v1221_v29 = vunpack.c.l.s8.bf16 %v645_v12  ;;  %v1223_v45 = vunpack.c.l.s8.bf16 %v647_v14  ;;  %v1029_v47 = vld [vmem:[%s5356_s3 + $0xf08] sm:$0xff]  ;;  %v903_v14 = vld [vmem:[%s5356_s3 + $0xb18] sm:$0xff] }
 0x382   : > { %v3753_v58 = vmul.f32 %v3493_v34, %v2491_v54  ;;  %v2452_v59 = vpop.f32.mrf.mxu1  ;;  %2785 = vmatprep.subr.bf16.mxu0 %v1479_v35  ;;  %v4152_v0 = vadd.f32 %v3889_v38, %v3752_v46  ;;  %v1220_v32 = vunpack.c.l.s8.bf16 %v644_v21  ;;  %v1222_v34 = vunpack.c.l.s8.bf16 %v646_v22  ;;  %v902_v21 = vld [vmem:[%s5356_s3 + $0xb10] sm:$0xff] }
 0x383   : > { %v4151_v61 = vadd.f32 %v3885_v42, %v3751_v52  ;;  %v2493_v62 = vpop.f32.mrf.mxu0  ;;  %2745 = vmatpush1.bf16.msra.mxu1 %v1476_v44  ;;  %v1157_v35 = vunpack.c.h.s8.bf16 %v581_v30  ;;  %v1159_v33 = vunpack.c.h.s8.bf16 %v583_v31  ;;  %v1156_v38 = vunpack.c.h.s8.bf16 %v580_v36  ;;  %v1028_v52 = vld [vmem:[%s5356_s3 + $0xf00] sm:$0xff] }
 0x384   : > { %v4153_v1 = vadd.f32 %v3893_v48, %v3753_v58  ;;  %2786 = vmatpush1.bf16.msra.mxu0 %v1478_v50  ;;  %v2453_v2 = vpop.f32.mrf.mxu1  ;;  %2746 = vmatprep.subr.bf16.mxu1 %v1413_v24  ;;  %v1158_v42 = vunpack.c.h.s8.bf16 %v582_v37  ;;  %v1093_v44 = vunpack.c.l.s8.bf16 %v581_v30  ;;  %v1095_v46 = vunpack.c.l.s8.bf16 %v583_v31  ;;  %v1031_v48 = vld [vmem:[%s5356_s3 + $0xf18] sm:$0xff] }
 0x385   : > { %v4330_v7 = vcombine.low %v4150_v60, %v4151_v61  ;;  %v2494_v8 = vpop.f32.mrf.mxu0  ;;  %2787 = vmatprep.subr.bf16.mxu0 %v1415_v55  ;;  %v1092_v50 = vunpack.c.l.s8.bf16 %v580_v36  ;;  %v1094_v24 = vunpack.c.l.s8.bf16 %v582_v37  ;;  %v2053_v51 = vunpack.c.h.s8.bf16 %v1029_v47  ;;  %v1030_v55 = vld [vmem:[%s5356_s3 + $0xf10] sm:$0xff]  ;;  %v965_v61 = vld [vmem:[%s5356_s3 + $0xd08] sm:$0xff]  ;;  %v967_v62 = vld [vmem:[%s5356_s3 + $0xd18] sm:$0xff] }
 0x386   : > { %v4331_v13 = vcombine.low %v4152_v0, %v4153_v1  ;;  %v2055_v54 = vunpack.c.h.s8.bf16 %v1031_v48  ;;  %v2052_v57 = vunpack.c.h.s8.bf16 %v1028_v52  ;;  %v2054_v58 = vunpack.c.h.s8.bf16 %v1030_v55  ;;  %v964_v2 = vld [vmem:[%s5356_s3 + $0xd00] sm:$0xff] }
 0x387   : > { %v4338_v15 = vrot.slane %v4330_v7, %v5582_v19  ;;  %2747 = vmatpush1.bf16.msra.mxu1 %v1412_v63  ;;  %v1989_v59 = vunpack.c.l.s8.bf16 %v1029_v47  ;;  %v1991_v60 = vunpack.c.l.s8.bf16 %v1031_v48  ;;  %v1988_v63 = vunpack.c.l.s8.bf16 %v1028_v52 }
 0x388   : > { %v4345_v17 = vrot.slane %v4331_v13, %v5582_v19  ;;  %2788 = vmatpush1.bf16.msra.mxu0 %v1414_v5  ;;  %2748 = vmatprep.subr.bf16.mxu1 %v1349_v6  ;;  %v1990_v0 = vunpack.c.l.s8.bf16 %v1030_v55  ;;  %v1925_v1 = vunpack.c.h.s8.bf16 %v965_v61  ;;  %v1927_v5 = vunpack.c.h.s8.bf16 %v967_v62  ;;  %v966_v6 = vld [vmem:[%s5356_s3 + $0xd10] sm:$0xff]  ;;  %v901_v13 = vld [vmem:[%s5356_s3 + $0xb08] sm:$0xff] }
 0x389   : > { %2789 = vmatprep.subr.bf16.mxu0 %v1351_v9  ;;  %v1924_v7 = vunpack.c.h.s8.bf16 %v964_v2  ;;  %v1926_v8 = vunpack.c.h.s8.bf16 %v966_v6  ;;  %v1861_v9 = vunpack.c.l.s8.bf16 %v965_v61  ;;  %v1863_v12 = vunpack.c.l.s8.bf16 %v967_v62  ;;  %v713_v61 = vld [vmem:[%s5356_s3 + $0x528] sm:$0xff] }
 0x38a   : > { %v4346_v25 = vcombine.low %v4338_v15, %v4345_v17  ;;  %v1860_v15 = vunpack.c.l.s8.bf16 %v964_v2  ;;  %v1797_v17 = vunpack.c.h.s8.bf16 %v901_v13  ;;  %v1798_v22 = vunpack.c.h.s8.bf16 %v902_v21  ;;  %v715_v2 = vld [vmem:[%s5356_s3 + $0x538] sm:$0xff] }
 0x38b   : > { %2749 = vmatpush1.bf16.msra.mxu1 %v1348_v16  ;;  %v1862_v16 = vunpack.c.l.s8.bf16 %v966_v6  ;;  %v1734_v30 = vunpack.c.l.s8.bf16 %v902_v21  ;;  %v3497_v52 = vrot.slane %v5800_v40, %v5617_v3  ;;  %v3505_v55 = vrot.slane %v5800_v40, %v5620_v4  ;;  %v714_v21 = vld [vmem:[%s5356_s3 + $0x530] sm:$0xff] }
 0x38c   : > { %4554 = vst [vmem:[%s5591_s17 + $0x20] sm:$0xff] %v4346_v25  ;;  %2790 = vmatpush1.bf16.msra.mxu0 %v1350_v18  ;;  %2750 = vmatprep.subr.bf16.mxu1 %v1285_v20  ;;  %v900_v18 = vld [vmem:[%s5356_s3 + $0xb00] sm:$0xff]  ;;  %v1799_v20 = vunpack.c.h.s8.bf16 %v903_v14  ;;  %v1733_v25 = vunpack.c.l.s8.bf16 %v901_v13 }
 0x38d   : > { %2791 = vmatprep.subr.bf16.mxu0 %v1287_v28  ;;  %v1796_v28 = vunpack.c.h.s8.bf16 %v900_v18 }
 0x38f   : > { %2751 = vmatpush1.bf16.msra.mxu1 %v1284_v26  ;;  %v1735_v26 = vunpack.c.l.s8.bf16 %v903_v14  ;;  %v1417_v14 = vunpack.c.h.s8.bf16 %v713_v61 }
 0x390   : > { %2792 = vmatpush1.bf16.msra.mxu0 %v1286_v27  ;;  %2752 = vmatprep.subr.bf16.mxu1 %v1221_v29  ;;  %v837_v27 = vld [vmem:[%s5356_s3 + $0x908] sm:$0xff]  ;;  %v839_v29 = vld [vmem:[%s5356_s3 + $0x918] sm:$0xff] }
 0x391   : > { %2793 = vmatprep.subr.bf16.mxu0 %v1223_v45  ;;  %v1732_v45 = vunpack.c.l.s8.bf16 %v900_v18  ;;  %v1669_v31 = vunpack.c.h.s8.bf16 %v837_v27  ;;  %v1605_v37 = vunpack.c.l.s8.bf16 %v837_v27 }
 0x393   : > { %2753 = vmatpush1.bf16.msra.mxu1 %v1220_v32  ;;  %v836_v32 = vld [vmem:[%s5356_s3 + $0x900] sm:$0xff] }
 0x394   : > { %2794 = vmatpush1.bf16.msra.mxu0 %v1222_v34  ;;  %2754 = vmatprep.subr.bf16.mxu1 %v1157_v35  ;;  %v1671_v34 = vunpack.c.h.s8.bf16 %v839_v29  ;;  %v838_v35 = vld [vmem:[%s5356_s3 + $0x910] sm:$0xff]  ;;  %v1668_v36 = vunpack.c.h.s8.bf16 %v836_v32 }
 0x395   : > { %2795 = vmatprep.subr.bf16.mxu0 %v1159_v33  ;;  %v1670_v33 = vunpack.c.h.s8.bf16 %v838_v35  ;;  %v1606_v47 = vunpack.c.l.s8.bf16 %v838_v35  ;;  %v1355_v35 = vunpack.c.l.s8.bf16 %v715_v2 }
 0x397   : > { %2755 = vmatpush1.bf16.msra.mxu1 %v1156_v38  ;;  %v1607_v38 = vunpack.c.l.s8.bf16 %v839_v29 }
 0x398   : > { %2796 = vmatpush1.bf16.msra.mxu0 %v1158_v42  ;;  %2756 = vmatprep.subr.bf16.mxu1 %v1093_v44  ;;  %v777_v42 = vld [vmem:[%s5356_s3 + $0x728] sm:$0xff]  ;;  %v779_v44 = vld [vmem:[%s5356_s3 + $0x738] sm:$0xff] }
 0x399   : > { %2797 = vmatprep.subr.bf16.mxu0 %v1095_v46  ;;  %v1604_v46 = vunpack.c.l.s8.bf16 %v836_v32  ;;  %v1545_v48 = vunpack.c.h.s8.bf16 %v777_v42 }
 0x39b   : > { %2757 = vmatpush1.bf16.msra.mxu1 %v1092_v50  ;;  %v776_v50 = vld [vmem:[%s5356_s3 + $0x720] sm:$0xff] }
 0x39c   : > { %2798 = vmatpush1.bf16.msra.mxu0 %v1094_v24  ;;  %2758 = vmatprep.subr.bf16.mxu1 %v2053_v51  ;;  %v1547_v24 = vunpack.c.h.s8.bf16 %v779_v44  ;;  %v778_v51 = vld [vmem:[%s5356_s3 + $0x730] sm:$0xff] }
 0x39d   : > { %2799 = vmatprep.subr.bf16.mxu0 %v2055_v54  ;;  %v1544_v54 = vunpack.c.h.s8.bf16 %v776_v50  ;;  %v1482_v13 = vunpack.c.l.s8.bf16 %v778_v51 }
 0x39f   : > { %2759 = vmatpush2.bf16.msra.mxu1 %v2052_v57  ;;  %v1546_v57 = vunpack.c.h.s8.bf16 %v778_v51 }
 0x3a0   : > { %2800 = vmatpush2.bf16.msra.mxu0 %v2054_v58  ;;  %2760 = vmatprep.subr.bf16.mxu1 %v1989_v59  ;;  %v3897_v58 = vrot.slane %v5807_v23, %v5617_v3  ;;  %v3501_v59 = vrot.slane %v5800_v40, %v5625_v10 }
 0x3a1   : > { %2801 = vmatprep.subr.bf16.mxu0 %v1991_v60  ;;  %v1481_v60 = vunpack.c.l.s8.bf16 %v777_v42 }
 0x3a3   : > { %2761 = vmatpush2.bf16.msra.mxu1 %v1988_v63  ;;  %v3905_v63 = vrot.slane %v5807_v23, %v5620_v4 }
 0x3a4   : > { %2802 = vmatpush2.bf16.msra.mxu0 %v1990_v0  ;;  %2762 = vmatprep.subr.bf16.mxu1 %v1925_v1  ;;  %v3509_v0 = vrot.slane %v5800_v40, %v5628_v11  ;;  %v1483_v1 = vunpack.c.l.s8.bf16 %v779_v44  ;;  %v3909_v40 = vrot.slane %v5807_v23, %v5628_v11 }
 0x3a5   : > { %2803 = vmatprep.subr.bf16.mxu0 %v1927_v5 }
 0x3a7   : > { %2763 = vmatpush2.bf16.msra.mxu1 %v1924_v7  ;;  %v3901_v7 = vrot.slane %v5807_v23, %v5625_v10 }
 0x3a8   : > { %2804 = vmatpush2.bf16.msra.mxu0 %v1926_v8  ;;  %2764 = vmatprep.subr.bf16.mxu1 %v1861_v9  ;;  %v1480_v8 = vunpack.c.l.s8.bf16 %v776_v50 }
 0x3a9   : > { %2805 = vmatprep.subr.bf16.mxu0 %v1863_v12 }
 0x3ab   : > { %2765 = vmatpush2.bf16.msra.mxu1 %v1860_v15  ;;  %v712_v15 = vld [vmem:[%s5356_s3 + $0x520] sm:$0xff] }
 0x3ac   : > { %2806 = vmatpush2.bf16.msra.mxu0 %v1862_v16  ;;  %2766 = vmatprep.subr.bf16.mxu1 %v1797_v17  ;;  %v1416_v23 = vunpack.c.h.s8.bf16 %v712_v15  ;;  %v1352_v42 = vunpack.c.l.s8.bf16 %v712_v15 }
 0x3ad   : > { %2807 = vmatprep.subr.bf16.mxu0 %v1799_v20  ;;  %v1419_v20 = vunpack.c.h.s8.bf16 %v715_v2 }
 0x3af   : > { %2767 = vmatpush2.bf16.msra.mxu1 %v1796_v28 }
 0x3b0   : > { %2808 = vmatpush2.bf16.msra.mxu0 %v1798_v22  ;;  %2768 = vmatprep.subr.bf16.mxu1 %v1733_v25 }
 0x3b1   : > { %2809 = vmatprep.subr.bf16.mxu0 %v1735_v26 }
 0x3b3   : > { %2769 = vmatpush2.bf16.msra.mxu1 %v1732_v45 }
 0x3b4   : > { %2810 = vmatpush2.bf16.msra.mxu0 %v1734_v30  ;;  %2770 = vmatprep.subr.bf16.mxu1 %v1669_v31  ;;  %v1418_v30 = vunpack.c.h.s8.bf16 %v714_v21  ;;  %v1353_v31 = vunpack.c.l.s8.bf16 %v713_v61 }
 0x3b5   : > { %2811 = vmatprep.subr.bf16.mxu0 %v1671_v34 }
 0x3b7   : > { %2771 = vmatpush2.bf16.msra.mxu1 %v1668_v36  ;;  %v649_v36 = vld [vmem:[%s5356_s3 + $0x328] sm:$0xff] }
 0x3b8   : > { %2812 = vmatpush2.bf16.msra.mxu0 %v1670_v33  ;;  %2772 = vmatprep.subr.bf16.mxu1 %v1605_v37  ;;  %v651_v37 = vld [vmem:[%s5356_s3 + $0x338] sm:$0xff] }
 0x3b9   : > { %2813 = vmatprep.subr.bf16.mxu0 %v1607_v38  ;;  %v1291_v50 = vunpack.c.h.s8.bf16 %v651_v37 }
 0x3bb   : > { %2773 = vmatpush2.bf16.msra.mxu1 %v1604_v46  ;;  %v1354_v46 = vunpack.c.l.s8.bf16 %v714_v21 }
 0x3bc   : > { %2814 = vmatpush2.bf16.msra.mxu0 %v1606_v47  ;;  %2824 = vmatprep.subr.bf16.mxu1 %v1545_v48  ;;  %v1289_v47 = vunpack.c.h.s8.bf16 %v649_v36  ;;  %v648_v48 = vld [vmem:[%s5356_s3 + $0x320] sm:$0xff] }
 0x3bd   : > { %2865 = vmatprep.subr.bf16.mxu0 %v1547_v24  ;;  %v650_v24 = vld [vmem:[%s5356_s3 + $0x330] sm:$0xff] }
 0x3be   : > { %v2530_v62 = vpop.f32.mrf.mxu1  ;;  %2775 = vmatmul.mubr.bf16.vlgmr.msra.gmra.mxu1 %v5433_v56  ;;  %v1226_v61 = vunpack.c.l.s8.bf16 %v650_v24 }
 0x3bf   : > { %v3754_v5 = vmul.f32 %v3497_v52, %v2530_v62  ;;  %v2571_v6 = vpop.f32.mrf.mxu0  ;;  %2816 = vmatmul.mubr.bf16.vlgmr.msra.gmra.mxu0 %v5433_v56  ;;  %2825 = vmatpush1.bf16.msra.mxu1 %v1544_v54  ;;  %v1288_v52 = vunpack.c.h.s8.bf16 %v648_v48  ;;  %v1290_v54 = vunpack.c.h.s8.bf16 %v650_v24 }
 0x3c0   : > { %v3756_v9 = vmul.f32 %v3505_v55, %v2571_v6  ;;  %2856 = vmatprep.mubr.bf16.mxu1 %v5431_v53  ;;  %2866 = vmatpush1.bf16.msra.mxu0 %v1546_v57  ;;  %v2532_v12 = vpop.f32.mrf.mxu1  ;;  %v1225_v55 = vunpack.c.l.s8.bf16 %v649_v36  ;;  %v1227_v57 = vunpack.c.l.s8.bf16 %v651_v37  ;;  %v907_v36 = vld [vmem:[%s5356_s3 + $0xb38] sm:$0xff] }
 0x3c1   : > { %v4154_v16 = vadd.f32 %v3897_v58, %v3754_v5  ;;  %2897 = vmatprep.mubr.bf16.mxu0 %v5431_v53  ;;  %v3755_v17 = vmul.f32 %v3501_v59, %v2532_v12  ;;  %v2573_v18 = vpop.f32.mrf.mxu0  ;;  %2826 = vmatprep.subr.bf16.mxu1 %v1481_v60  ;;  %v585_v58 = vld [vmem:[%s5356_s3 + $0x128] sm:$0xff]  ;;  %v587_v59 = vld [vmem:[%s5356_s3 + $0x138] sm:$0xff]  ;;  %v1224_v60 = vunpack.c.l.s8.bf16 %v648_v48  ;;  %v1739_v24 = vunpack.c.l.s8.bf16 %v907_v36 }
 0x3c2   : > { %v4156_v28 = vadd.f32 %v3905_v63, %v3756_v9  ;;  %v3757_v22 = vmul.f32 %v3509_v0, %v2573_v18  ;;  %v2534_v25 = vpop.f32.mrf.mxu1  ;;  %2867 = vmatprep.subr.bf16.mxu0 %v1483_v1  ;;  %v1161_v62 = vunpack.c.h.s8.bf16 %v585_v58  ;;  %v584_v63 = vld [vmem:[%s5356_s3 + $0x120] sm:$0xff]  ;;  %v1163_v0 = vunpack.c.h.s8.bf16 %v587_v59  ;;  %v586_v1 = vld [vmem:[%s5356_s3 + $0x130] sm:$0xff]  ;;  %v1035_v9 = vld [vmem:[%s5356_s3 + $0xf38] sm:$0xff] }
 0x3c3   : > { %v4155_v26 = vadd.f32 %v3901_v7, %v3755_v17  ;;  %v2575_v27 = vpop.f32.mrf.mxu0  ;;  %2827 = vmatpush1.bf16.msra.mxu1 %v1480_v8  ;;  %v1160_v2 = vunpack.c.h.s8.bf16 %v584_v63  ;;  %v1162_v5 = vunpack.c.h.s8.bf16 %v586_v1  ;;  %v1097_v6 = vunpack.c.l.s8.bf16 %v585_v58  ;;  %v1033_v8 = vld [vmem:[%s5356_s3 + $0xf28] sm:$0xff]  ;;  %v840_v58 = vld [vmem:[%s5356_s3 + $0x920] sm:$0xff] }
 0x3c4   : > { %v4157_v29 = vadd.f32 %v3909_v40, %v3757_v22  ;;  %2868 = vmatpush1.bf16.msra.mxu0 %v1482_v13  ;;  %v2535_v45 = vpop.f32.mrf.mxu1  ;;  %2828 = vmatprep.subr.bf16.mxu1 %v1417_v14  ;;  %v1099_v7 = vunpack.c.l.s8.bf16 %v587_v59  ;;  %v1096_v12 = vunpack.c.l.s8.bf16 %v584_v63  ;;  %v1098_v40 = vunpack.c.l.s8.bf16 %v586_v1  ;;  %v1032_v14 = vld [vmem:[%s5356_s3 + $0xf20] sm:$0xff]  ;;  %v971_v22 = vld [vmem:[%s5356_s3 + $0xd38] sm:$0xff]  ;;  %v781_v1 = vld [vmem:[%s5356_s3 + $0x748] sm:$0xff] }
 0x3c5   : > { %v4347_v32 = vcombine.low %v4154_v16, %v4155_v26  ;;  %v2576_v34 = vpop.f32.mrf.mxu0  ;;  %2869 = vmatprep.subr.bf16.mxu0 %v1419_v20  ;;  %v2057_v13 = vunpack.c.h.s8.bf16 %v1033_v8  ;;  %v2059_v15 = vunpack.c.h.s8.bf16 %v1035_v9  ;;  %v1034_v16 = vld [vmem:[%s5356_s3 + $0xf30] sm:$0xff]  ;;  %v2056_v17 = vunpack.c.h.s8.bf16 %v1032_v14 }
 0x3c6   : > { %v4348_v33 = vcombine.low %v4156_v28, %v4157_v29  ;;  %v2058_v18 = vunpack.c.h.s8.bf16 %v1034_v16  ;;  %v1993_v20 = vunpack.c.l.s8.bf16 %v1033_v8  ;;  %v1995_v21 = vunpack.c.l.s8.bf16 %v1035_v9  ;;  %v969_v28 = vld [vmem:[%s5356_s3 + $0xd28] sm:$0xff]  ;;  %v970_v45 = vld [vmem:[%s5356_s3 + $0xd30] sm:$0xff]  ;;  %v780_v9 = vld [vmem:[%s5356_s3 + $0x740] sm:$0xff] }
 0x3c7   : > { %v4355_v38 = vrot.slane %v4347_v32, %v5582_v19  ;;  %2829 = vmatpush1.bf16.msra.mxu1 %v1416_v23  ;;  %v1992_v25 = vunpack.c.l.s8.bf16 %v1032_v14  ;;  %v1994_v26 = vunpack.c.l.s8.bf16 %v1034_v16  ;;  %v1929_v27 = vunpack.c.h.s8.bf16 %v969_v28  ;;  %v968_v23 = vld [vmem:[%s5356_s3 + $0xd20] sm:$0xff]  ;;  %v5923_v14 = vld [vmem:[%s5366_s12 + $0x18] sm:$0xff] }
 0x3c8   : > { %v4362_v44 = vrot.slane %v4348_v33, %v5582_v19  ;;  %2870 = vmatpush1.bf16.msra.mxu0 %v1418_v30  ;;  %2830 = vmatprep.subr.bf16.mxu1 %v1353_v31  ;;  %v1931_v29 = vunpack.c.h.s8.bf16 %v971_v22  ;;  %v1928_v30 = vunpack.c.h.s8.bf16 %v968_v23  ;;  %v1930_v31 = vunpack.c.h.s8.bf16 %v970_v45 }
 0x3c9   : > { %2871 = vmatprep.subr.bf16.mxu0 %v1355_v35  ;;  %v1865_v32 = vunpack.c.l.s8.bf16 %v969_v28  ;;  %v1867_v34 = vunpack.c.l.s8.bf16 %v971_v22  ;;  %v905_v35 = vld [vmem:[%s5356_s3 + $0xb28] sm:$0xff]  ;;  %v1864_v33 = vunpack.c.l.s8.bf16 %v968_v23  ;;  %v1866_v37 = vunpack.c.l.s8.bf16 %v970_v45 }
 0x3ca   : > { %v4363_v51 = vcombine.low %v4355_v38, %v4362_v44  ;;  %v1801_v38 = vunpack.c.h.s8.bf16 %v905_v35  ;;  %v1803_v44 = vunpack.c.h.s8.bf16 %v907_v36  ;;  %v1549_v8 = vunpack.c.h.s8.bf16 %v781_v1 }
 0x3cb   : > { %2831 = vmatpush1.bf16.msra.mxu1 %v1352_v42  ;;  %v904_v42 = vld [vmem:[%s5356_s3 + $0xb20] sm:$0xff]  ;;  %v3913_v22 = vrot.slane %v5923_v14, %v5422_v41  ;;  %v3921_v45 = vrot.slane %v5923_v14, %v5544_v39 }
 0x3cc   : > { %4555 = vst [vmem:[%s5591_s17 + $0x28] sm:$0xff] %v4363_v51  ;;  %2872 = vmatpush1.bf16.msra.mxu0 %v1354_v46  ;;  %2832 = vmatprep.subr.bf16.mxu1 %v1289_v47  ;;  %v906_v46 = vld [vmem:[%s5356_s3 + $0xb30] sm:$0xff]  ;;  %v1800_v47 = vunpack.c.h.s8.bf16 %v904_v42  ;;  %v841_v51 = vld [vmem:[%s5356_s3 + $0x928] sm:$0xff] }
 0x3cd   : > { %2873 = vmatprep.subr.bf16.mxu0 %v1291_v50  ;;  %v1802_v48 = vunpack.c.h.s8.bf16 %v906_v46  ;;  %v1737_v50 = vunpack.c.l.s8.bf16 %v905_v35  ;;  %v1609_v63 = vunpack.c.l.s8.bf16 %v841_v51  ;;  %v3925_v35 = vrot.slane %v5923_v14, %v5552_v49 }
 0x3cf   : > { %2833 = vmatpush1.bf16.msra.mxu1 %v1288_v52  ;;  %v843_v52 = vld [vmem:[%s5356_s3 + $0x938] sm:$0xff] }
 0x3d0   : > { %2874 = vmatpush1.bf16.msra.mxu0 %v1290_v54  ;;  %2834 = vmatprep.subr.bf16.mxu1 %v1225_v55  ;;  %v1736_v54 = vunpack.c.l.s8.bf16 %v904_v42  ;;  %v1738_v55 = vunpack.c.l.s8.bf16 %v906_v46  ;;  %v1675_v59 = vunpack.c.h.s8.bf16 %v843_v52  ;;  %v718_v46 = vld [vmem:[%s5356_s3 + $0x550] sm:$0xff] }
 0x3d1   : > { %2875 = vmatprep.subr.bf16.mxu0 %v1227_v57  ;;  %v1673_v57 = vunpack.c.h.s8.bf16 %v841_v51 }
 0x3d3   : > { %2835 = vmatpush1.bf16.msra.mxu1 %v1224_v60  ;;  %v842_v60 = vld [vmem:[%s5356_s3 + $0x930] sm:$0xff] }
 0x3d4   : > { %2876 = vmatpush1.bf16.msra.mxu0 %v1226_v61  ;;  %2836 = vmatprep.subr.bf16.mxu1 %v1161_v62  ;;  %v1672_v61 = vunpack.c.h.s8.bf16 %v840_v58  ;;  %v1674_v62 = vunpack.c.h.s8.bf16 %v842_v60 }
 0x3d5   : > { %2877 = vmatprep.subr.bf16.mxu0 %v1163_v0  ;;  %v1611_v0 = vunpack.c.l.s8.bf16 %v843_v52 }
 0x3d7   : > { %2837 = vmatpush1.bf16.msra.mxu1 %v1160_v2  ;;  %v783_v2 = vld [vmem:[%s5356_s3 + $0x758] sm:$0xff] }
 0x3d8   : > { %2878 = vmatpush1.bf16.msra.mxu0 %v1162_v5  ;;  %2838 = vmatprep.subr.bf16.mxu1 %v1097_v6  ;;  %v1608_v5 = vunpack.c.l.s8.bf16 %v840_v58  ;;  %v1610_v6 = vunpack.c.l.s8.bf16 %v842_v60  ;;  %v1422_v58 = vunpack.c.h.s8.bf16 %v718_v46 }
 0x3d9   : > { %2879 = vmatprep.subr.bf16.mxu0 %v1099_v7  ;;  %v5916_v7 = vld [vmem:[%s5363_s20 + $0x18] sm:$0xff] }
 0x3da   : > { %v3521_v16 = vrot.slane %v5916_v7, %v5544_v39 }
 0x3db   : > { %2839 = vmatpush1.bf16.msra.mxu1 %v1096_v12  ;;  %v1551_v12 = vunpack.c.h.s8.bf16 %v783_v2 }
 0x3dc   : > { %2880 = vmatpush1.bf16.msra.mxu0 %v1098_v40  ;;  %2840 = vmatprep.subr.bf16.mxu1 %v2057_v13  ;;  %v782_v40 = vld [vmem:[%s5356_s3 + $0x750] sm:$0xff]  ;;  %v3513_v13 = vrot.slane %v5916_v7, %v5422_v41 }
 0x3dd   : > { %2881 = vmatprep.subr.bf16.mxu0 %v2059_v15  ;;  %v1548_v15 = vunpack.c.h.s8.bf16 %v780_v9  ;;  %v1486_v36 = vunpack.c.l.s8.bf16 %v782_v40 }
 0x3df   : > { %2841 = vmatpush2.bf16.msra.mxu1 %v2056_v17  ;;  %v1550_v17 = vunpack.c.h.s8.bf16 %v782_v40 }
 0x3e0   : > { %2882 = vmatpush2.bf16.msra.mxu0 %v2058_v18  ;;  %2842 = vmatprep.subr.bf16.mxu1 %v1993_v20  ;;  %v3517_v18 = vrot.slane %v5916_v7, %v5425_v43  ;;  %v1485_v20 = vunpack.c.l.s8.bf16 %v781_v1  ;;  %v655_v1 = vld [vmem:[%s5356_s3 + $0x358] sm:$0xff] }
 0x3e1   : > { %2883 = vmatprep.subr.bf16.mxu0 %v1995_v21  ;;  %v717_v21 = vld [vmem:[%s5356_s3 + $0x548] sm:$0xff]  ;;  %v1295_v40 = vunpack.c.h.s8.bf16 %v655_v1 }
 0x3e3   : > { %2843 = vmatpush2.bf16.msra.mxu1 %v1992_v25  ;;  %v3525_v25 = vrot.slane %v5916_v7, %v5552_v49 }
 0x3e4   : > { %2884 = vmatpush2.bf16.msra.mxu0 %v1994_v26  ;;  %2844 = vmatprep.subr.bf16.mxu1 %v1929_v27  ;;  %v1487_v26 = vunpack.c.l.s8.bf16 %v783_v2  ;;  %v719_v27 = vld [vmem:[%s5356_s3 + $0x558] sm:$0xff] }
 0x3e5   : > { %2885 = vmatprep.subr.bf16.mxu0 %v1931_v29 }
 0x3e7   : > { %2845 = vmatpush2.bf16.msra.mxu1 %v1928_v30  ;;  %v3917_v30 = vrot.slane %v5923_v14, %v5425_v43 }
 0x3e8   : > { %2886 = vmatpush2.bf16.msra.mxu0 %v1930_v31  ;;  %2846 = vmatprep.subr.bf16.mxu1 %v1865_v32  ;;  %v1484_v31 = vunpack.c.l.s8.bf16 %v780_v9 }
 0x3e9   : > { %2887 = vmatprep.subr.bf16.mxu0 %v1867_v34 }
 0x3eb   : > { %2847 = vmatpush2.bf16.msra.mxu1 %v1864_v33  ;;  %v1421_v33 = vunpack.c.h.s8.bf16 %v717_v21 }
 0x3ec   : > { %2888 = vmatpush2.bf16.msra.mxu0 %v1866_v37  ;;  %2848 = vmatprep.subr.bf16.mxu1 %v1801_v38  ;;  %v716_v37 = vld [vmem:[%s5356_s3 + $0x540] sm:$0xff] }
 0x3ed   : > { %2889 = vmatprep.subr.bf16.mxu0 %v1803_v44  ;;  %v1423_v44 = vunpack.c.h.s8.bf16 %v719_v27  ;;  %v1420_v52 = vunpack.c.h.s8.bf16 %v716_v37 }
 0x3ef   : > { %2849 = vmatpush2.bf16.msra.mxu1 %v1800_v47 }
 0x3f0   : > { %2890 = vmatpush2.bf16.msra.mxu0 %v1802_v48  ;;  %2850 = vmatprep.subr.bf16.mxu1 %v1737_v50 }
 0x3f1   : > { %2891 = vmatprep.subr.bf16.mxu0 %v1739_v24 }
 0x3f3   : > { %2851 = vmatpush2.bf16.msra.mxu1 %v1736_v54 }
 0x3f4   : > { %2892 = vmatpush2.bf16.msra.mxu0 %v1738_v55  ;;  %2852 = vmatprep.subr.bf16.mxu1 %v1673_v57 }
 0x3f5   : > { %2893 = vmatprep.subr.bf16.mxu0 %v1675_v59  ;;  %v1357_v59 = vunpack.c.l.s8.bf16 %v717_v21  ;;  %v589_v21 = vld [vmem:[%s5356_s3 + $0x148] sm:$0xff] }
 0x3f7   : > { %2853 = vmatpush2.bf16.msra.mxu1 %v1672_v61 }
 0x3f8   : > { %2894 = vmatpush2.bf16.msra.mxu0 %v1674_v62  ;;  %2854 = vmatprep.subr.bf16.mxu1 %v1609_v63  ;;  %v1359_v62 = vunpack.c.l.s8.bf16 %v719_v27  ;;  %v653_v63 = vld [vmem:[%s5356_s3 + $0x348] sm:$0xff]  ;;  %v588_v27 = vld [vmem:[%s5356_s3 + $0x140] sm:$0xff] }
 0x3f9   : > { %2895 = vmatprep.subr.bf16.mxu0 %v1611_v0  ;;  %v1293_v9 = vunpack.c.h.s8.bf16 %v653_v63 }
 0x3fb   : > { %2855 = vmatpush2.bf16.msra.mxu1 %v1608_v5  ;;  %v1356_v5 = vunpack.c.l.s8.bf16 %v716_v37 }
 0x3fc   : > { %2896 = vmatpush2.bf16.msra.mxu0 %v1610_v6  ;;  %2906 = vmatprep.subr.bf16.mxu1 %v1549_v8  ;;  %v1358_v8 = vunpack.c.l.s8.bf16 %v718_v46 }
 0x3fd   : > { %2947 = vmatprep.subr.bf16.mxu0 %v1551_v12  ;;  %v652_v12 = vld [vmem:[%s5356_s3 + $0x340] sm:$0xff] }
 0x3fe   : > { %v2612_v28 = vpop.f32.mrf.mxu1  ;;  %2857 = vmatmul.mubr.bf16.vlgmr.msra.gmra.mxu1 %v5433_v56 }
 0x3ff   : > { %v3758_v23 = vmul.f32 %v3513_v13, %v2612_v28  ;;  %v2653_v29 = vpop.f32.mrf.mxu0  ;;  %2898 = vmatmul.mubr.bf16.vlgmr.msra.gmra.mxu0 %v5433_v56  ;;  %2907 = vmatpush1.bf16.msra.mxu1 %v1548_v15  ;;  %v654_v13 = vld [vmem:[%s5356_s3 + $0x350] sm:$0xff]  ;;  %v591_v28 = vld [vmem:[%s5356_s3 + $0x158] sm:$0xff] }
 0x400   : > { %v3760_v32 = vmul.f32 %v3521_v16, %v2653_v29  ;;  %2938 = vmatprep.mubr.bf16.mxu1 %v5431_v53  ;;  %2948 = vmatpush1.bf16.msra.mxu0 %v1550_v17  ;;  %v2614_v34 = vpop.f32.mrf.mxu1  ;;  %v1292_v16 = vunpack.c.h.s8.bf16 %v652_v12  ;;  %v1294_v17 = vunpack.c.h.s8.bf16 %v654_v13  ;;  %v590_v29 = vld [vmem:[%s5356_s3 + $0x150] sm:$0xff] }
 0x401   : > { %2979 = vmatprep.mubr.bf16.mxu0 %v5431_v53  ;;  %v3759_v38 = vmul.f32 %v3517_v18, %v2614_v34  ;;  %v2655_v42 = vpop.f32.mrf.mxu0  ;;  %2908 = vmatprep.subr.bf16.mxu1 %v1485_v20  ;;  %v4158_v50 = vadd.f32 %v3913_v22, %v3758_v23  ;;  %v1229_v18 = vunpack.c.l.s8.bf16 %v653_v63  ;;  %v1231_v20 = vunpack.c.l.s8.bf16 %v655_v1  ;;  %v1037_v34 = vld [vmem:[%s5356_s3 + $0xf48] sm:$0xff]  ;;  %v911_v1 = vld [vmem:[%s5356_s3 + $0xb58] sm:$0xff] }
 0x402   : > { %v3761_v47 = vmul.f32 %v3525_v25, %v2655_v42  ;;  %v2616_v48 = vpop.f32.mrf.mxu1  ;;  %2949 = vmatprep.subr.bf16.mxu0 %v1487_v26  ;;  %v4160_v54 = vadd.f32 %v3921_v45, %v3760_v32  ;;  %v1228_v22 = vunpack.c.l.s8.bf16 %v652_v12  ;;  %v1230_v25 = vunpack.c.l.s8.bf16 %v654_v13  ;;  %v910_v12 = vld [vmem:[%s5356_s3 + $0xb50] sm:$0xff] }
 0x403   : > { %v4159_v24 = vadd.f32 %v3917_v30, %v3759_v38  ;;  %v2657_v51 = vpop.f32.mrf.mxu0  ;;  %2909 = vmatpush1.bf16.msra.mxu1 %v1484_v31  ;;  %v1165_v26 = vunpack.c.h.s8.bf16 %v589_v21  ;;  %v1167_v23 = vunpack.c.h.s8.bf16 %v591_v28  ;;  %v1164_v45 = vunpack.c.h.s8.bf16 %v588_v27  ;;  %v1036_v38 = vld [vmem:[%s5356_s3 + $0xf40] sm:$0xff] }
 0x404   : > { %v4161_v55 = vadd.f32 %v3925_v35, %v3761_v47  ;;  %2950 = vmatpush1.bf16.msra.mxu0 %v1486_v36  ;;  %v2617_v57 = vpop.f32.mrf.mxu1  ;;  %2910 = vmatprep.subr.bf16.mxu1 %v1421_v33  ;;  %v1166_v30 = vunpack.c.h.s8.bf16 %v590_v29  ;;  %v1101_v31 = vunpack.c.l.s8.bf16 %v589_v21  ;;  %v1103_v32 = vunpack.c.l.s8.bf16 %v591_v28  ;;  %v1039_v35 = vld [vmem:[%s5356_s3 + $0xf58] sm:$0xff] }
 0x405   : > { %v4364_v60 = vcombine.low %v4158_v50, %v4159_v24  ;;  %v2658_v61 = vpop.f32.mrf.mxu0  ;;  %2951 = vmatprep.subr.bf16.mxu0 %v1423_v44  ;;  %v1100_v36 = vunpack.c.l.s8.bf16 %v588_v27  ;;  %v1102_v33 = vunpack.c.l.s8.bf16 %v590_v29  ;;  %v2061_v37 = vunpack.c.h.s8.bf16 %v1037_v34  ;;  %v1038_v44 = vld [vmem:[%s5356_s3 + $0xf50] sm:$0xff]  ;;  %v973_v24 = vld [vmem:[%s5356_s3 + $0xd48] sm:$0xff]  ;;  %v975_v51 = vld [vmem:[%s5356_s3 + $0xd58] sm:$0xff] }
 0x406   : > { %v4365_v0 = vcombine.low %v4160_v54, %v4161_v55  ;;  %v2063_v42 = vunpack.c.h.s8.bf16 %v1039_v35  ;;  %v2060_v46 = vunpack.c.h.s8.bf16 %v1036_v38  ;;  %v2062_v47 = vunpack.c.h.s8.bf16 %v1038_v44  ;;  %v972_v57 = vld [vmem:[%s5356_s3 + $0xd40] sm:$0xff] }
 0x407   : > { %v4372_v2 = vrot.slane %v4364_v60, %v5582_v19  ;;  %2911 = vmatpush1.bf16.msra.mxu1 %v1420_v52  ;;  %v1997_v48 = vunpack.c.l.s8.bf16 %v1037_v34  ;;  %v1999_v50 = vunpack.c.l.s8.bf16 %v1039_v35  ;;  %v1996_v52 = vunpack.c.l.s8.bf16 %v1036_v38 }
 0x408   : > { %v4379_v6 = vrot.slane %v4365_v0, %v5582_v19  ;;  %2952 = vmatpush1.bf16.msra.mxu0 %v1422_v58  ;;  %2912 = vmatprep.subr.bf16.mxu1 %v1357_v59  ;;  %v1998_v54 = vunpack.c.l.s8.bf16 %v1038_v44  ;;  %v1933_v55 = vunpack.c.h.s8.bf16 %v973_v24  ;;  %v1935_v58 = vunpack.c.h.s8.bf16 %v975_v51  ;;  %v974_v59 = vld [vmem:[%s5356_s3 + $0xd50] sm:$0xff]  ;;  %v909_v0 = vld [vmem:[%s5356_s3 + $0xb48] sm:$0xff] }
 0x409   : > { %2953 = vmatprep.subr.bf16.mxu0 %v1359_v62  ;;  %v1932_v60 = vunpack.c.h.s8.bf16 %v972_v57  ;;  %v1934_v61 = vunpack.c.h.s8.bf16 %v974_v59  ;;  %v1869_v62 = vunpack.c.l.s8.bf16 %v973_v24  ;;  %v1871_v63 = vunpack.c.l.s8.bf16 %v975_v51  ;;  %v721_v24 = vld [vmem:[%s5356_s3 + $0x568] sm:$0xff] }
 0x40a   : > { %v4380_v15 = vcombine.low %v4372_v2, %v4379_v6  ;;  %v1868_v2 = vunpack.c.l.s8.bf16 %v972_v57  ;;  %v1805_v6 = vunpack.c.h.s8.bf16 %v909_v0  ;;  %v1806_v13 = vunpack.c.h.s8.bf16 %v910_v12  ;;  %v723_v57 = vld [vmem:[%s5356_s3 + $0x578] sm:$0xff] }
 0x40b   : > { %2913 = vmatpush1.bf16.msra.mxu1 %v1356_v5  ;;  %v1870_v5 = vunpack.c.l.s8.bf16 %v974_v59  ;;  %v1742_v21 = vunpack.c.l.s8.bf16 %v910_v12  ;;  %v3529_v38 = vrot.slane %v5916_v7, %v5617_v3  ;;  %v3537_v44 = vrot.slane %v5916_v7, %v5620_v4  ;;  %v722_v12 = vld [vmem:[%s5356_s3 + $0x570] sm:$0xff] }
 0x40c   : > { %4556 = vst [vmem:[%s5591_s17 + $0x30] sm:$0xff] %v4380_v15  ;;  %2954 = vmatpush1.bf16.msra.mxu0 %v1358_v8  ;;  %2914 = vmatprep.subr.bf16.mxu1 %v1293_v9  ;;  %v908_v8 = vld [vmem:[%s5356_s3 + $0xb40] sm:$0xff]  ;;  %v1807_v9 = vunpack.c.h.s8.bf16 %v911_v1  ;;  %v1741_v15 = vunpack.c.l.s8.bf16 %v909_v0 }
 0x40d   : > { %2955 = vmatprep.subr.bf16.mxu0 %v1295_v40  ;;  %v1804_v40 = vunpack.c.h.s8.bf16 %v908_v8 }
 0x40f   : > { %2915 = vmatpush1.bf16.msra.mxu1 %v1292_v16  ;;  %v1743_v16 = vunpack.c.l.s8.bf16 %v911_v1  ;;  %v1425_v1 = vunpack.c.h.s8.bf16 %v721_v24 }
 0x410   : > { %2956 = vmatpush1.bf16.msra.mxu0 %v1294_v17  ;;  %2916 = vmatprep.subr.bf16.mxu1 %v1229_v18  ;;  %v845_v17 = vld [vmem:[%s5356_s3 + $0x948] sm:$0xff]  ;;  %v847_v18 = vld [vmem:[%s5356_s3 + $0x958] sm:$0xff] }
 0x411   : > { %2957 = vmatprep.subr.bf16.mxu0 %v1231_v20  ;;  %v1740_v20 = vunpack.c.l.s8.bf16 %v908_v8  ;;  %v1677_v28 = vunpack.c.h.s8.bf16 %v845_v17  ;;  %v1613_v29 = vunpack.c.l.s8.bf16 %v845_v17 }
 0x413   : > { %2917 = vmatpush1.bf16.msra.mxu1 %v1228_v22  ;;  %v844_v22 = vld [vmem:[%s5356_s3 + $0x940] sm:$0xff] }
 0x414   : > { %2958 = vmatpush1.bf16.msra.mxu0 %v1230_v25  ;;  %2918 = vmatprep.subr.bf16.mxu1 %v1165_v26  ;;  %v1679_v25 = vunpack.c.h.s8.bf16 %v847_v18  ;;  %v846_v26 = vld [vmem:[%s5356_s3 + $0x950] sm:$0xff]  ;;  %v1676_v27 = vunpack.c.h.s8.bf16 %v844_v22 }
 0x415   : > { %2959 = vmatprep.subr.bf16.mxu0 %v1167_v23  ;;  %v1678_v23 = vunpack.c.h.s8.bf16 %v846_v26  ;;  %v1614_v34 = vunpack.c.l.s8.bf16 %v846_v26  ;;  %v1363_v26 = vunpack.c.l.s8.bf16 %v723_v57 }
 0x417   : > { %2919 = vmatpush1.bf16.msra.mxu1 %v1164_v45  ;;  %v1615_v45 = vunpack.c.l.s8.bf16 %v847_v18 }
 0x418   : > { %2960 = vmatpush1.bf16.msra.mxu0 %v1166_v30  ;;  %2920 = vmatprep.subr.bf16.mxu1 %v1101_v31  ;;  %v785_v30 = vld [vmem:[%s5356_s3 + $0x768] sm:$0xff]  ;;  %v787_v31 = vld [vmem:[%s5356_s3 + $0x778] sm:$0xff] }
 0x419   : > { %2961 = vmatprep.subr.bf16.mxu0 %v1103_v32  ;;  %v1612_v32 = vunpack.c.l.s8.bf16 %v844_v22  ;;  %v1553_v35 = vunpack.c.h.s8.bf16 %v785_v30 }
 0x41b   : > { %2921 = vmatpush1.bf16.msra.mxu1 %v1100_v36  ;;  %v784_v36 = vld [vmem:[%s5356_s3 + $0x760] sm:$0xff] }
 0x41c   : > { %2962 = vmatpush1.bf16.msra.mxu0 %v1102_v33  ;;  %2922 = vmatprep.subr.bf16.mxu1 %v2061_v37  ;;  %v1555_v33 = vunpack.c.h.s8.bf16 %v787_v31  ;;  %v786_v37 = vld [vmem:[%s5356_s3 + $0x770] sm:$0xff] }
 0x41d   : > { %2963 = vmatprep.subr.bf16.mxu0 %v2063_v42  ;;  %v1552_v42 = vunpack.c.h.s8.bf16 %v784_v36  ;;  %v1490_v0 = vunpack.c.l.s8.bf16 %v786_v37 }
 0x41f   : > { %2923 = vmatpush2.bf16.msra.mxu1 %v2060_v46  ;;  %v1554_v46 = vunpack.c.h.s8.bf16 %v786_v37 }
 0x420   : > { %2964 = vmatpush2.bf16.msra.mxu0 %v2062_v47  ;;  %2924 = vmatprep.subr.bf16.mxu1 %v1997_v48  ;;  %v3929_v47 = vrot.slane %v5923_v14, %v5617_v3  ;;  %v3533_v48 = vrot.slane %v5916_v7, %v5625_v10 }
 0x421   : > { %2965 = vmatprep.subr.bf16.mxu0 %v1999_v50  ;;  %v1489_v50 = vunpack.c.l.s8.bf16 %v785_v30 }
 0x423   : > { %2925 = vmatpush2.bf16.msra.mxu1 %v1996_v52  ;;  %v3937_v52 = vrot.slane %v5923_v14, %v5620_v4 }
 0x424   : > { %2966 = vmatpush2.bf16.msra.mxu0 %v1998_v54  ;;  %2926 = vmatprep.subr.bf16.mxu1 %v1933_v55  ;;  %v3541_v54 = vrot.slane %v5916_v7, %v5628_v11  ;;  %v1491_v55 = vunpack.c.l.s8.bf16 %v787_v31  ;;  %v3941_v7 = vrot.slane %v5923_v14, %v5628_v11 }
 0x425   : > { %2967 = vmatprep.subr.bf16.mxu0 %v1935_v58 }
 0x427   : > { %2927 = vmatpush2.bf16.msra.mxu1 %v1932_v60  ;;  %v3933_v60 = vrot.slane %v5923_v14, %v5625_v10 }
 0x428   : > { %2968 = vmatpush2.bf16.msra.mxu0 %v1934_v61  ;;  %2928 = vmatprep.subr.bf16.mxu1 %v1869_v62  ;;  %v1488_v61 = vunpack.c.l.s8.bf16 %v784_v36 }
 0x429   : > { %2969 = vmatprep.subr.bf16.mxu0 %v1871_v63 }
 0x42b   : > { %2929 = vmatpush2.bf16.msra.mxu1 %v1868_v2  ;;  %v720_v2 = vld [vmem:[%s5356_s3 + $0x560] sm:$0xff] }
 0x42c   : > { %2970 = vmatpush2.bf16.msra.mxu0 %v1870_v5  ;;  %2930 = vmatprep.subr.bf16.mxu1 %v1805_v6  ;;  %v1424_v14 = vunpack.c.h.s8.bf16 %v720_v2  ;;  %v1360_v30 = vunpack.c.l.s8.bf16 %v720_v2 }
 0x42d   : > { %2971 = vmatprep.subr.bf16.mxu0 %v1807_v9  ;;  %v1427_v9 = vunpack.c.h.s8.bf16 %v723_v57 }
 0x42f   : > { %2931 = vmatpush2.bf16.msra.mxu1 %v1804_v40 }
 0x430   : > { %2972 = vmatpush2.bf16.msra.mxu0 %v1806_v13  ;;  %2932 = vmatprep.subr.bf16.mxu1 %v1741_v15 }
 0x431   : > { %2973 = vmatprep.subr.bf16.mxu0 %v1743_v16 }
 0x433   : > { %2933 = vmatpush2.bf16.msra.mxu1 %v1740_v20 }
 0x434   : > { %2974 = vmatpush2.bf16.msra.mxu0 %v1742_v21  ;;  %2934 = vmatprep.subr.bf16.mxu1 %v1677_v28  ;;  %v1426_v21 = vunpack.c.h.s8.bf16 %v722_v12  ;;  %v1361_v28 = vunpack.c.l.s8.bf16 %v721_v24 }
 0x435   : > { %2975 = vmatprep.subr.bf16.mxu0 %v1679_v25 }
 0x437   : > { %2935 = vmatpush2.bf16.msra.mxu1 %v1676_v27  ;;  %v657_v27 = vld [vmem:[%s5356_s3 + $0x368] sm:$0xff] }
 0x438   : > { %2976 = vmatpush2.bf16.msra.mxu0 %v1678_v23  ;;  %2936 = vmatprep.subr.bf16.mxu1 %v1613_v29  ;;  %v659_v29 = vld [vmem:[%s5356_s3 + $0x378] sm:$0xff] }
 0x439   : > { %2977 = vmatprep.subr.bf16.mxu0 %v1615_v45  ;;  %v1299_v36 = vunpack.c.h.s8.bf16 %v659_v29 }
 0x43b   : > { %2937 = vmatpush2.bf16.msra.mxu1 %v1612_v32  ;;  %v1362_v32 = vunpack.c.l.s8.bf16 %v722_v12 }
 0x43c   : > { %2978 = vmatpush2.bf16.msra.mxu0 %v1614_v34  ;;  %2988 = vmatprep.subr.bf16.mxu1 %v1553_v35  ;;  %v1297_v34 = vunpack.c.h.s8.bf16 %v657_v27  ;;  %v656_v35 = vld [vmem:[%s5356_s3 + $0x360] sm:$0xff] }
 0x43d   : > { %3029 = vmatprep.subr.bf16.mxu0 %v1555_v33  ;;  %v658_v33 = vld [vmem:[%s5356_s3 + $0x370] sm:$0xff] }
 0x43e   : > { %v2694_v51 = vpop.f32.mrf.mxu1  ;;  %2939 = vmatmul.mubr.bf16.vlgmr.msra.gmra.mxu1 %v5433_v56  ;;  %v1234_v24 = vunpack.c.l.s8.bf16 %v658_v33 }
 0x43f   : > { %v3762_v58 = vmul.f32 %v3529_v38, %v2694_v51  ;;  %v2735_v59 = vpop.f32.mrf.mxu0  ;;  %2980 = vmatmul.mubr.bf16.vlgmr.msra.gmra.mxu0 %v5433_v56  ;;  %2989 = vmatpush1.bf16.msra.mxu1 %v1552_v42  ;;  %v1296_v38 = vunpack.c.h.s8.bf16 %v656_v35  ;;  %v1298_v42 = vunpack.c.h.s8.bf16 %v658_v33 }
 0x440   : > { %v3764_v62 = vmul.f32 %v3537_v44, %v2735_v59  ;;  %3020 = vmatprep.mubr.bf16.mxu1 %v5431_v53  ;;  %3030 = vmatpush1.bf16.msra.mxu0 %v1554_v46  ;;  %v2696_v63 = vpop.f32.mrf.mxu1  ;;  %v1233_v44 = vunpack.c.l.s8.bf16 %v657_v27  ;;  %v1235_v46 = vunpack.c.l.s8.bf16 %v659_v29  ;;  %v915_v27 = vld [vmem:[%s5356_s3 + $0xb78] sm:$0xff] }
 0x441   : > { %v4162_v5 = vadd.f32 %v3929_v47, %v3762_v58  ;;  %3061 = vmatprep.mubr.bf16.mxu0 %v5431_v53  ;;  %v3763_v6 = vmul.f32 %v3533_v48, %v2696_v63  ;;  %v2737_v8 = vpop.f32.mrf.mxu0  ;;  %2990 = vmatprep.subr.bf16.mxu1 %v1489_v50  ;;  %v593_v47 = vld [vmem:[%s5356_s3 + $0x168] sm:$0xff]  ;;  %v595_v48 = vld [vmem:[%s5356_s3 + $0x178] sm:$0xff]  ;;  %v1232_v50 = vunpack.c.l.s8.bf16 %v656_v35  ;;  %v1747_v33 = vunpack.c.l.s8.bf16 %v915_v27 }
 0x442   : > { %v4164_v40 = vadd.f32 %v3937_v52, %v3764_v62  ;;  %v3765_v13 = vmul.f32 %v3541_v54, %v2737_v8  ;;  %v2698_v15 = vpop.f32.mrf.mxu1  ;;  %3031 = vmatprep.subr.bf16.mxu0 %v1491_v55  ;;  %v1169_v51 = vunpack.c.h.s8.bf16 %v593_v47  ;;  %v592_v52 = vld [vmem:[%s5356_s3 + $0x160] sm:$0xff]  ;;  %v1171_v54 = vunpack.c.h.s8.bf16 %v595_v48  ;;  %v594_v55 = vld [vmem:[%s5356_s3 + $0x170] sm:$0xff]  ;;  %v1043_v62 = vld [vmem:[%s5356_s3 + $0xf78] sm:$0xff] }
 0x443   : > { %v4163_v16 = vadd.f32 %v3933_v60, %v3763_v6  ;;  %v2739_v17 = vpop.f32.mrf.mxu0  ;;  %2991 = vmatpush1.bf16.msra.mxu1 %v1488_v61  ;;  %v1168_v57 = vunpack.c.h.s8.bf16 %v592_v52  ;;  %v1170_v58 = vunpack.c.h.s8.bf16 %v594_v55  ;;  %v1105_v59 = vunpack.c.l.s8.bf16 %v593_v47  ;;  %v1041_v61 = vld [vmem:[%s5356_s3 + $0xf68] sm:$0xff]  ;;  %v848_v47 = vld [vmem:[%s5356_s3 + $0x960] sm:$0xff] }
 0x444   : > { %v4165_v18 = vadd.f32 %v3941_v7, %v3765_v13  ;;  %3032 = vmatpush1.bf16.msra.mxu0 %v1490_v0  ;;  %v2699_v20 = vpop.f32.mrf.mxu1  ;;  %2992 = vmatprep.subr.bf16.mxu1 %v1425_v1  ;;  %v1107_v60 = vunpack.c.l.s8.bf16 %v595_v48  ;;  %v1104_v63 = vunpack.c.l.s8.bf16 %v592_v52  ;;  %v1106_v7 = vunpack.c.l.s8.bf16 %v594_v55  ;;  %v1040_v1 = vld [vmem:[%s5356_s3 + $0xf60] sm:$0xff]  ;;  %v979_v13 = vld [vmem:[%s5356_s3 + $0xd78] sm:$0xff]  ;;  %v789_v55 = vld [vmem:[%s5356_s3 + $0x788] sm:$0xff] }
 0x445   : > { %v4381_v22 = vcombine.low %v4162_v5, %v4163_v16  ;;  %v2740_v25 = vpop.f32.mrf.mxu0  ;;  %3033 = vmatprep.subr.bf16.mxu0 %v1427_v9  ;;  %v2065_v0 = vunpack.c.h.s8.bf16 %v1041_v61  ;;  %v2067_v2 = vunpack.c.h.s8.bf16 %v1043_v62  ;;  %v1042_v5 = vld [vmem:[%s5356_s3 + $0xf70] sm:$0xff]  ;;  %v2064_v6 = vunpack.c.h.s8.bf16 %v1040_v1 }
 0x446   : > { %v4382_v23 = vcombine.low %v4164_v40, %v4165_v18  ;;  %v2066_v8 = vunpack.c.h.s8.bf16 %v1042_v5  ;;  %v2001_v9 = vunpack.c.l.s8.bf16 %v1041_v61  ;;  %v2003_v12 = vunpack.c.l.s8.bf16 %v1043_v62  ;;  %v977_v40 = vld [vmem:[%s5356_s3 + $0xd68] sm:$0xff]  ;;  %v978_v20 = vld [vmem:[%s5356_s3 + $0xd70] sm:$0xff]  ;;  %v788_v62 = vld [vmem:[%s5356_s3 + $0x780] sm:$0xff] }
 0x447   : > { %v4389_v45 = vrot.slane %v4381_v22, %v5582_v19  ;;  %2993 = vmatpush1.bf16.msra.mxu1 %v1424_v14  ;;  %v2000_v15 = vunpack.c.l.s8.bf16 %v1040_v1  ;;  %v2002_v16 = vunpack.c.l.s8.bf16 %v1042_v5  ;;  %v1937_v17 = vunpack.c.h.s8.bf16 %v977_v40  ;;  %v976_v14 = vld [vmem:[%s5356_s3 + $0xd60] sm:$0xff] }
 0x448   : > { %v4396_v31 = vrot.slane %v4382_v23, %v5582_v19  ;;  %3034 = vmatpush1.bf16.msra.mxu0 %v1426_v21  ;;  %2994 = vmatprep.subr.bf16.mxu1 %v1361_v28  ;;  %v1939_v18 = vunpack.c.h.s8.bf16 %v979_v13  ;;  %v1936_v21 = vunpack.c.h.s8.bf16 %v976_v14  ;;  %v1938_v28 = vunpack.c.h.s8.bf16 %v978_v20  ;;  %v6039_v1 = vld [vmem:[%s5366_s12 + $0x20] sm:$0xff] }
 0x449   : > { %3035 = vmatprep.subr.bf16.mxu0 %v1363_v26  ;;  %v1873_v22 = vunpack.c.l.s8.bf16 %v977_v40  ;;  %v1875_v25 = vunpack.c.l.s8.bf16 %v979_v13  ;;  %v913_v26 = vld [vmem:[%s5356_s3 + $0xb68] sm:$0xff]  ;;  %v1872_v23 = vunpack.c.l.s8.bf16 %v976_v14  ;;  %v1874_v29 = vunpack.c.l.s8.bf16 %v978_v20 }
 0x44a   : > { %v4397_v37 = vcombine.low %v4389_v45, %v4396_v31  ;;  %v1809_v45 = vunpack.c.h.s8.bf16 %v913_v26  ;;  %v1811_v31 = vunpack.c.h.s8.bf16 %v915_v27  ;;  %v1557_v61 = vunpack.c.h.s8.bf16 %v789_v55 }
 0x44b   : > { %2995 = vmatpush1.bf16.msra.mxu1 %v1360_v30  ;;  %v912_v30 = vld [vmem:[%s5356_s3 + $0xb60] sm:$0xff]  ;;  %v3945_v13 = vrot.slane %v6039_v1, %v5422_v41  ;;  %v3953_v20 = vrot.slane %v6039_v1, %v5544_v39 }
 0x44c   : > { %4557 = vst [vmem:[%s5591_s17 + $0x38] sm:$0xff] %v4397_v37  ;;  %3036 = vmatpush1.bf16.msra.mxu0 %v1362_v32  ;;  %2996 = vmatprep.subr.bf16.mxu1 %v1297_v34  ;;  %v914_v32 = vld [vmem:[%s5356_s3 + $0xb70] sm:$0xff]  ;;  %v1808_v34 = vunpack.c.h.s8.bf16 %v912_v30  ;;  %v849_v37 = vld [vmem:[%s5356_s3 + $0x968] sm:$0xff] }
 0x44d   : > { %3037 = vmatprep.subr.bf16.mxu0 %v1299_v36  ;;  %v1810_v35 = vunpack.c.h.s8.bf16 %v914_v32  ;;  %v1745_v36 = vunpack.c.l.s8.bf16 %v913_v26  ;;  %v1617_v52 = vunpack.c.l.s8.bf16 %v849_v37  ;;  %v3957_v26 = vrot.slane %v6039_v1, %v5552_v49 }
 0x44f   : > { %2997 = vmatpush1.bf16.msra.mxu1 %v1296_v38  ;;  %v851_v38 = vld [vmem:[%s5356_s3 + $0x978] sm:$0xff] }
 0x450   : > { %3038 = vmatpush1.bf16.msra.mxu0 %v1298_v42  ;;  %2998 = vmatprep.subr.bf16.mxu1 %v1233_v44  ;;  %v1744_v42 = vunpack.c.l.s8.bf16 %v912_v30  ;;  %v1746_v44 = vunpack.c.l.s8.bf16 %v914_v32  ;;  %v1683_v48 = vunpack.c.h.s8.bf16 %v851_v38  ;;  %v726_v32 = vld [vmem:[%s5356_s3 + $0x590] sm:$0xff] }
 0x451   : > { %3039 = vmatprep.subr.bf16.mxu0 %v1235_v46  ;;  %v1681_v46 = vunpack.c.h.s8.bf16 %v849_v37 }
 0x453   : > { %2999 = vmatpush1.bf16.msra.mxu1 %v1232_v50  ;;  %v850_v50 = vld [vmem:[%s5356_s3 + $0x970] sm:$0xff] }
 0x454   : > { %3040 = vmatpush1.bf16.msra.mxu0 %v1234_v24  ;;  %3000 = vmatprep.subr.bf16.mxu1 %v1169_v51  ;;  %v1680_v24 = vunpack.c.h.s8.bf16 %v848_v47  ;;  %v1682_v51 = vunpack.c.h.s8.bf16 %v850_v50 }
 0x455   : > { %3041 = vmatprep.subr.bf16.mxu0 %v1171_v54  ;;  %v1619_v54 = vunpack.c.l.s8.bf16 %v851_v38 }
 0x457   : > { %3001 = vmatpush1.bf16.msra.mxu1 %v1168_v57  ;;  %v791_v57 = vld [vmem:[%s5356_s3 + $0x798] sm:$0xff] }
 0x458   : > { %3042 = vmatpush1.bf16.msra.mxu0 %v1170_v58  ;;  %3002 = vmatprep.subr.bf16.mxu1 %v1105_v59  ;;  %v1616_v58 = vunpack.c.l.s8.bf16 %v848_v47  ;;  %v1618_v59 = vunpack.c.l.s8.bf16 %v850_v50  ;;  %v1430_v47 = vunpack.c.h.s8.bf16 %v726_v32 }
 0x459   : > { %3043 = vmatprep.subr.bf16.mxu0 %v1107_v60  ;;  %v6032_v60 = vld [vmem:[%s5363_s20 + $0x20] sm:$0xff] }
 0x45a   : > { %v3553_v5 = vrot.slane %v6032_v60, %v5544_v39 }
 0x45b   : > { %3003 = vmatpush1.bf16.msra.mxu1 %v1104_v63  ;;  %v1559_v63 = vunpack.c.h.s8.bf16 %v791_v57 }
 0x45c   : > { %3044 = vmatpush1.bf16.msra.mxu0 %v1106_v7  ;;  %3004 = vmatprep.subr.bf16.mxu1 %v2065_v0  ;;  %v790_v7 = vld [vmem:[%s5356_s3 + $0x790] sm:$0xff]  ;;  %v3545_v0 = vrot.slane %v6032_v60, %v5422_v41 }
 0x45d   : > { %3045 = vmatprep.subr.bf16.mxu0 %v2067_v2  ;;  %v1556_v2 = vunpack.c.h.s8.bf16 %v788_v62  ;;  %v1494_v27 = vunpack.c.l.s8.bf16 %v790_v7 }
 0x45f   : > { %3005 = vmatpush2.bf16.msra.mxu1 %v2064_v6  ;;  %v1558_v6 = vunpack.c.h.s8.bf16 %v790_v7 }
 0x460   : > { %3046 = vmatpush2.bf16.msra.mxu0 %v2066_v8  ;;  %3006 = vmatprep.subr.bf16.mxu1 %v2001_v9  ;;  %v3549_v8 = vrot.slane %v6032_v60, %v5425_v43  ;;  %v1493_v9 = vunpack.c.l.s8.bf16 %v789_v55  ;;  %v663_v55 = vld [vmem:[%s5356_s3 + $0x398] sm:$0xff] }
 0x461   : > { %3047 = vmatprep.subr.bf16.mxu0 %v2003_v12  ;;  %v725_v12 = vld [vmem:[%s5356_s3 + $0x588] sm:$0xff]  ;;  %v1303_v7 = vunpack.c.h.s8.bf16 %v663_v55 }
 0x463   : > { %3007 = vmatpush2.bf16.msra.mxu1 %v2000_v15  ;;  %v3557_v15 = vrot.slane %v6032_v60, %v5552_v49 }
 0x464   : > { %3048 = vmatpush2.bf16.msra.mxu0 %v2002_v16  ;;  %3008 = vmatprep.subr.bf16.mxu1 %v1937_v17  ;;  %v1495_v16 = vunpack.c.l.s8.bf16 %v791_v57  ;;  %v727_v17 = vld [vmem:[%s5356_s3 + $0x598] sm:$0xff] }
 0x465   : > { %3049 = vmatprep.subr.bf16.mxu0 %v1939_v18 }
 0x467   : > { %3009 = vmatpush2.bf16.msra.mxu1 %v1936_v21  ;;  %v3949_v21 = vrot.slane %v6039_v1, %v5425_v43 }
 0x468   : > { %3050 = vmatpush2.bf16.msra.mxu0 %v1938_v28  ;;  %3010 = vmatprep.subr.bf16.mxu1 %v1873_v22  ;;  %v1492_v28 = vunpack.c.l.s8.bf16 %v788_v62 }
 0x469   : > { %3051 = vmatprep.subr.bf16.mxu0 %v1875_v25 }
 0x46b   : > { %3011 = vmatpush2.bf16.msra.mxu1 %v1872_v23  ;;  %v1429_v23 = vunpack.c.h.s8.bf16 %v725_v12 }
 0x46c   : > { %3052 = vmatpush2.bf16.msra.mxu0 %v1874_v29  ;;  %3012 = vmatprep.subr.bf16.mxu1 %v1809_v45  ;;  %v724_v29 = vld [vmem:[%s5356_s3 + $0x580] sm:$0xff] }
 0x46d   : > { %3053 = vmatprep.subr.bf16.mxu0 %v1811_v31  ;;  %v1431_v31 = vunpack.c.h.s8.bf16 %v727_v17  ;;  %v1428_v38 = vunpack.c.h.s8.bf16 %v724_v29 }
 0x46f   : > { %3013 = vmatpush2.bf16.msra.mxu1 %v1808_v34 }
 0x470   : > { %3054 = vmatpush2.bf16.msra.mxu0 %v1810_v35  ;;  %3014 = vmatprep.subr.bf16.mxu1 %v1745_v36 }
 0x471   : > { %3055 = vmatprep.subr.bf16.mxu0 %v1747_v33 }
 0x473   : > { %3015 = vmatpush2.bf16.msra.mxu1 %v1744_v42 }
 0x474   : > { %3056 = vmatpush2.bf16.msra.mxu0 %v1746_v44  ;;  %3016 = vmatprep.subr.bf16.mxu1 %v1681_v46 }
 0x475   : > { %3057 = vmatprep.subr.bf16.mxu0 %v1683_v48  ;;  %v1365_v48 = vunpack.c.l.s8.bf16 %v725_v12  ;;  %v597_v12 = vld [vmem:[%s5356_s3 + $0x188] sm:$0xff] }
 0x477   : > { %3017 = vmatpush2.bf16.msra.mxu1 %v1680_v24 }
 0x478   : > { %3058 = vmatpush2.bf16.msra.mxu0 %v1682_v51  ;;  %3018 = vmatprep.subr.bf16.mxu1 %v1617_v52  ;;  %v1367_v51 = vunpack.c.l.s8.bf16 %v727_v17  ;;  %v661_v52 = vld [vmem:[%s5356_s3 + $0x388] sm:$0xff]  ;;  %v596_v17 = vld [vmem:[%s5356_s3 + $0x180] sm:$0xff] }
 0x479   : > { %3059 = vmatprep.subr.bf16.mxu0 %v1619_v54  ;;  %v1301_v62 = vunpack.c.h.s8.bf16 %v661_v52 }
 0x47b   : > { %3019 = vmatpush2.bf16.msra.mxu1 %v1616_v58  ;;  %v1364_v58 = vunpack.c.l.s8.bf16 %v724_v29 }
 0x47c   : > { %3060 = vmatpush2.bf16.msra.mxu0 %v1618_v59  ;;  %3070 = vmatprep.subr.bf16.mxu1 %v1557_v61  ;;  %v1366_v61 = vunpack.c.l.s8.bf16 %v726_v32 }
 0x47d   : > { %3111 = vmatprep.subr.bf16.mxu0 %v1559_v63  ;;  %v660_v63 = vld [vmem:[%s5356_s3 + $0x380] sm:$0xff] }
 0x47e   : > { %v2776_v40 = vpop.f32.mrf.mxu1  ;;  %3021 = vmatmul.mubr.bf16.vlgmr.msra.gmra.mxu1 %v5433_v56 }
 0x47f   : > { %v3766_v14 = vmul.f32 %v3545_v0, %v2776_v40  ;;  %v2817_v18 = vpop.f32.mrf.mxu0  ;;  %3062 = vmatmul.mubr.bf16.vlgmr.msra.gmra.mxu0 %v5433_v56  ;;  %3071 = vmatpush1.bf16.msra.mxu1 %v1556_v2  ;;  %v662_v0 = vld [vmem:[%s5356_s3 + $0x390] sm:$0xff]  ;;  %v599_v40 = vld [vmem:[%s5356_s3 + $0x198] sm:$0xff] }
 0x480   : > { %v3768_v22 = vmul.f32 %v3553_v5, %v2817_v18  ;;  %3102 = vmatprep.mubr.bf16.mxu1 %v5431_v53  ;;  %3112 = vmatpush1.bf16.msra.mxu0 %v1558_v6  ;;  %v2778_v25 = vpop.f32.mrf.mxu1  ;;  %v1300_v5 = vunpack.c.h.s8.bf16 %v660_v63  ;;  %v1302_v6 = vunpack.c.h.s8.bf16 %v662_v0  ;;  %v598_v18 = vld [vmem:[%s5356_s3 + $0x190] sm:$0xff] }
 0x481   : > { %3143 = vmatprep.mubr.bf16.mxu0 %v5431_v53  ;;  %v3767_v45 = vmul.f32 %v3549_v8, %v2778_v25  ;;  %v2819_v30 = vpop.f32.mrf.mxu0  ;;  %3072 = vmatprep.subr.bf16.mxu1 %v1493_v9  ;;  %v4166_v36 = vadd.f32 %v3945_v13, %v3766_v14  ;;  %v1237_v8 = vunpack.c.l.s8.bf16 %v661_v52  ;;  %v1239_v9 = vunpack.c.l.s8.bf16 %v663_v55  ;;  %v1045_v25 = vld [vmem:[%s5356_s3 + $0xf88] sm:$0xff]  ;;  %v919_v55 = vld [vmem:[%s5356_s3 + $0xb98] sm:$0xff] }
 0x482   : > { %v3769_v34 = vmul.f32 %v3557_v15, %v2819_v30  ;;  %v2780_v35 = vpop.f32.mrf.mxu1  ;;  %3113 = vmatprep.subr.bf16.mxu0 %v1495_v16  ;;  %v4168_v42 = vadd.f32 %v3953_v20, %v3768_v22  ;;  %v1236_v13 = vunpack.c.l.s8.bf16 %v660_v63  ;;  %v1238_v15 = vunpack.c.l.s8.bf16 %v662_v0  ;;  %v918_v63 = vld [vmem:[%s5356_s3 + $0xb90] sm:$0xff] }
 0x483   : > { %v4167_v33 = vadd.f32 %v3949_v21, %v3767_v45  ;;  %v2821_v37 = vpop.f32.mrf.mxu0  ;;  %3073 = vmatpush1.bf16.msra.mxu1 %v1492_v28  ;;  %v1173_v16 = vunpack.c.h.s8.bf16 %v597_v12  ;;  %v1175_v14 = vunpack.c.h.s8.bf16 %v599_v40  ;;  %v1172_v20 = vunpack.c.h.s8.bf16 %v596_v17  ;;  %v1044_v45 = vld [vmem:[%s5356_s3 + $0xf80] sm:$0xff] }
 0x484   : > { %v4169_v44 = vadd.f32 %v3957_v26, %v3769_v34  ;;  %3114 = vmatpush1.bf16.msra.mxu0 %v1494_v27  ;;  %v2781_v46 = vpop.f32.mrf.mxu1  ;;  %3074 = vmatprep.subr.bf16.mxu1 %v1429_v23  ;;  %v1174_v21 = vunpack.c.h.s8.bf16 %v598_v18  ;;  %v1109_v28 = vunpack.c.l.s8.bf16 %v597_v12  ;;  %v1111_v22 = vunpack.c.l.s8.bf16 %v599_v40  ;;  %v1047_v26 = vld [vmem:[%s5356_s3 + $0xf98] sm:$0xff] }
 0x485   : > { %v4398_v50 = vcombine.low %v4166_v36, %v4167_v33  ;;  %v2822_v24 = vpop.f32.mrf.mxu0  ;;  %3115 = vmatprep.subr.bf16.mxu0 %v1431_v31  ;;  %v1108_v27 = vunpack.c.l.s8.bf16 %v596_v17  ;;  %v1110_v23 = vunpack.c.l.s8.bf16 %v598_v18  ;;  %v2069_v29 = vunpack.c.h.s8.bf16 %v1045_v25  ;;  %v1046_v31 = vld [vmem:[%s5356_s3 + $0xf90] sm:$0xff]  ;;  %v981_v33 = vld [vmem:[%s5356_s3 + $0xd88] sm:$0xff]  ;;  %v983_v37 = vld [vmem:[%s5356_s3 + $0xd98] sm:$0xff] }
 0x486   : > { %v4399_v54 = vcombine.low %v4168_v42, %v4169_v44  ;;  %v2071_v30 = vunpack.c.h.s8.bf16 %v1047_v26  ;;  %v2068_v32 = vunpack.c.h.s8.bf16 %v1044_v45  ;;  %v2070_v34 = vunpack.c.h.s8.bf16 %v1046_v31  ;;  %v980_v46 = vld [vmem:[%s5356_s3 + $0xd80] sm:$0xff] }
 0x487   : > { %v4406_v57 = vrot.slane %v4398_v50, %v5582_v19  ;;  %3075 = vmatpush1.bf16.msra.mxu1 %v1428_v38  ;;  %v2005_v35 = vunpack.c.l.s8.bf16 %v1045_v25  ;;  %v2007_v36 = vunpack.c.l.s8.bf16 %v1047_v26  ;;  %v2004_v38 = vunpack.c.l.s8.bf16 %v1044_v45 }
 0x488   : > { %v4413_v59 = vrot.slane %v4399_v54, %v5582_v19  ;;  %3116 = vmatpush1.bf16.msra.mxu0 %v1430_v47  ;;  %3076 = vmatprep.subr.bf16.mxu1 %v1365_v48  ;;  %v2006_v42 = vunpack.c.l.s8.bf16 %v1046_v31  ;;  %v1941_v44 = vunpack.c.h.s8.bf16 %v981_v33  ;;  %v1943_v47 = vunpack.c.h.s8.bf16 %v983_v37  ;;  %v982_v48 = vld [vmem:[%s5356_s3 + $0xd90] sm:$0xff]  ;;  %v917_v54 = vld [vmem:[%s5356_s3 + $0xb88] sm:$0xff] }
 0x489   : > { %3117 = vmatprep.subr.bf16.mxu0 %v1367_v51  ;;  %v1940_v50 = vunpack.c.h.s8.bf16 %v980_v46  ;;  %v1942_v24 = vunpack.c.h.s8.bf16 %v982_v48  ;;  %v1877_v51 = vunpack.c.l.s8.bf16 %v981_v33  ;;  %v1879_v52 = vunpack.c.l.s8.bf16 %v983_v37  ;;  %v729_v33 = vld [vmem:[%s5356_s3 + $0x5a8] sm:$0xff] }
 0x48a   : > { %v4414_v2 = vcombine.low %v4406_v57, %v4413_v59  ;;  %v1876_v57 = vunpack.c.l.s8.bf16 %v980_v46  ;;  %v1813_v59 = vunpack.c.h.s8.bf16 %v917_v54  ;;  %v1814_v0 = vunpack.c.h.s8.bf16 %v918_v63  ;;  %v731_v46 = vld [vmem:[%s5356_s3 + $0x5b8] sm:$0xff] }
 0x48b   : > { %3077 = vmatpush1.bf16.msra.mxu1 %v1364_v58  ;;  %v1878_v58 = vunpack.c.l.s8.bf16 %v982_v48  ;;  %v1750_v12 = vunpack.c.l.s8.bf16 %v918_v63  ;;  %v3561_v45 = vrot.slane %v6032_v60, %v5617_v3  ;;  %v3569_v31 = vrot.slane %v6032_v60, %v5620_v4  ;;  %v730_v63 = vld [vmem:[%s5356_s3 + $0x5b0] sm:$0xff] }
 0x48c   : > { %4558 = vst [vmem:[%s5591_s17 + $0x40] sm:$0xff] %v4414_v2  ;;  %3118 = vmatpush1.bf16.msra.mxu0 %v1366_v61  ;;  %3078 = vmatprep.subr.bf16.mxu1 %v1301_v62  ;;  %v916_v61 = vld [vmem:[%s5356_s3 + $0xb80] sm:$0xff]  ;;  %v1815_v62 = vunpack.c.h.s8.bf16 %v919_v55  ;;  %v1749_v2 = vunpack.c.l.s8.bf16 %v917_v54 }
 0x48d   : > { %3119 = vmatprep.subr.bf16.mxu0 %v1303_v7  ;;  %v1812_v7 = vunpack.c.h.s8.bf16 %v916_v61 }
 0x48f   : > { %3079 = vmatpush1.bf16.msra.mxu1 %v1300_v5  ;;  %v1751_v5 = vunpack.c.l.s8.bf16 %v919_v55  ;;  %v1433_v55 = vunpack.c.h.s8.bf16 %v729_v33 }
 0x490   : > { %3120 = vmatpush1.bf16.msra.mxu0 %v1302_v6  ;;  %3080 = vmatprep.subr.bf16.mxu1 %v1237_v8  ;;  %v853_v6 = vld [vmem:[%s5356_s3 + $0x988] sm:$0xff]  ;;  %v855_v8 = vld [vmem:[%s5356_s3 + $0x998] sm:$0xff] }
 0x491   : > { %3121 = vmatprep.subr.bf16.mxu0 %v1239_v9  ;;  %v1748_v9 = vunpack.c.l.s8.bf16 %v916_v61  ;;  %v1685_v40 = vunpack.c.h.s8.bf16 %v853_v6  ;;  %v1621_v18 = vunpack.c.l.s8.bf16 %v853_v6 }
 0x493   : > { %3081 = vmatpush1.bf16.msra.mxu1 %v1236_v13  ;;  %v852_v13 = vld [vmem:[%s5356_s3 + $0x980] sm:$0xff] }
 0x494   : > { %3122 = vmatpush1.bf16.msra.mxu0 %v1238_v15  ;;  %3082 = vmatprep.subr.bf16.mxu1 %v1173_v16  ;;  %v1687_v15 = vunpack.c.h.s8.bf16 %v855_v8  ;;  %v854_v16 = vld [vmem:[%s5356_s3 + $0x990] sm:$0xff]  ;;  %v1684_v17 = vunpack.c.h.s8.bf16 %v852_v13 }
 0x495   : > { %3123 = vmatprep.subr.bf16.mxu0 %v1175_v14  ;;  %v1686_v14 = vunpack.c.h.s8.bf16 %v854_v16  ;;  %v1622_v25 = vunpack.c.l.s8.bf16 %v854_v16  ;;  %v1371_v16 = vunpack.c.l.s8.bf16 %v731_v46 }
 0x497   : > { %3083 = vmatpush1.bf16.msra.mxu1 %v1172_v20  ;;  %v1623_v20 = vunpack.c.l.s8.bf16 %v855_v8 }
 0x498   : > { %3124 = vmatpush1.bf16.msra.mxu0 %v1174_v21  ;;  %3084 = vmatprep.subr.bf16.mxu1 %v1109_v28  ;;  %v793_v21 = vld [vmem:[%s5356_s3 + $0x7a8] sm:$0xff]  ;;  %v795_v28 = vld [vmem:[%s5356_s3 + $0x7b8] sm:$0xff] }
 0x499   : > { %3125 = vmatprep.subr.bf16.mxu0 %v1111_v22  ;;  %v1620_v22 = vunpack.c.l.s8.bf16 %v852_v13  ;;  %v1561_v26 = vunpack.c.h.s8.bf16 %v793_v21 }
 0x49b   : > { %3085 = vmatpush1.bf16.msra.mxu1 %v1108_v27  ;;  %v792_v27 = vld [vmem:[%s5356_s3 + $0x7a0] sm:$0xff] }
 0x49c   : > { %3126 = vmatpush1.bf16.msra.mxu0 %v1110_v23  ;;  %3086 = vmatprep.subr.bf16.mxu1 %v2069_v29  ;;  %v1563_v23 = vunpack.c.h.s8.bf16 %v795_v28  ;;  %v794_v29 = vld [vmem:[%s5356_s3 + $0x7b0] sm:$0xff] }
 0x49d   : > { %3127 = vmatprep.subr.bf16.mxu0 %v2071_v30  ;;  %v1560_v30 = vunpack.c.h.s8.bf16 %v792_v27  ;;  %v1498_v54 = vunpack.c.l.s8.bf16 %v794_v29 }
 0x49f   : > { %3087 = vmatpush2.bf16.msra.mxu1 %v2068_v32  ;;  %v1562_v32 = vunpack.c.h.s8.bf16 %v794_v29 }
 0x4a0   : > { %3128 = vmatpush2.bf16.msra.mxu0 %v2070_v34  ;;  %3088 = vmatprep.subr.bf16.mxu1 %v2005_v35  ;;  %v3961_v34 = vrot.slane %v6039_v1, %v5617_v3  ;;  %v3565_v35 = vrot.slane %v6032_v60, %v5625_v10 }
 0x4a1   : > { %3129 = vmatprep.subr.bf16.mxu0 %v2007_v36  ;;  %v1497_v36 = vunpack.c.l.s8.bf16 %v793_v21 }
 0x4a3   : > { %3089 = vmatpush2.bf16.msra.mxu1 %v2004_v38  ;;  %v3969_v38 = vrot.slane %v6039_v1, %v5620_v4 }
 0x4a4   : > { %3130 = vmatpush2.bf16.msra.mxu0 %v2006_v42  ;;  %3090 = vmatprep.subr.bf16.mxu1 %v1941_v44  ;;  %v3573_v42 = vrot.slane %v6032_v60, %v5628_v11  ;;  %v1499_v44 = vunpack.c.l.s8.bf16 %v795_v28  ;;  %v3973_v60 = vrot.slane %v6039_v1, %v5628_v11 }
 0x4a5   : > { %3131 = vmatprep.subr.bf16.mxu0 %v1943_v47 }
 0x4a7   : > { %3091 = vmatpush2.bf16.msra.mxu1 %v1940_v50  ;;  %v3965_v50 = vrot.slane %v6039_v1, %v5625_v10 }
 0x4a8   : > { %3132 = vmatpush2.bf16.msra.mxu0 %v1942_v24  ;;  %3092 = vmatprep.subr.bf16.mxu1 %v1877_v51  ;;  %v1496_v24 = vunpack.c.l.s8.bf16 %v792_v27 }
 0x4a9   : > { %3133 = vmatprep.subr.bf16.mxu0 %v1879_v52 }
 0x4ab   : > { %3093 = vmatpush2.bf16.msra.mxu1 %v1876_v57  ;;  %v728_v57 = vld [vmem:[%s5356_s3 + $0x5a0] sm:$0xff] }
 0x4ac   : > { %3134 = vmatpush2.bf16.msra.mxu0 %v1878_v58  ;;  %3094 = vmatprep.subr.bf16.mxu1 %v1813_v59  ;;  %v1432_v1 = vunpack.c.h.s8.bf16 %v728_v57  ;;  %v1368_v21 = vunpack.c.l.s8.bf16 %v728_v57 }
 0x4ad   : > { %3135 = vmatprep.subr.bf16.mxu0 %v1815_v62  ;;  %v1435_v62 = vunpack.c.h.s8.bf16 %v731_v46 }
 0x4af   : > { %3095 = vmatpush2.bf16.msra.mxu1 %v1812_v7 }
 0x4b0   : > { %3136 = vmatpush2.bf16.msra.mxu0 %v1814_v0  ;;  %3096 = vmatprep.subr.bf16.mxu1 %v1749_v2 }
 0x4b1   : > { %3137 = vmatprep.subr.bf16.mxu0 %v1751_v5 }
 0x4b3   : > { %3097 = vmatpush2.bf16.msra.mxu1 %v1748_v9 }
 0x4b4   : > { %3138 = vmatpush2.bf16.msra.mxu0 %v1750_v12  ;;  %3098 = vmatprep.subr.bf16.mxu1 %v1685_v40  ;;  %v1434_v12 = vunpack.c.h.s8.bf16 %v730_v63  ;;  %v1369_v40 = vunpack.c.l.s8.bf16 %v729_v33 }
 0x4b5   : > { %3139 = vmatprep.subr.bf16.mxu0 %v1687_v15 }
 0x4b7   : > { %3099 = vmatpush2.bf16.msra.mxu1 %v1684_v17  ;;  %v665_v17 = vld [vmem:[%s5356_s3 + $0x3a8] sm:$0xff] }
 0x4b8   : > { %3140 = vmatpush2.bf16.msra.mxu0 %v1686_v14  ;;  %3100 = vmatprep.subr.bf16.mxu1 %v1621_v18  ;;  %v667_v18 = vld [vmem:[%s5356_s3 + $0x3b8] sm:$0xff] }
 0x4b9   : > { %3141 = vmatprep.subr.bf16.mxu0 %v1623_v20  ;;  %v1307_v27 = vunpack.c.h.s8.bf16 %v667_v18 }
 0x4bb   : > { %3101 = vmatpush2.bf16.msra.mxu1 %v1620_v22  ;;  %v1370_v22 = vunpack.c.l.s8.bf16 %v730_v63 }
 0x4bc   : > { %3142 = vmatpush2.bf16.msra.mxu0 %v1622_v25  ;;  %3152 = vmatprep.subr.bf16.mxu1 %v1561_v26  ;;  %v1305_v25 = vunpack.c.h.s8.bf16 %v665_v17  ;;  %v664_v26 = vld [vmem:[%s5356_s3 + $0x3a0] sm:$0xff] }
 0x4bd   : > { %3193 = vmatprep.subr.bf16.mxu0 %v1563_v23  ;;  %v666_v23 = vld [vmem:[%s5356_s3 + $0x3b0] sm:$0xff] }
 0x4be   : > { %v2858_v37 = vpop.f32.mrf.mxu1  ;;  %3103 = vmatmul.mubr.bf16.vlgmr.msra.gmra.mxu1 %v5433_v56  ;;  %v1242_v33 = vunpack.c.l.s8.bf16 %v666_v23 }
 0x4bf   : > { %v3770_v47 = vmul.f32 %v3561_v45, %v2858_v37  ;;  %v2899_v48 = vpop.f32.mrf.mxu0  ;;  %3144 = vmatmul.mubr.bf16.vlgmr.msra.gmra.mxu0 %v5433_v56  ;;  %3153 = vmatpush1.bf16.msra.mxu1 %v1560_v30  ;;  %v1304_v45 = vunpack.c.h.s8.bf16 %v664_v26  ;;  %v1306_v30 = vunpack.c.h.s8.bf16 %v666_v23 }
 0x4c0   : > { %v3772_v51 = vmul.f32 %v3569_v31, %v2899_v48  ;;  %3184 = vmatprep.mubr.bf16.mxu1 %v5431_v53  ;;  %3194 = vmatpush1.bf16.msra.mxu0 %v1562_v32  ;;  %v2860_v52 = vpop.f32.mrf.mxu1  ;;  %v1241_v31 = vunpack.c.l.s8.bf16 %v665_v17  ;;  %v1243_v32 = vunpack.c.l.s8.bf16 %v667_v18  ;;  %v923_v17 = vld [vmem:[%s5356_s3 + $0xbb8] sm:$0xff] }
 0x4c1   : > { %v4170_v58 = vadd.f32 %v3961_v34, %v3770_v47  ;;  %3225 = vmatprep.mubr.bf16.mxu0 %v5431_v53  ;;  %v3771_v59 = vmul.f32 %v3565_v35, %v2860_v52  ;;  %v2901_v61 = vpop.f32.mrf.mxu0  ;;  %3154 = vmatprep.subr.bf16.mxu1 %v1497_v36  ;;  %v601_v34 = vld [vmem:[%s5356_s3 + $0x1a8] sm:$0xff]  ;;  %v603_v35 = vld [vmem:[%s5356_s3 + $0x1b8] sm:$0xff]  ;;  %v1240_v36 = vunpack.c.l.s8.bf16 %v664_v26  ;;  %v1755_v23 = vunpack.c.l.s8.bf16 %v923_v17 }
 0x4c2   : > { %v4172_v7 = vadd.f32 %v3969_v38, %v3772_v51  ;;  %v3773_v0 = vmul.f32 %v3573_v42, %v2901_v61  ;;  %v2862_v2 = vpop.f32.mrf.mxu1  ;;  %3195 = vmatprep.subr.bf16.mxu0 %v1499_v44  ;;  %v1177_v37 = vunpack.c.h.s8.bf16 %v601_v34  ;;  %v600_v38 = vld [vmem:[%s5356_s3 + $0x1a0] sm:$0xff]  ;;  %v1179_v42 = vunpack.c.h.s8.bf16 %v603_v35  ;;  %v602_v44 = vld [vmem:[%s5356_s3 + $0x1b0] sm:$0xff]  ;;  %v1051_v51 = vld [vmem:[%s5356_s3 + $0xfb8] sm:$0xff] }
 0x4c3   : > { %v4171_v5 = vadd.f32 %v3965_v50, %v3771_v59  ;;  %v2903_v6 = vpop.f32.mrf.mxu0  ;;  %3155 = vmatpush1.bf16.msra.mxu1 %v1496_v24  ;;  %v1176_v46 = vunpack.c.h.s8.bf16 %v600_v38  ;;  %v1178_v47 = vunpack.c.h.s8.bf16 %v602_v44  ;;  %v1113_v48 = vunpack.c.l.s8.bf16 %v601_v34  ;;  %v1049_v24 = vld [vmem:[%s5356_s3 + $0xfa8] sm:$0xff]  ;;  %v856_v34 = vld [vmem:[%s5356_s3 + $0x9a0] sm:$0xff] }
 0x4c4   : > { %v4173_v8 = vadd.f32 %v3973_v60, %v3773_v0  ;;  %3196 = vmatpush1.bf16.msra.mxu0 %v1498_v54  ;;  %v2863_v9 = vpop.f32.mrf.mxu1  ;;  %3156 = vmatprep.subr.bf16.mxu1 %v1433_v55  ;;  %v1115_v50 = vunpack.c.l.s8.bf16 %v603_v35  ;;  %v1112_v52 = vunpack.c.l.s8.bf16 %v600_v38  ;;  %v1114_v60 = vunpack.c.l.s8.bf16 %v602_v44  ;;  %v1048_v55 = vld [vmem:[%s5356_s3 + $0xfa0] sm:$0xff]  ;;  %v987_v0 = vld [vmem:[%s5356_s3 + $0xdb8] sm:$0xff]  ;;  %v797_v44 = vld [vmem:[%s5356_s3 + $0x7c8] sm:$0xff] }
 0x4c5   : > { %v4415_v13 = vcombine.low %v4170_v58, %v4171_v5  ;;  %v2904_v15 = vpop.f32.mrf.mxu0  ;;  %3197 = vmatprep.subr.bf16.mxu0 %v1435_v62  ;;  %v2073_v54 = vunpack.c.h.s8.bf16 %v1049_v24  ;;  %v2075_v57 = vunpack.c.h.s8.bf16 %v1051_v51  ;;  %v1050_v58 = vld [vmem:[%s5356_s3 + $0xfb0] sm:$0xff]  ;;  %v2072_v59 = vunpack.c.h.s8.bf16 %v1048_v55 }
 0x4c6   : > { %v4416_v14 = vcombine.low %v4172_v7, %v4173_v8  ;;  %v2074_v61 = vunpack.c.h.s8.bf16 %v1050_v58  ;;  %v2009_v62 = vunpack.c.l.s8.bf16 %v1049_v24  ;;  %v2011_v63 = vunpack.c.l.s8.bf16 %v1051_v51  ;;  %v985_v7 = vld [vmem:[%s5356_s3 + $0xda8] sm:$0xff]  ;;  %v986_v9 = vld [vmem:[%s5356_s3 + $0xdb0] sm:$0xff]  ;;  %v796_v51 = vld [vmem:[%s5356_s3 + $0x7c0] sm:$0xff] }
 0x4c7   : > { %v4423_v20 = vrot.slane %v4415_v13, %v5582_v19  ;;  %3157 = vmatpush1.bf16.msra.mxu1 %v1432_v1  ;;  %v2008_v2 = vunpack.c.l.s8.bf16 %v1048_v55  ;;  %v2010_v5 = vunpack.c.l.s8.bf16 %v1050_v58  ;;  %v1945_v6 = vunpack.c.h.s8.bf16 %v985_v7  ;;  %v984_v1 = vld [vmem:[%s5356_s3 + $0xda0] sm:$0xff]  ;;  %v6155_v55 = vld [vmem:[%s5366_s12 + $0x28] sm:$0xff] }
 0x4c8   : > { %v4430_v28 = vrot.slane %v4416_v14, %v5582_v19  ;;  %3198 = vmatpush1.bf16.msra.mxu0 %v1434_v12  ;;  %3158 = vmatprep.subr.bf16.mxu1 %v1369_v40  ;;  %v1947_v8 = vunpack.c.h.s8.bf16 %v987_v0  ;;  %v1944_v12 = vunpack.c.h.s8.bf16 %v984_v1  ;;  %v1946_v40 = vunpack.c.h.s8.bf16 %v986_v9 }
 0x4c9   : > { %3199 = vmatprep.subr.bf16.mxu0 %v1371_v16  ;;  %v1881_v13 = vunpack.c.l.s8.bf16 %v985_v7  ;;  %v1883_v15 = vunpack.c.l.s8.bf16 %v987_v0  ;;  %v921_v16 = vld [vmem:[%s5356_s3 + $0xba8] sm:$0xff]  ;;  %v1880_v14 = vunpack.c.l.s8.bf16 %v984_v1  ;;  %v1882_v18 = vunpack.c.l.s8.bf16 %v986_v9 }
 0x4ca   : > { %v4431_v29 = vcombine.low %v4423_v20, %v4430_v28  ;;  %v1817_v20 = vunpack.c.h.s8.bf16 %v921_v16  ;;  %v1819_v28 = vunpack.c.h.s8.bf16 %v923_v17  ;;  %v1565_v24 = vunpack.c.h.s8.bf16 %v797_v44 }
 0x4cb   : > { %3159 = vmatpush1.bf16.msra.mxu1 %v1368_v21  ;;  %v920_v21 = vld [vmem:[%s5356_s3 + $0xba0] sm:$0xff]  ;;  %v3977_v0 = vrot.slane %v6155_v55, %v5422_v41  ;;  %v3985_v9 = vrot.slane %v6155_v55, %v5544_v39 }
 0x4cc   : > { %4559 = vst [vmem:[%s5591_s17 + $0x48] sm:$0xff] %v4431_v29  ;;  %3200 = vmatpush1.bf16.msra.mxu0 %v1370_v22  ;;  %3160 = vmatprep.subr.bf16.mxu1 %v1305_v25  ;;  %v922_v22 = vld [vmem:[%s5356_s3 + $0xbb0] sm:$0xff]  ;;  %v1816_v25 = vunpack.c.h.s8.bf16 %v920_v21  ;;  %v857_v29 = vld [vmem:[%s5356_s3 + $0x9a8] sm:$0xff] }
 0x4cd   : > { %3201 = vmatprep.subr.bf16.mxu0 %v1307_v27  ;;  %v1818_v26 = vunpack.c.h.s8.bf16 %v922_v22  ;;  %v1753_v27 = vunpack.c.l.s8.bf16 %v921_v16  ;;  %v1625_v38 = vunpack.c.l.s8.bf16 %v857_v29  ;;  %v3989_v16 = vrot.slane %v6155_v55, %v5552_v49 }
 0x4cf   : > { %3161 = vmatpush1.bf16.msra.mxu1 %v1304_v45  ;;  %v859_v45 = vld [vmem:[%s5356_s3 + $0x9b8] sm:$0xff] }
 0x4d0   : > { %3202 = vmatpush1.bf16.msra.mxu0 %v1306_v30  ;;  %3162 = vmatprep.subr.bf16.mxu1 %v1241_v31  ;;  %v1752_v30 = vunpack.c.l.s8.bf16 %v920_v21  ;;  %v1754_v31 = vunpack.c.l.s8.bf16 %v922_v22  ;;  %v1691_v35 = vunpack.c.h.s8.bf16 %v859_v45  ;;  %v734_v22 = vld [vmem:[%s5356_s3 + $0x5d0] sm:$0xff] }
 0x4d1   : > { %3203 = vmatprep.subr.bf16.mxu0 %v1243_v32  ;;  %v1689_v32 = vunpack.c.h.s8.bf16 %v857_v29 }
 0x4d3   : > { %3163 = vmatpush1.bf16.msra.mxu1 %v1240_v36  ;;  %v858_v36 = vld [vmem:[%s5356_s3 + $0x9b0] sm:$0xff] }
 0x4d4   : > { %3204 = vmatpush1.bf16.msra.mxu0 %v1242_v33  ;;  %3164 = vmatprep.subr.bf16.mxu1 %v1177_v37  ;;  %v1688_v33 = vunpack.c.h.s8.bf16 %v856_v34  ;;  %v1690_v37 = vunpack.c.h.s8.bf16 %v858_v36 }
 0x4d5   : > { %3205 = vmatprep.subr.bf16.mxu0 %v1179_v42  ;;  %v1627_v42 = vunpack.c.l.s8.bf16 %v859_v45 }
 0x4d7   : > { %3165 = vmatpush1.bf16.msra.mxu1 %v1176_v46  ;;  %v799_v46 = vld [vmem:[%s5356_s3 + $0x7d8] sm:$0xff] }
 0x4d8   : > { %3206 = vmatpush1.bf16.msra.mxu0 %v1178_v47  ;;  %3166 = vmatprep.subr.bf16.mxu1 %v1113_v48  ;;  %v1624_v47 = vunpack.c.l.s8.bf16 %v856_v34  ;;  %v1626_v48 = vunpack.c.l.s8.bf16 %v858_v36  ;;  %v1438_v34 = vunpack.c.h.s8.bf16 %v734_v22 }
 0x4d9   : > { %3207 = vmatprep.subr.bf16.mxu0 %v1115_v50  ;;  %v6148_v50 = vld [vmem:[%s5363_s20 + $0x28] sm:$0xff] }
 0x4da   : > { %v3585_v58 = vrot.slane %v6148_v50, %v5544_v39 }
 0x4db   : > { %3167 = vmatpush1.bf16.msra.mxu1 %v1112_v52  ;;  %v1567_v52 = vunpack.c.h.s8.bf16 %v799_v46 }
 0x4dc   : > { %3208 = vmatpush1.bf16.msra.mxu0 %v1114_v60  ;;  %3168 = vmatprep.subr.bf16.mxu1 %v2073_v54  ;;  %v798_v60 = vld [vmem:[%s5356_s3 + $0x7d0] sm:$0xff]  ;;  %v3577_v54 = vrot.slane %v6148_v50, %v5422_v41 }
 0x4dd   : > { %3209 = vmatprep.subr.bf16.mxu0 %v2075_v57  ;;  %v1564_v57 = vunpack.c.h.s8.bf16 %v796_v51  ;;  %v1502_v17 = vunpack.c.l.s8.bf16 %v798_v60 }
 0x4df   : > { %3169 = vmatpush2.bf16.msra.mxu1 %v2072_v59  ;;  %v1566_v59 = vunpack.c.h.s8.bf16 %v798_v60 }
 0x4e0   : > { %3210 = vmatpush2.bf16.msra.mxu0 %v2074_v61  ;;  %3170 = vmatprep.subr.bf16.mxu1 %v2009_v62  ;;  %v3581_v61 = vrot.slane %v6148_v50, %v5425_v43  ;;  %v1501_v62 = vunpack.c.l.s8.bf16 %v797_v44  ;;  %v671_v44 = vld [vmem:[%s5356_s3 + $0x3d8] sm:$0xff] }
 0x4e1   : > { %3211 = vmatprep.subr.bf16.mxu0 %v2011_v63  ;;  %v733_v63 = vld [vmem:[%s5356_s3 + $0x5c8] sm:$0xff]  ;;  %v1311_v60 = vunpack.c.h.s8.bf16 %v671_v44 }
 0x4e3   : > { %3171 = vmatpush2.bf16.msra.mxu1 %v2008_v2  ;;  %v3589_v2 = vrot.slane %v6148_v50, %v5552_v49 }
 0x4e4   : > { %3212 = vmatpush2.bf16.msra.mxu0 %v2010_v5  ;;  %3172 = vmatprep.subr.bf16.mxu1 %v1945_v6  ;;  %v1503_v5 = vunpack.c.l.s8.bf16 %v799_v46  ;;  %v735_v6 = vld [vmem:[%s5356_s3 + $0x5d8] sm:$0xff] }
 0x4e5   : > { %3213 = vmatprep.subr.bf16.mxu0 %v1947_v8 }
 0x4e7   : > { %3173 = vmatpush2.bf16.msra.mxu1 %v1944_v12  ;;  %v3981_v12 = vrot.slane %v6155_v55, %v5425_v43 }
 0x4e8   : > { %3214 = vmatpush2.bf16.msra.mxu0 %v1946_v40  ;;  %3174 = vmatprep.subr.bf16.mxu1 %v1881_v13  ;;  %v1500_v40 = vunpack.c.l.s8.bf16 %v796_v51 }
 0x4e9   : > { %3215 = vmatprep.subr.bf16.mxu0 %v1883_v15 }
 0x4eb   : > { %3175 = vmatpush2.bf16.msra.mxu1 %v1880_v14  ;;  %v1437_v14 = vunpack.c.h.s8.bf16 %v733_v63 }
 0x4ec   : > { %3216 = vmatpush2.bf16.msra.mxu0 %v1882_v18  ;;  %3176 = vmatprep.subr.bf16.mxu1 %v1817_v20  ;;  %v732_v18 = vld [vmem:[%s5356_s3 + $0x5c0] sm:$0xff] }
 0x4ed   : > { %3217 = vmatprep.subr.bf16.mxu0 %v1819_v28  ;;  %v1439_v28 = vunpack.c.h.s8.bf16 %v735_v6  ;;  %v1436_v45 = vunpack.c.h.s8.bf16 %v732_v18 }
 0x4ef   : > { %3177 = vmatpush2.bf16.msra.mxu1 %v1816_v25 }
 0x4f0   : > { %3218 = vmatpush2.bf16.msra.mxu0 %v1818_v26  ;;  %3178 = vmatprep.subr.bf16.mxu1 %v1753_v27 }
 0x4f1   : > { %3219 = vmatprep.subr.bf16.mxu0 %v1755_v23 }
 0x4f3   : > { %3179 = vmatpush2.bf16.msra.mxu1 %v1752_v30 }
 0x4f4   : > { %3220 = vmatpush2.bf16.msra.mxu0 %v1754_v31  ;;  %3180 = vmatprep.subr.bf16.mxu1 %v1689_v32 }
 0x4f5   : > { %3221 = vmatprep.subr.bf16.mxu0 %v1691_v35  ;;  %v1373_v35 = vunpack.c.l.s8.bf16 %v733_v63  ;;  %v605_v63 = vld [vmem:[%s5356_s3 + $0x1c8] sm:$0xff] }
 0x4f7   : > { %3181 = vmatpush2.bf16.msra.mxu1 %v1688_v33 }
 0x4f8   : > { %3222 = vmatpush2.bf16.msra.mxu0 %v1690_v37  ;;  %3182 = vmatprep.subr.bf16.mxu1 %v1625_v38  ;;  %v1375_v37 = vunpack.c.l.s8.bf16 %v735_v6  ;;  %v669_v38 = vld [vmem:[%s5356_s3 + $0x3c8] sm:$0xff]  ;;  %v604_v6 = vld [vmem:[%s5356_s3 + $0x1c0] sm:$0xff] }
 0x4f9   : > { %3223 = vmatprep.subr.bf16.mxu0 %v1627_v42  ;;  %v1309_v51 = vunpack.c.h.s8.bf16 %v669_v38 }
 0x4fb   : > { %3183 = vmatpush2.bf16.msra.mxu1 %v1624_v47  ;;  %v1372_v47 = vunpack.c.l.s8.bf16 %v732_v18 }
 0x4fc   : > { %3224 = vmatpush2.bf16.msra.mxu0 %v1626_v48  ;;  %3234 = vmatprep.subr.bf16.mxu1 %v1565_v24  ;;  %v1374_v24 = vunpack.c.l.s8.bf16 %v734_v22 }
 0x4fd   : > { %3275 = vmatprep.subr.bf16.mxu0 %v1567_v52  ;;  %v668_v52 = vld [vmem:[%s5356_s3 + $0x3c0] sm:$0xff] }
 0x4fe   : > { %v2940_v7 = vpop.f32.mrf.mxu1  ;;  %3185 = vmatmul.mubr.bf16.vlgmr.msra.gmra.mxu1 %v5433_v56 }
 0x4ff   : > { %v3774_v1 = vmul.f32 %v3577_v54, %v2940_v7  ;;  %v2981_v8 = vpop.f32.mrf.mxu0  ;;  %3226 = vmatmul.mubr.bf16.vlgmr.msra.gmra.mxu0 %v5433_v56  ;;  %3235 = vmatpush1.bf16.msra.mxu1 %v1564_v57  ;;  %v670_v54 = vld [vmem:[%s5356_s3 + $0x3d0] sm:$0xff]  ;;  %v607_v7 = vld [vmem:[%s5356_s3 + $0x1d8] sm:$0xff] }
 0x500   : > { %v3776_v13 = vmul.f32 %v3585_v58, %v2981_v8  ;;  %3266 = vmatprep.mubr.bf16.mxu1 %v5431_v53  ;;  %3276 = vmatpush1.bf16.msra.mxu0 %v1566_v59  ;;  %v2942_v15 = vpop.f32.mrf.mxu1  ;;  %v1308_v58 = vunpack.c.h.s8.bf16 %v668_v52  ;;  %v1310_v59 = vunpack.c.h.s8.bf16 %v670_v54  ;;  %v606_v8 = vld [vmem:[%s5356_s3 + $0x1d0] sm:$0xff] }
 0x501   : > { %3307 = vmatprep.mubr.bf16.mxu0 %v5431_v53  ;;  %v3775_v20 = vmul.f32 %v3581_v61, %v2942_v15  ;;  %v2983_v21 = vpop.f32.mrf.mxu0  ;;  %3236 = vmatprep.subr.bf16.mxu1 %v1501_v62  ;;  %v4174_v27 = vadd.f32 %v3977_v0, %v3774_v1  ;;  %v1245_v61 = vunpack.c.l.s8.bf16 %v669_v38  ;;  %v1247_v62 = vunpack.c.l.s8.bf16 %v671_v44  ;;  %v1053_v15 = vld [vmem:[%s5356_s3 + $0xfc8] sm:$0xff]  ;;  %v927_v44 = vld [vmem:[%s5356_s3 + $0xbd8] sm:$0xff] }
 0x502   : > { %v3777_v25 = vmul.f32 %v3589_v2, %v2983_v21  ;;  %v2944_v26 = vpop.f32.mrf.mxu1  ;;  %3277 = vmatprep.subr.bf16.mxu0 %v1503_v5  ;;  %v4176_v30 = vadd.f32 %v3985_v9, %v3776_v13  ;;  %v1244_v0 = vunpack.c.l.s8.bf16 %v668_v52  ;;  %v1246_v2 = vunpack.c.l.s8.bf16 %v670_v54  ;;  %v926_v52 = vld [vmem:[%s5356_s3 + $0xbd0] sm:$0xff] }
 0x503   : > { %v4175_v23 = vadd.f32 %v3981_v12, %v3775_v20  ;;  %v2985_v29 = vpop.f32.mrf.mxu0  ;;  %3237 = vmatpush1.bf16.msra.mxu1 %v1500_v40  ;;  %v1181_v5 = vunpack.c.h.s8.bf16 %v605_v63  ;;  %v1183_v1 = vunpack.c.h.s8.bf16 %v607_v7  ;;  %v1180_v9 = vunpack.c.h.s8.bf16 %v604_v6  ;;  %v1052_v20 = vld [vmem:[%s5356_s3 + $0xfc0] sm:$0xff] }
 0x504   : > { %v4177_v31 = vadd.f32 %v3989_v16, %v3777_v25  ;;  %3278 = vmatpush1.bf16.msra.mxu0 %v1502_v17  ;;  %v2945_v32 = vpop.f32.mrf.mxu1  ;;  %3238 = vmatprep.subr.bf16.mxu1 %v1437_v14  ;;  %v1182_v12 = vunpack.c.h.s8.bf16 %v606_v8  ;;  %v1117_v40 = vunpack.c.l.s8.bf16 %v605_v63  ;;  %v1119_v13 = vunpack.c.l.s8.bf16 %v607_v7  ;;  %v1055_v16 = vld [vmem:[%s5356_s3 + $0xfd8] sm:$0xff] }
 0x505   : > { %v4432_v36 = vcombine.low %v4174_v27, %v4175_v23  ;;  %v2986_v33 = vpop.f32.mrf.mxu0  ;;  %3279 = vmatprep.subr.bf16.mxu0 %v1439_v28  ;;  %v1116_v17 = vunpack.c.l.s8.bf16 %v604_v6  ;;  %v1118_v14 = vunpack.c.l.s8.bf16 %v606_v8  ;;  %v2077_v18 = vunpack.c.h.s8.bf16 %v1053_v15  ;;  %v1054_v28 = vld [vmem:[%s5356_s3 + $0xfd0] sm:$0xff]  ;;  %v989_v23 = vld [vmem:[%s5356_s3 + $0xdc8] sm:$0xff]  ;;  %v991_v29 = vld [vmem:[%s5356_s3 + $0xdd8] sm:$0xff] }
 0x506   : > { %v4433_v42 = vcombine.low %v4176_v30, %v4177_v31  ;;  %v2079_v21 = vunpack.c.h.s8.bf16 %v1055_v16  ;;  %v2076_v22 = vunpack.c.h.s8.bf16 %v1052_v20  ;;  %v2078_v25 = vunpack.c.h.s8.bf16 %v1054_v28  ;;  %v988_v32 = vld [vmem:[%s5356_s3 + $0xdc0] sm:$0xff] }
 0x507   : > { %v4440_v46 = vrot.slane %v4432_v36, %v5582_v19  ;;  %3239 = vmatpush1.bf16.msra.mxu1 %v1436_v45  ;;  %v2013_v26 = vunpack.c.l.s8.bf16 %v1053_v15  ;;  %v2015_v27 = vunpack.c.l.s8.bf16 %v1055_v16  ;;  %v2012_v45 = vunpack.c.l.s8.bf16 %v1052_v20 }
 0x508   : > { %v4447_v48 = vrot.slane %v4433_v42, %v5582_v19  ;;  %3280 = vmatpush1.bf16.msra.mxu0 %v1438_v34  ;;  %3240 = vmatprep.subr.bf16.mxu1 %v1373_v35  ;;  %v2014_v30 = vunpack.c.l.s8.bf16 %v1054_v28  ;;  %v1949_v31 = vunpack.c.h.s8.bf16 %v989_v23  ;;  %v1951_v34 = vunpack.c.h.s8.bf16 %v991_v29  ;;  %v990_v35 = vld [vmem:[%s5356_s3 + $0xdd0] sm:$0xff]  ;;  %v925_v42 = vld [vmem:[%s5356_s3 + $0xbc8] sm:$0xff] }
 0x509   : > { %3281 = vmatprep.subr.bf16.mxu0 %v1375_v37  ;;  %v1948_v36 = vunpack.c.h.s8.bf16 %v988_v32  ;;  %v1950_v33 = vunpack.c.h.s8.bf16 %v990_v35  ;;  %v1885_v37 = vunpack.c.l.s8.bf16 %v989_v23  ;;  %v1887_v38 = vunpack.c.l.s8.bf16 %v991_v29  ;;  %v737_v23 = vld [vmem:[%s5356_s3 + $0x5e8] sm:$0xff] }
 0x50a   : > { %v4448_v57 = vcombine.low %v4440_v46, %v4447_v48  ;;  %v1884_v46 = vunpack.c.l.s8.bf16 %v988_v32  ;;  %v1821_v48 = vunpack.c.h.s8.bf16 %v925_v42  ;;  %v1822_v54 = vunpack.c.h.s8.bf16 %v926_v52  ;;  %v739_v32 = vld [vmem:[%s5356_s3 + $0x5f8] sm:$0xff] }
 0x50b   : > { %3241 = vmatpush1.bf16.msra.mxu1 %v1372_v47  ;;  %v1886_v47 = vunpack.c.l.s8.bf16 %v990_v35  ;;  %v1758_v63 = vunpack.c.l.s8.bf16 %v926_v52  ;;  %v3593_v20 = vrot.slane %v6148_v50, %v5617_v3  ;;  %v3601_v28 = vrot.slane %v6148_v50, %v5620_v4  ;;  %v738_v52 = vld [vmem:[%s5356_s3 + $0x5f0] sm:$0xff] }
 0x50c   : > { %4560 = vst [vmem:[%s5591_s17 + $0x50] sm:$0xff] %v4448_v57  ;;  %3282 = vmatpush1.bf16.msra.mxu0 %v1374_v24  ;;  %3242 = vmatprep.subr.bf16.mxu1 %v1309_v51  ;;  %v924_v24 = vld [vmem:[%s5356_s3 + $0xbc0] sm:$0xff]  ;;  %v1823_v51 = vunpack.c.h.s8.bf16 %v927_v44  ;;  %v1757_v57 = vunpack.c.l.s8.bf16 %v925_v42 }
 0x50d   : > { %3283 = vmatprep.subr.bf16.mxu0 %v1311_v60  ;;  %v1820_v60 = vunpack.c.h.s8.bf16 %v924_v24 }
 0x50f   : > { %3243 = vmatpush1.bf16.msra.mxu1 %v1308_v58  ;;  %v1759_v58 = vunpack.c.l.s8.bf16 %v927_v44  ;;  %v1441_v44 = vunpack.c.h.s8.bf16 %v737_v23 }
 0x510   : > { %3284 = vmatpush1.bf16.msra.mxu0 %v1310_v59  ;;  %3244 = vmatprep.subr.bf16.mxu1 %v1245_v61  ;;  %v861_v59 = vld [vmem:[%s5356_s3 + $0x9c8] sm:$0xff]  ;;  %v863_v61 = vld [vmem:[%s5356_s3 + $0x9d8] sm:$0xff] }
 0x511   : > { %3285 = vmatprep.subr.bf16.mxu0 %v1247_v62  ;;  %v1756_v62 = vunpack.c.l.s8.bf16 %v924_v24  ;;  %v1693_v7 = vunpack.c.h.s8.bf16 %v861_v59  ;;  %v1629_v8 = vunpack.c.l.s8.bf16 %v861_v59 }
 0x513   : > { %3245 = vmatpush1.bf16.msra.mxu1 %v1244_v0  ;;  %v860_v0 = vld [vmem:[%s5356_s3 + $0x9c0] sm:$0xff] }
 0x514   : > { %3286 = vmatpush1.bf16.msra.mxu0 %v1246_v2  ;;  %3246 = vmatprep.subr.bf16.mxu1 %v1181_v5  ;;  %v1695_v2 = vunpack.c.h.s8.bf16 %v863_v61  ;;  %v862_v5 = vld [vmem:[%s5356_s3 + $0x9d0] sm:$0xff]  ;;  %v1692_v6 = vunpack.c.h.s8.bf16 %v860_v0 }
 0x515   : > { %3287 = vmatprep.subr.bf16.mxu0 %v1183_v1  ;;  %v1694_v1 = vunpack.c.h.s8.bf16 %v862_v5  ;;  %v1630_v15 = vunpack.c.l.s8.bf16 %v862_v5  ;;  %v673_v5 = vld [vmem:[%s5356_s3 + $0x3e8] sm:$0xff] }
 0x517   : > { %3247 = vmatpush1.bf16.msra.mxu1 %v1180_v9  ;;  %v1631_v9 = vunpack.c.l.s8.bf16 %v863_v61 }
 0x518   : > { %3288 = vmatpush1.bf16.msra.mxu0 %v1182_v12  ;;  %3248 = vmatprep.subr.bf16.mxu1 %v1117_v40  ;;  %v801_v12 = vld [vmem:[%s5356_s3 + $0x7e8] sm:$0xff]  ;;  %v803_v40 = vld [vmem:[%s5356_s3 + $0x7f8] sm:$0xff] }
 0x519   : > { %3289 = vmatprep.subr.bf16.mxu0 %v1119_v13  ;;  %v1628_v13 = vunpack.c.l.s8.bf16 %v860_v0  ;;  %v1569_v16 = vunpack.c.h.s8.bf16 %v801_v12 }
 0x51b   : > { %3249 = vmatpush1.bf16.msra.mxu1 %v1116_v17  ;;  %v800_v17 = vld [vmem:[%s5356_s3 + $0x7e0] sm:$0xff] }
 0x51c   : > { %3290 = vmatpush1.bf16.msra.mxu0 %v1118_v14  ;;  %3250 = vmatprep.subr.bf16.mxu1 %v2077_v18  ;;  %v1571_v14 = vunpack.c.h.s8.bf16 %v803_v40  ;;  %v802_v18 = vld [vmem:[%s5356_s3 + $0x7f0] sm:$0xff] }
 0x51d   : > { %3291 = vmatprep.subr.bf16.mxu0 %v2079_v21  ;;  %v1568_v21 = vunpack.c.h.s8.bf16 %v800_v17  ;;  %v1506_v42 = vunpack.c.l.s8.bf16 %v802_v18 }
 0x51f   : > { %3251 = vmatpush2.bf16.msra.mxu1 %v2076_v22  ;;  %v1570_v22 = vunpack.c.h.s8.bf16 %v802_v18 }
 0x520   : > { %3292 = vmatpush2.bf16.msra.mxu0 %v2078_v25  ;;  %3252 = vmatprep.subr.bf16.mxu1 %v2013_v26  ;;  %v3993_v25 = vrot.slane %v6155_v55, %v5617_v3  ;;  %v3597_v26 = vrot.slane %v6148_v50, %v5625_v10 }
 0x521   : > { %3293 = vmatprep.subr.bf16.mxu0 %v2015_v27  ;;  %v1505_v27 = vunpack.c.l.s8.bf16 %v801_v12 }
 0x523   : > { %3253 = vmatpush2.bf16.msra.mxu1 %v2012_v45  ;;  %v4001_v45 = vrot.slane %v6155_v55, %v5620_v4 }
 0x524   : > { %3294 = vmatpush2.bf16.msra.mxu0 %v2014_v30  ;;  %3254 = vmatprep.subr.bf16.mxu1 %v1949_v31  ;;  %v3605_v30 = vrot.slane %v6148_v50, %v5628_v11  ;;  %v1507_v31 = vunpack.c.l.s8.bf16 %v803_v40  ;;  %v4005_v50 = vrot.slane %v6155_v55, %v5628_v11  ;;  %v1378_v40 = vunpack.c.l.s8.bf16 %v738_v52 }
 0x525   : > { %3295 = vmatprep.subr.bf16.mxu0 %v1951_v34 }
 0x527   : > { %3255 = vmatpush2.bf16.msra.mxu1 %v1948_v36  ;;  %v3997_v36 = vrot.slane %v6155_v55, %v5625_v10 }
 0x528   : > { %3296 = vmatpush2.bf16.msra.mxu0 %v1950_v33  ;;  %3256 = vmatprep.subr.bf16.mxu1 %v1885_v37  ;;  %v1504_v33 = vunpack.c.l.s8.bf16 %v800_v17  ;;  %v674_v17 = vld [vmem:[%s5356_s3 + $0x3f0] sm:$0xff] }
 0x529   : > { %3297 = vmatprep.subr.bf16.mxu0 %v1887_v38 }
 0x52b   : > { %3257 = vmatpush2.bf16.msra.mxu1 %v1884_v46  ;;  %v736_v46 = vld [vmem:[%s5356_s3 + $0x5e0] sm:$0xff] }
 0x52c   : > { %3298 = vmatpush2.bf16.msra.mxu0 %v1886_v47  ;;  %3258 = vmatprep.subr.bf16.mxu1 %v1821_v48  ;;  %v1440_v55 = vunpack.c.h.s8.bf16 %v736_v46 }
 0x52d   : > { %3299 = vmatprep.subr.bf16.mxu0 %v1823_v51  ;;  %v1443_v51 = vunpack.c.h.s8.bf16 %v739_v32 }
 0x52f   : > { %3259 = vmatpush2.bf16.msra.mxu1 %v1820_v60 }
 0x530   : > { %3300 = vmatpush2.bf16.msra.mxu0 %v1822_v54  ;;  %3260 = vmatprep.subr.bf16.mxu1 %v1757_v57 }
 0x531   : > { %3301 = vmatprep.subr.bf16.mxu0 %v1759_v58 }
 0x533   : > { %3261 = vmatpush2.bf16.msra.mxu1 %v1756_v62 }
 0x534   : > { %3302 = vmatpush2.bf16.msra.mxu0 %v1758_v63  ;;  %3262 = vmatprep.subr.bf16.mxu1 %v1693_v7  ;;  %v1377_v63 = vunpack.c.l.s8.bf16 %v737_v23 }
 0x535   : > { %3303 = vmatprep.subr.bf16.mxu0 %v1695_v2  ;;  %v1379_v2 = vunpack.c.l.s8.bf16 %v739_v32 }
 0x537   : > { %3263 = vmatpush2.bf16.msra.mxu1 %v1692_v6 }
 0x538   : > { %3304 = vmatpush2.bf16.msra.mxu0 %v1694_v1  ;;  %3264 = vmatprep.subr.bf16.mxu1 %v1629_v8  ;;  %v675_v1 = vld [vmem:[%s5356_s3 + $0x3f8] sm:$0xff] }
 0x539   : > { %3305 = vmatprep.subr.bf16.mxu0 %v1631_v9  ;;  %v1376_v9 = vunpack.c.l.s8.bf16 %v736_v46  ;;  %v1058_v46 = vld [vmem:[%s5356_s3 + $0xff0] sm:$0xff] }
 0x53b   : > { %3265 = vmatpush2.bf16.msra.mxu1 %v1628_v13  ;;  %v1313_v13 = vunpack.c.h.s8.bf16 %v673_v5 }
 0x53c   : > { %3306 = vmatpush2.bf16.msra.mxu0 %v1630_v15  ;;  %3316 = vmatprep.subr.bf16.mxu1 %v1569_v16  ;;  %v672_v15 = vld [vmem:[%s5356_s3 + $0x3e0] sm:$0xff]  ;;  %v1315_v16 = vunpack.c.h.s8.bf16 %v675_v1 }
 0x53d   : > { %3357 = vmatprep.subr.bf16.mxu0 %v1571_v14  ;;  %v1312_v18 = vunpack.c.h.s8.bf16 %v672_v15 }
 0x53e   : > { %v3022_v29 = vpop.f32.mrf.mxu1  ;;  %3267 = vmatmul.mubr.bf16.vlgmr.msra.gmra.mxu1 %v5433_v56 }
 0x53f   : > { %v3778_v34 = vmul.f32 %v3593_v20, %v3022_v29  ;;  %v3063_v35 = vpop.f32.mrf.mxu0  ;;  %3308 = vmatmul.mubr.bf16.vlgmr.msra.gmra.mxu0 %v5433_v56  ;;  %3317 = vmatpush1.bf16.msra.mxu1 %v1568_v21  ;;  %v1314_v20 = vunpack.c.h.s8.bf16 %v674_v17  ;;  %v1249_v21 = vunpack.c.l.s8.bf16 %v673_v5  ;;  %v608_v29 = vld [vmem:[%s5356_s3 + $0x1e0] sm:$0xff] }
 0x540   : > { %v3780_v37 = vmul.f32 %v3601_v28, %v3063_v35  ;;  %3348 = vmatprep.mubr.bf16.mxu1 %v5431_v53  ;;  %3358 = vmatpush1.bf16.msra.mxu0 %v1570_v22  ;;  %v3024_v38 = vpop.f32.mrf.mxu1  ;;  %v1251_v28 = vunpack.c.l.s8.bf16 %v675_v1  ;;  %v609_v22 = vld [vmem:[%s5356_s3 + $0x1e8] sm:$0xff] }
 0x541   : > { %v4178_v47 = vadd.f32 %v3993_v25, %v3778_v34  ;;  %3389 = vmatprep.mubr.bf16.mxu0 %v5431_v53  ;;  %v3779_v48 = vmul.f32 %v3597_v26, %v3024_v38  ;;  %v3065_v24 = vpop.f32.mrf.mxu0  ;;  %3318 = vmatprep.subr.bf16.mxu1 %v1505_v27  ;;  %v1442_v53 = vunpack.c.h.s8.bf16 %v738_v52  ;;  %v611_v25 = vld [vmem:[%s5356_s3 + $0x1f8] sm:$0xff]  ;;  %v1248_v26 = vunpack.c.l.s8.bf16 %v672_v15  ;;  %v993_v52 = vld [vmem:[%s5356_s3 + $0xde8] sm:$0xff] }
 0x542   : > { %v4180_v60 = vadd.f32 %v4001_v45, %v3780_v37  ;;  %v3781_v54 = vmul.f32 %v3605_v30, %v3065_v24  ;;  %v3026_v57 = vpop.f32.mrf.mxu1  ;;  %3359 = vmatprep.subr.bf16.mxu0 %v1507_v31  ;;  %v1250_v27 = vunpack.c.l.s8.bf16 %v674_v17  ;;  %v1185_v23 = vunpack.c.h.s8.bf16 %v609_v22  ;;  %v610_v30 = vld [vmem:[%s5356_s3 + $0x1f0] sm:$0xff]  ;;  %v865_v17 = vld [vmem:[%s5356_s3 + $0x9e8] sm:$0xff] }
 0x543   : > { %v4179_v58 = vadd.f32 %v3997_v36, %v3779_v48  ;;  %v3067_v59 = vpop.f32.mrf.mxu0  ;;  %3319 = vmatpush1.bf16.msra.mxu1 %v1504_v33  ;;  %v1187_v45 = vunpack.c.h.s8.bf16 %v611_v25  ;;  %v1184_v31 = vunpack.c.h.s8.bf16 %v608_v29  ;;  %v1186_v32 = vunpack.c.h.s8.bf16 %v610_v30  ;;  %v1057_v36 = vld [vmem:[%s5356_s3 + $0xfe8] sm:$0xff]  ;;  %v1059_v33 = vld [vmem:[%s5356_s3 + $0xff8] sm:$0xff] }
 0x544   : > { %v4181_v61 = vadd.f32 %v4005_v50, %v3781_v54  ;;  %3360 = vmatpush1.bf16.msra.mxu0 %v1506_v42  ;;  %v3027_v62 = vpop.f32.mrf.mxu1  ;;  %3320 = vmatprep.subr.bf16.mxu1 %v1441_v44  ;;  %v1121_v34 = vunpack.c.l.s8.bf16 %v609_v22  ;;  %v1123_v35 = vunpack.c.l.s8.bf16 %v611_v25  ;;  %v1120_v37 = vunpack.c.l.s8.bf16 %v608_v29  ;;  %v1056_v42 = vld [vmem:[%s5356_s3 + $0xfe0] sm:$0xff]  ;;  %v866_v25 = vld [vmem:[%s5356_s3 + $0x9f0] sm:$0xff] }
 0x545   : > { %v4449_v7 = vcombine.low %v4178_v47, %v4179_v58  ;;  %v3068_v0 = vpop.f32.mrf.mxu0  ;;  %3361 = vmatprep.subr.bf16.mxu0 %v1443_v51  ;;  %v1122_v38 = vunpack.c.l.s8.bf16 %v610_v30  ;;  %v2081_v50 = vunpack.c.h.s8.bf16 %v1057_v36  ;;  %v2083_v44 = vunpack.c.h.s8.bf16 %v1059_v33  ;;  %v992_v59 = vld [vmem:[%s5356_s3 + $0xde0] sm:$0xff] }
 0x546   : > { %v4450_v6 = vcombine.low %v4180_v60, %v4181_v61  ;;  %v2080_v47 = vunpack.c.h.s8.bf16 %v1056_v42  ;;  %v2082_v48 = vunpack.c.h.s8.bf16 %v1058_v46  ;;  %v2017_v24 = vunpack.c.l.s8.bf16 %v1057_v36  ;;  %v995_v60 = vld [vmem:[%s5356_s3 + $0xdf8] sm:$0xff]  ;;  %v994_v61 = vld [vmem:[%s5356_s3 + $0xdf0] sm:$0xff]  ;;  %v929_v0 = vld [vmem:[%s5356_s3 + $0xbe8] sm:$0xff] }
 0x547   : > { %v4457_v8 = vrot.slane %v4449_v7, %v5582_v19  ;;  %3321 = vmatpush1.bf16.msra.mxu1 %v1440_v55  ;;  %v2019_v51 = vunpack.c.l.s8.bf16 %v1059_v33  ;;  %v2016_v54 = vunpack.c.l.s8.bf16 %v1056_v42  ;;  %v2018_v57 = vunpack.c.l.s8.bf16 %v1058_v46 }
 0x548   : > { %v4464_v12 = vrot.slane %v4450_v6, %v5582_v19  ;;  %3362 = vmatpush1.bf16.msra.mxu0 %v1442_v53  ;;  %3322 = vmatprep.subr.bf16.mxu1 %v1377_v63  ;;  %v1953_v58 = vunpack.c.h.s8.bf16 %v993_v52  ;;  %v1955_v55 = vunpack.c.h.s8.bf16 %v995_v60  ;;  %v1952_v62 = vunpack.c.h.s8.bf16 %v992_v59 }
 0x549   : > { %3363 = vmatprep.subr.bf16.mxu0 %v1379_v2  ;;  %v1954_v53 = vunpack.c.h.s8.bf16 %v994_v61  ;;  %v1889_v63 = vunpack.c.l.s8.bf16 %v993_v52  ;;  %v1891_v7 = vunpack.c.l.s8.bf16 %v995_v60  ;;  %v931_v2 = vld [vmem:[%s5356_s3 + $0xbf8] sm:$0xff]  ;;  %v1888_v5 = vunpack.c.l.s8.bf16 %v992_v59 }
 0x54a   : > { %v4465_v14 = vcombine.low %v4457_v8, %v4464_v12  ;;  %v1890_v6 = vunpack.c.l.s8.bf16 %v994_v61  ;;  %v1825_v1 = vunpack.c.h.s8.bf16 %v929_v0  ;;  %v928_v8 = vld [vmem:[%s5356_s3 + $0xbe0] sm:$0xff]  ;;  %v930_v12 = vld [vmem:[%s5356_s3 + $0xbf0] sm:$0xff]  ;;  %v1761_v15 = vunpack.c.l.s8.bf16 %v929_v0 }
 0x54b   : > { %3323 = vmatpush1.bf16.msra.mxu1 %v1376_v9  ;;  %v1827_v9 = vunpack.c.h.s8.bf16 %v931_v2  ;;  %v1634_v30 = vunpack.c.l.s8.bf16 %v866_v25 }
 0x54c   : > { %4561 = vst [vmem:[%s5591_s17 + $0x58] sm:$0xff] %v4465_v14  ;;  %3364 = vmatpush1.bf16.msra.mxu0 %v1378_v40  ;;  %3324 = vmatprep.subr.bf16.mxu1 %v1313_v13  ;;  %v1824_v40 = vunpack.c.h.s8.bf16 %v928_v8  ;;  %v1826_v13 = vunpack.c.h.s8.bf16 %v930_v12  ;;  %v867_v14 = vld [vmem:[%s5356_s3 + $0x9f8] sm:$0xff] }
 0x54d   : > { %3365 = vmatprep.subr.bf16.mxu0 %v1315_v16  ;;  %v1763_v16 = vunpack.c.l.s8.bf16 %v931_v2  ;;  %v1699_v22 = vunpack.c.h.s8.bf16 %v867_v14  ;;  %v1635_v29 = vunpack.c.l.s8.bf16 %v867_v14 }
 0x54f   : > { %3325 = vmatpush1.bf16.msra.mxu1 %v1312_v18  ;;  %v1760_v18 = vunpack.c.l.s8.bf16 %v928_v8 }
 0x550   : > { %3366 = vmatpush1.bf16.msra.mxu0 %v1314_v20  ;;  %3326 = vmatprep.subr.bf16.mxu1 %v1249_v21  ;;  %v1762_v20 = vunpack.c.l.s8.bf16 %v930_v12  ;;  %v1697_v21 = vunpack.c.h.s8.bf16 %v865_v17 }
 0x551   : > { %3367 = vmatprep.subr.bf16.mxu0 %v1251_v28  ;;  %v864_v28 = vld [vmem:[%s5356_s3 + $0x9e0] sm:$0xff] }
 0x553   : > { %3327 = vmatpush1.bf16.msra.mxu1 %v1248_v26  ;;  %v1696_v26 = vunpack.c.h.s8.bf16 %v864_v28 }
 0x554   : > { %3368 = vmatpush1.bf16.msra.mxu0 %v1250_v27  ;;  %3328 = vmatprep.subr.bf16.mxu1 %v1185_v23  ;;  %v1698_v27 = vunpack.c.h.s8.bf16 %v866_v25  ;;  %v1633_v23 = vunpack.c.l.s8.bf16 %v865_v17 }
 0x555   : > { %3369 = vmatprep.subr.bf16.mxu0 %v1187_v45  ;;  %v1632_v45 = vunpack.c.l.s8.bf16 %v864_v28 }
 0x557   : > { %3329 = vmatpush1.bf16.msra.mxu1 %v1184_v31  ;;  %v3404_v31 = vld [vmem:[%s5363_s20 + $0x30] sm:$0xff] }
 0x558   : > { %3370 = vmatpush1.bf16.msra.mxu0 %v1186_v32  ;;  %3330 = vmatprep.subr.bf16.mxu1 %v1121_v34  ;;  %v3609_v32 = vrot.slane %v3404_v31, %v5422_v41  ;;  %v3804_v34 = vld [vmem:[%s5366_s12 + $0x30] sm:$0xff]  ;;  %v3613_v36 = vrot.slane %v3404_v31, %v5425_v43  ;;  %v3629_v8 = vrot.slane %v3404_v31, %v5625_v10 }
 0x559   : > { %3371 = vmatprep.subr.bf16.mxu0 %v1123_v35  ;;  %v3617_v35 = vrot.slane %v3404_v31, %v5544_v39  ;;  %v4033_v12 = vrot.slane %v3804_v34, %v5620_v4 }
 0x55b   : > { %3331 = vmatpush1.bf16.msra.mxu1 %v1120_v37  ;;  %v3621_v37 = vrot.slane %v3404_v31, %v5552_v49 }
 0x55c   : > { %3372 = vmatpush1.bf16.msra.mxu0 %v1122_v38  ;;  %3332 = vmatprep.subr.bf16.mxu1 %v2081_v50  ;;  %v4009_v50 = vrot.slane %v3804_v34, %v5422_v41 }
 0x55d   : > { %3373 = vmatprep.subr.bf16.mxu0 %v2083_v44  ;;  %v4013_v44 = vrot.slane %v3804_v34, %v5425_v43 }
 0x55f   : > { %3333 = vmatpush2.bf16.msra.mxu1 %v2080_v47  ;;  %v4017_v47 = vrot.slane %v3804_v34, %v5544_v39 }
 0x560   : > { %3374 = vmatpush2.bf16.msra.mxu0 %v2082_v48  ;;  %3334 = vmatprep.subr.bf16.mxu1 %v2017_v24  ;;  %v4021_v24 = vrot.slane %v3804_v34, %v5552_v49 }
 0x561   : > { %3375 = vmatprep.subr.bf16.mxu0 %v2019_v51 }
 0x563   : > { %3335 = vmatpush2.bf16.msra.mxu1 %v2016_v54 }
 0x564   : > { %3376 = vmatpush2.bf16.msra.mxu0 %v2018_v57  ;;  %3336 = vmatprep.subr.bf16.mxu1 %v1953_v58 }
 0x565   : > { %3377 = vmatprep.subr.bf16.mxu0 %v1955_v55 }
 0x567   : > { %3337 = vmatpush2.bf16.msra.mxu1 %v1952_v62 }
 0x568   : > { %3378 = vmatpush2.bf16.msra.mxu0 %v1954_v53  ;;  %3338 = vmatprep.subr.bf16.mxu1 %v1889_v63 }
 0x569   : > { %3379 = vmatprep.subr.bf16.mxu0 %v1891_v7 }
 0x56b   : > { %3339 = vmatpush2.bf16.msra.mxu1 %v1888_v5  ;;  %v3625_v5 = vrot.slane %v3404_v31, %v5617_v3 }
 0x56c   : > { %3380 = vmatpush2.bf16.msra.mxu0 %v1890_v6  ;;  %3340 = vmatprep.subr.bf16.mxu1 %v1825_v1  ;;  %v3633_v6 = vrot.slane %v3404_v31, %v5620_v4  ;;  %v4025_v1 = vrot.slane %v3804_v34, %v5617_v3 }
 0x56d   : > { %3381 = vmatprep.subr.bf16.mxu0 %v1827_v9 }
 0x56f   : > { %3341 = vmatpush2.bf16.msra.mxu1 %v1824_v40  ;;  %v3637_v40 = vrot.slane %v3404_v31, %v5628_v11 }
 0x570   : > { %3382 = vmatpush2.bf16.msra.mxu0 %v1826_v13  ;;  %3342 = vmatprep.subr.bf16.mxu1 %v1761_v15 }
 0x571   : > { %3383 = vmatprep.subr.bf16.mxu0 %v1763_v16  ;;  %v4029_v16 = vrot.slane %v3804_v34, %v5625_v10 }
 0x573   : > { %3343 = vmatpush2.bf16.msra.mxu1 %v1760_v18  ;;  %v4037_v18 = vrot.slane %v3804_v34, %v5628_v11 }
 0x574   : > { %3384 = vmatpush2.bf16.msra.mxu0 %v1762_v20  ;;  %3344 = vmatprep.subr.bf16.mxu1 %v1697_v21 }
 0x575   : > { %3385 = vmatprep.subr.bf16.mxu0 %v1699_v22 }
 0x577   : > { %3345 = vmatpush2.bf16.msra.mxu1 %v1696_v26 }
 0x578   : > { %3386 = vmatpush2.bf16.msra.mxu0 %v1698_v27  ;;  %3346 = vmatprep.subr.bf16.mxu1 %v1633_v23 }
 0x579   : > { %3387 = vmatprep.subr.bf16.mxu0 %v1635_v29 }
 0x57b   : > { %3347 = vmatpush2.bf16.msra.mxu1 %v1632_v45 }
 0x57c   : > { %3388 = vmatpush2.bf16.msra.mxu0 %v1634_v30 }
 0x57e   : > { %v3104_v33 = vpop.f32.mrf.mxu1  ;;  %3349 = vmatmul.mubr.bf16.vlgmr.msra.gmra.mxu1 %v5433_v56 }
 0x57f   : > { %v3782_v38 = vmul.f32 %v3609_v32, %v3104_v33  ;;  %v3145_v42 = vpop.f32.mrf.mxu0  ;;  %3390 = vmatmul.mubr.bf16.vlgmr.msra.gmra.mxu0 %v5433_v56  ;;  %v3405_v33 = vld [vmem:[%s5363_s20 + $0x38] sm:$0xff] }
 0x580   : > { %v3784_v46 = vmul.f32 %v3617_v35, %v3145_v42  ;;  %v3106_v48 = vpop.f32.mrf.mxu1  ;;  %v3645_v42 = vrot.slane %v3405_v33, %v5425_v43 }
 0x581   : > { %v3783_v51 = vmul.f32 %v3613_v36, %v3106_v48  ;;  %v3147_v52 = vpop.f32.mrf.mxu0  ;;  %v4182_v57 = vadd.f32 %v4009_v50, %v3782_v38  ;;  %v3805_v38 = vld [vmem:[%s5366_s12 + $0x38] sm:$0xff]  ;;  %v3649_v50 = vrot.slane %v3405_v33, %v5544_v39 }
 0x582   : > { %v3785_v60 = vmul.f32 %v3621_v37, %v3147_v52  ;;  %v3108_v54 = vpop.f32.mrf.mxu1  ;;  %v4184_v55 = vadd.f32 %v4017_v47, %v3784_v46  ;;  %v3641_v37 = vrot.slane %v3405_v33, %v5422_v41  ;;  %v3653_v46 = vrot.slane %v3405_v33, %v5552_v49 }
 0x583   : > { %v4183_v58 = vadd.f32 %v4013_v44, %v3783_v51  ;;  %v3149_v59 = vpop.f32.mrf.mxu0  ;;  %v4041_v48 = vrot.slane %v3805_v38, %v5422_v41  ;;  %v4045_v51 = vrot.slane %v3805_v38, %v5425_v43 }
 0x584   : > { %v4185_v61 = vadd.f32 %v4021_v24, %v3785_v60  ;;  %v3109_v62 = vpop.f32.mrf.mxu1  ;;  %v4049_v60 = vrot.slane %v3805_v38, %v5544_v39 }
 0x585   : > { %v4466_v56 = vcombine.low %v4182_v57, %v4183_v58  ;;  %v3150_v53 = vpop.f32.mrf.mxu0  ;;  %v4053_v57 = vrot.slane %v3805_v38, %v5552_v49  ;;  %v3657_v49 = vrot.slane %v3405_v33, %v5617_v3 }
 0x586   : > { %v4467_v63 = vcombine.low %v4184_v55, %v4185_v61 }
 0x587   : > { %v4474_v7 = vrot.slane %v4466_v56, %v5582_v19 }
 0x588   : > { %v4481_v0 = vrot.slane %v4467_v63, %v5582_v19 }
 0x58a   : > { %v4482_v2 = vcombine.low %v4474_v7, %v4481_v0 }
 0x58c   : > { %4562 = vst [vmem:[%s5591_s17 + $0x60] sm:$0xff] %v4482_v2 }
 0x5be   : > { %v3186_v9 = vpop.f32.mrf.mxu1 }
 0x5bf   : > { %v3786_v13 = vmul.f32 %v3625_v5, %v3186_v9  ;;  %v3227_v15 = vpop.f32.mrf.mxu0  ;;  %v3661_v9 = vrot.slane %v3405_v33, %v5625_v10 }
 0x5c0   : > { %v3788_v17 = vmul.f32 %v3633_v6, %v3227_v15  ;;  %v3188_v14 = vpop.f32.mrf.mxu1 }
 0x5c1   : > { %v4186_v20 = vadd.f32 %v4025_v1, %v3786_v13  ;;  %v3787_v21 = vmul.f32 %v3629_v8, %v3188_v14  ;;  %v3229_v28 = vpop.f32.mrf.mxu0  ;;  %v3665_v1 = vrot.slane %v3405_v33, %v5620_v4  ;;  %v4057_v8 = vrot.slane %v3805_v38, %v5617_v3 }
 0x5c2   : > { %v4188_v22 = vadd.f32 %v4033_v12, %v3788_v17  ;;  %v3789_v25 = vmul.f32 %v3637_v40, %v3229_v28  ;;  %v3190_v26 = vpop.f32.mrf.mxu1  ;;  %v4065_v40 = vrot.slane %v3805_v38, %v5620_v4  ;;  %v3669_v13 = vrot.slane %v3405_v33, %v5628_v11 }
 0x5c3   : > { %v4187_v27 = vadd.f32 %v4029_v16, %v3787_v21  ;;  %v3231_v23 = vpop.f32.mrf.mxu0  ;;  %v4061_v17 = vrot.slane %v3805_v38, %v5625_v10 }
 0x5c4   : > { %v4189_v29 = vadd.f32 %v4037_v18, %v3789_v25  ;;  %v3191_v45 = vpop.f32.mrf.mxu1 }
 0x5c5   : > { %v4483_v30 = vcombine.low %v4186_v20, %v4187_v27  ;;  %v3232_v31 = vpop.f32.mrf.mxu0  ;;  %v4069_v20 = vrot.slane %v3805_v38, %v5628_v11 }
 0x5c6   : > { %v4484_v32 = vcombine.low %v4188_v22, %v4189_v29 }
 0x5c7   : > { %v4491_v35 = vrot.slane %v4483_v30, %v5582_v19 }
 0x5c8   : > { %v4498_v34 = vrot.slane %v4484_v32, %v5582_v19 }
 0x5ca   : > { %v4499_v36 = vcombine.low %v4491_v35, %v4498_v34 }
 0x5cc   : > { %4563 = vst [vmem:[%s5591_s17 + $0x68] sm:$0xff] %v4499_v36 }
 0x5fe   : > { %v3268_v44 = vpop.f32.mrf.mxu1 }
 0x5ff   : > { %v3790_v47 = vmul.f32 %v3641_v37, %v3268_v44  ;;  %v3309_v24 = vpop.f32.mrf.mxu0 }
 0x600   : > { %v3792_v52 = vmul.f32 %v3649_v50, %v3309_v24  ;;  %v3270_v54 = vpop.f32.mrf.mxu1 }
 0x601   : > { %v3791_v58 = vmul.f32 %v3645_v42, %v3270_v54  ;;  %v3311_v59 = vpop.f32.mrf.mxu0  ;;  %v4190_v62 = vadd.f32 %v4041_v48, %v3790_v47 }
 0x602   : > { %v3793_v55 = vmul.f32 %v3653_v46, %v3311_v59  ;;  %v3272_v61 = vpop.f32.mrf.mxu1  ;;  %v4192_v63 = vadd.f32 %v4049_v60, %v3792_v52 }
 0x603   : > { %v4191_v56 = vadd.f32 %v4045_v51, %v3791_v58  ;;  %v3313_v53 = vpop.f32.mrf.mxu0 }
 0x604   : > { %v4193_v7 = vadd.f32 %v4053_v57, %v3793_v55  ;;  %v3273_v41 = vpop.f32.mrf.mxu1 }
 0x605   : > { %v4500_v0 = vcombine.low %v4190_v62, %v4191_v56  ;;  %v3314_v2 = vpop.f32.mrf.mxu0 }
 0x606   : > { %v4501_v43 = vcombine.low %v4192_v63, %v4193_v7 }
 0x607   : > { %v4508_v5 = vrot.slane %v4500_v0, %v5582_v19 }
 0x608   : > { %v4515_v39 = vrot.slane %v4501_v43, %v5582_v19 }
 0x60a   : > { %v4516_v6 = vcombine.low %v4508_v5, %v4515_v39 }
 0x60c   : > { %4564 = vst [vmem:[%s5591_s17 + $0x70] sm:$0xff] %v4516_v6 }
 0x63e   : > { %v3350_v12 = vpop.f32.mrf.mxu1 }
 0x63f   : > { %v3794_v15 = vmul.f32 %v3657_v49, %v3350_v12  ;;  %v3391_v16 = vpop.f32.mrf.mxu0 }
 0x640   : > { %v3796_v14 = vmul.f32 %v3665_v1, %v3391_v16  ;;  %v3352_v18 = vpop.f32.mrf.mxu1 }
 0x641   : > { %v4194_v21 = vadd.f32 %v4057_v8, %v3794_v15  ;;  %v3795_v28 = vmul.f32 %v3661_v9, %v3352_v18  ;;  %v3393_v3 = vpop.f32.mrf.mxu0 }
 0x642   : > { %v4196_v22 = vadd.f32 %v4065_v40, %v3796_v14  ;;  %v3797_v25 = vmul.f32 %v3669_v13, %v3393_v3  ;;  %v3354_v26 = vpop.f32.mrf.mxu1 }
 0x643   : > { %v4195_v4 = vadd.f32 %v4061_v17, %v3795_v28  ;;  %v3395_v27 = vpop.f32.mrf.mxu0 }
 0x644   : > { %v4197_v23 = vadd.f32 %v4069_v20, %v3797_v25  ;;  %v3355_v29 = vpop.f32.mrf.mxu1 }
 0x645   : > { %v4517_v10 = vcombine.low %v4194_v21, %v4195_v4  ;;  %v3396_v45 = vpop.f32.mrf.mxu0 }
 0x646   : > { %v4518_v30 = vcombine.low %v4196_v22, %v4197_v23 }
 0x647   : > { %v4525_v31 = vrot.slane %v4517_v10, %v5582_v19 }
 0x648   : > { %v4532_v11 = vrot.slane %v4518_v30, %v5582_v19 }
 0x64a   : > { %v4533_v32 = vcombine.low %v4525_v31, %v4532_v11 }
 0x64c   : > { %4565 = vst [vmem:[%s5591_s17 + $0x78] sm:$0xff] %v4533_v32 }
 0x64d   : > { %5030 = shalt.err (!%p5027_p13)
}
 0x64e   : > { %s5031_s11 = scalar_lea.hbm %s4579_s15, 2048  ;;  %s5035_s3 = scalar_lea.hbm %s6353_s6, 4096 }
 0x64f   : > { %p5032_p3 = scmp.ne.s32.totalorder %s4579_s15, %s5031_s11  ;;  %p5036_p10 = scmp.lt.s32.totalorder %s4579_s15, %s6353_s6 }
 0x650   : > { %p5037_p1 = scmp.lt.s32.totalorder %s5035_s3, %s5031_s11 }
 0x651   : > { %p5033_p9 = pnand %p5032_p3, %p6394_p11 }
 0x652   : > { %p5038_p7 = por %p5037_p1, %p5036_p10 }
 0x653   : > { %p5034_p6 = pneg %p5033_p9 }
 0x655   : > { %p5039_p5 = pnand %p5038_p7, %p5034_p6 }
 0x657   : > { %5042 = shalt.err (!%p5039_p5)
}
 0x658   : > { %4776 = dma.vmem_to_hbm [thread:$0]  (%p6394_p11), %s4582_s27, 2048, %s4579_s15, %s4567_s28  }
 0x659 PF: > { %s4593_s18 = sand.u32 1, %s5081_s21   ;;  %p6395_p4 = scmp.ne.s32.totalorder %s6375_s10, 0 }
 0x65a   : > { %p6396_p2 = scmp.ge.s32.totalorder %s5093_s24, 2  ;;  %s4594_s12 = scalar_lea.sflag [#allocation4], %s4593_s18 }
 0x65c   : > { %p4799_p0 = pnand %p6396_p2, %p6395_p4 }
 0x65e   : > { %p4800_p8 = pneg %p4799_p0 }
 0x660   : > { %5076 = dma.done.wait (%p4800_p8), %s4594_s12, 2048  }
 0x661   : > { %5078 = vsyncadd (%p4800_p8), %s4594_s12, 4294965248  ;;  %s6397_s24 = sld [smem:[#allocation19_spill]]  ;;  %s6399_s21 = smov %s5085_s22 }
 0x662   : > { %s6398_s8 = sld [smem:[#allocation20_spill]]  ;;  %s6400_s22 = smov %s5089_s23 }
 0x667   : > { %p24_p12 = scmp.ge.s32.totalorder %s6397_s24, 4  }
 0x668   : > { %s6401_s23 = smov %s6398_s8 }
 0x669   :  { %26 = sbr.rel (!%p24_p12) target bundleno = 12 (0xc), region = 126 }
 0x66e   :  { %4599 = vsyncpa [#allocation3], 1 }
 0x66f   :  { %4601 = vsyncpa [#allocation3 + $0x1], 1 }
 0x670   :  { %4602 = vsyncpa [#allocation6], 1 }
 0x671   :  { %4603 = vsyncpa [#allocation9], 1 }
 0x672   :  { %4605 = vsyncpa [#allocation9 + $0x1], 1 }
 0x673   :  { %4606 = vsyncpa [#allocation12], 1 }
 0x674   :  { %4608 = vsyncpa [#allocation12 + $0x1], 1 }
 0x675   :  { %4609 = vsyncpa [#allocation4], 1 }
 0x676   :  { %4611 = vsyncpa [#allocation4 + $0x1], 1 }

</bundles_post_ra>
